<compile_context>
chip_gen: v7x
topology: tpu7x:2x2x1
jax: 0.10.0
libtpu: 0.0.40
codegen_flags: <defaults>
</compile_context>

<pallas_src>
import functools

import jax
import jax.numpy as jnp
from jax import lax
from jax.experimental import pallas as pl
from jax.experimental.pallas import tpu as pltpu


def _shifted(v, offset, axis):
    """out[..., i, ...] = v[..., (i + offset) mod n, ...] along `axis` (wrapped)."""
    n = v.shape[axis]
    s = (-offset) % n
    if s == 0:
        return v
    return pltpu.roll(v, shift=s, axis=axis)


def _box_sum_axis(v, pad, axis):
    """K-tap (K = 2*pad + 1) box sum along `axis` with zero padding.

    Matches F.conv2d(padding=pad) boundary behavior: out-of-range taps
    contribute exactly zero (the wrapped roll is masked out with an iota
    compare), and the caller divides by the fixed K^2.
    """
    n = v.shape[axis]
    idx = lax.broadcasted_iota(jnp.int32, v.shape, axis)
    acc = v  # center tap (d = 0)
    for d in range(1, pad + 1):
        # tap v[i + d]: valid while i + d < n
        acc = acc + jnp.where(idx < n - d, _shifted(v, d, axis), 0.0)
        # tap v[i - d]: valid while i - d >= 0
        acc = acc + jnp.where(idx >= d, _shifted(v, -d, axis), 0.0)
    return acc


def _lce_kernel(x_ref, o_ref, *, kernel_size):
    # x_ref: (TB, H, W) VMEM tile holding TB (n, c) planes.
    pad = kernel_size // 2
    inv_k2 = 1.0 / float(kernel_size * kernel_size)
    x = x_ref[...].astype(jnp.float32)

    def box_filter(v):
        # Separable: W (lane) pass then H (sublane) pass.
        return _box_sum_axis(_box_sum_axis(v, pad, axis=2), pad, axis=1)

    sum_x = box_filter(x)
    sum_x2 = box_filter(x * x)

    local_mean = sum_x * inv_k2
    local_var = sum_x2 * inv_k2 - local_mean * local_mean
    local_var = jnp.maximum(local_var, 1e-6)
    stddev = jnp.sqrt(local_var)
    # Exact divide: approx EUP reciprocal was evaluated but not adopted (risks
    # the 1e-4 accuracy budget).
    o_ref[...] = ((x - local_mean) / (stddev + 1e-6)).astype(o_ref.dtype)


def _usable_vmem_bytes():
    """Generation-aware VMEM ceiling with headroom for Mosaic internal scratch."""
    try:
        cap = int(pltpu.get_tpu_info().vmem_capacity_bytes)
        if cap <= 0:
            raise ValueError("bad vmem capacity")
    except Exception:
        cap = 64 << 20  # conservative default (v7x per-TensorCore VMEM)
    return int(cap * 0.85)  # ~54 MiB on v7x, ~108 MiB on v5e/v6e


def _choose_tb(planes, plane_bytes, per_tile_budget_bytes):
    """Largest divisor of `planes` fitting the per-tile budget.

    Preference order: even grid length >= 2 (keeps v7x's two TensorCores
    balanced under 'parallel' semantics), then any grid length >= 2, then
    whatever fits.  Among equals, bigger TB (fewer ~0.35us grid steps) wins.
    """
    cap = max(1, per_tile_budget_bytes // plane_bytes)
    best, best_key = 1, (-1, 0)
    for tb in range(1, planes + 1):
        if planes % tb != 0 or tb > cap:
            continue
        grid_len = planes // tb
        if grid_len >= 2 and grid_len % 2 == 0:
            pref = 2
        elif grid_len >= 2:
            pref = 1
        else:
            pref = 0
        if (pref, tb) > best_key:
            best, best_key = tb, (pref, tb)
    return best


def local_contrast_enhancement(x, kernel_size=15):
    """x: (N, C, H, W) float32 -> (N, C, H, W) float32."""
    n, c, h, w = x.shape
    planes = n * c
    x_flat = x.reshape(planes, h, w)  # metadata-only reshape (no HBM copy)

    usable_vmem = _usable_vmem_bytes()
    plane_bytes = h * w * 4
    # Live set per grid step ~= in+out double-buffered (4 tiles) + ~12 tiles of
    # roll / mask / accumulator temps, so budget one tile at ~1/16 of VMEM.
    per_tile_budget = max(plane_bytes, usable_vmem // 16)
    tb = _choose_tb(planes, plane_bytes, per_tile_budget)
    grid_len = planes // tb

    tile_bytes = tb * plane_bytes
    vmem_need = 16 * tile_bytes + (2 << 20)
    vmem_limit = int(min(max(32 << 20, vmem_need), usable_vmem))

    kernel = functools.partial(_lce_kernel, kernel_size=kernel_size)

    out_flat = pl.pallas_call(
        kernel,
        out_shape=jax.ShapeDtypeStruct((planes, h, w), x.dtype),
        grid_spec=pltpu.PrefetchScalarGridSpec(
            num_scalar_prefetch=0,
            grid=(grid_len,),
            # Full H, W per block (block == full array dim), so no host-side
            # pad/slice HBM round trips; non-128 W => masked vst, accepted.
            in_specs=[pl.BlockSpec((tb, h, w), lambda i: (i, 0, 0))],
            out_specs=pl.BlockSpec((tb, h, w), lambda i: (i, 0, 0)),
        ),
        compiler_params=pltpu.CompilerParams(
            dimension_semantics=("parallel",),
            vmem_limit_bytes=vmem_limit,
        ),
    )(x_flat)

    return out_flat.reshape(n, c, h, w)


def _reference(x, kernel_size=15):
    """Plain-JAX reference mirroring the PyTorch module (depthwise conv2d)."""
    n, c, h, w = x.shape
    pad = kernel_size // 2
    filt = jnp.ones((c, 1, kernel_size, kernel_size), x.dtype) / (kernel_size ** 2)

    def dwconv(inp):
        return lax.conv_general_dilated(
            inp, filt,
            window_strides=(1, 1),
            padding=[(pad, pad), (pad, pad)],
            dimension_numbers=("NCHW", "OIHW", "NCHW"),
            feature_group_count=c,
        )

    local_mean = dwconv(x)
    local_var = dwconv(x * x) - local_mean ** 2
    local_var = jnp.maximum(local_var, 1e-6)
    stddev = jnp.sqrt(local_var)
    return (x - local_mean) / (stddev + 1e-6)


if __name__ == "__main__":
    key = jax.random.PRNGKey(0)
    x = jax.random.uniform(key, (2, 4, 16, 16), dtype=jnp.float32)

    out = local_contrast_enhancement(x, kernel_size=15)
    out = jax.block_until_ready(out)

    ref = _reference(x, kernel_size=15)
    assert out.shape == ref.shape and out.dtype == ref.dtype
    max_err = float(jnp.max(jnp.abs(out - ref)))
    assert jnp.allclose(out, ref, atol=1e-4, rtol=1e-4), max_err

    print("KERNEL_OK")
</pallas_src>

<mosaic_0001>
module attributes {stable_mosaic.version = 11 : i64} {
  func.func @_lce_kernel(%arg0: i32, %arg1: memref<4x16x16xf32, #tpu.memory_space<vmem>>, %arg2: memref<4x16x16xf32, #tpu.memory_space<vmem>>) attributes {dimension_semantics = [#tpu.dimension_semantics<parallel>], iteration_bounds = array<i64: 2>, scalar_prefetch = 0 : i64, scratch_operands = 0 : i64, tpu.core_type = #tpu.core_type<tc>, window_params = [{transform_indices = @transform_0, window_bounds = array<i64: 4, 16, 16>}, {transform_indices = @transform_1, window_bounds = array<i64: 4, 16, 16>}]} {
    %c0 = arith.constant 0 : index
    %c0_0 = arith.constant 0 : index
    %c0_1 = arith.constant 0 : index
    %0 = vector.load %arg1[%c0, %c0_0, %c0_1] : memref<4x16x16xf32, #tpu.memory_space<vmem>>, vector<4x16x16xf32>
    %1 = tpu.iota {dimensions = array<i32: 2>} : vector<4x16x16xi32>
    %c15_i32 = arith.constant 15 : i32
    %2 = vector.broadcast %c15_i32 : i32 to vector<4x16x16xi32>
    %3 = arith.cmpi slt, %1, %2 : vector<4x16x16xi32>
    %c15_i32_2 = arith.constant 15 : i32
    %4 = tpu.dynamic_rotate %0 by %c15_i32_2 dim 2 : vector<4x16x16xf32>, i32 -> vector<4x16x16xf32>
    %cst = arith.constant 0.000000e+00 : f32
    %5 = vector.broadcast %cst : f32 to vector<4x16x16xf32>
    %6 = arith.select %3, %4, %5 : vector<4x16x16xi1>, vector<4x16x16xf32>
    %7 = arith.addf %0, %6 : vector<4x16x16xf32>
    %c1_i32 = arith.constant 1 : i32
    %8 = vector.broadcast %c1_i32 : i32 to vector<4x16x16xi32>
    %9 = arith.cmpi sge, %1, %8 : vector<4x16x16xi32>
    %c1_i32_3 = arith.constant 1 : i32
    %10 = tpu.dynamic_rotate %0 by %c1_i32_3 dim 2 : vector<4x16x16xf32>, i32 -> vector<4x16x16xf32>
    %cst_4 = arith.constant 0.000000e+00 : f32
    %11 = vector.broadcast %cst_4 : f32 to vector<4x16x16xf32>
    %12 = arith.select %9, %10, %11 : vector<4x16x16xi1>, vector<4x16x16xf32>
    %13 = arith.addf %7, %12 : vector<4x16x16xf32>
    %c14_i32 = arith.constant 14 : i32
    %14 = vector.broadcast %c14_i32 : i32 to vector<4x16x16xi32>
    %15 = arith.cmpi slt, %1, %14 : vector<4x16x16xi32>
    %c14_i32_5 = arith.constant 14 : i32
    %16 = tpu.dynamic_rotate %0 by %c14_i32_5 dim 2 : vector<4x16x16xf32>, i32 -> vector<4x16x16xf32>
    %cst_6 = arith.constant 0.000000e+00 : f32
    %17 = vector.broadcast %cst_6 : f32 to vector<4x16x16xf32>
    %18 = arith.select %15, %16, %17 : vector<4x16x16xi1>, vector<4x16x16xf32>
    %19 = arith.addf %13, %18 : vector<4x16x16xf32>
    %c2_i32 = arith.constant 2 : i32
    %20 = vector.broadcast %c2_i32 : i32 to vector<4x16x16xi32>
    %21 = arith.cmpi sge, %1, %20 : vector<4x16x16xi32>
    %c2_i32_7 = arith.constant 2 : i32
    %22 = tpu.dynamic_rotate %0 by %c2_i32_7 dim 2 : vector<4x16x16xf32>, i32 -> vector<4x16x16xf32>
    %cst_8 = arith.constant 0.000000e+00 : f32
    %23 = vector.broadcast %cst_8 : f32 to vector<4x16x16xf32>
    %24 = arith.select %21, %22, %23 : vector<4x16x16xi1>, vector<4x16x16xf32>
    %25 = arith.addf %19, %24 : vector<4x16x16xf32>
    %c13_i32 = arith.constant 13 : i32
    %26 = vector.broadcast %c13_i32 : i32 to vector<4x16x16xi32>
    %27 = arith.cmpi slt, %1, %26 : vector<4x16x16xi32>
    %c13_i32_9 = arith.constant 13 : i32
    %28 = tpu.dynamic_rotate %0 by %c13_i32_9 dim 2 : vector<4x16x16xf32>, i32 -> vector<4x16x16xf32>
    %cst_10 = arith.constant 0.000000e+00 : f32
    %29 = vector.broadcast %cst_10 : f32 to vector<4x16x16xf32>
    %30 = arith.select %27, %28, %29 : vector<4x16x16xi1>, vector<4x16x16xf32>
    %31 = arith.addf %25, %30 : vector<4x16x16xf32>
    %c3_i32 = arith.constant 3 : i32
    %32 = vector.broadcast %c3_i32 : i32 to vector<4x16x16xi32>
    %33 = arith.cmpi sge, %1, %32 : vector<4x16x16xi32>
    %c3_i32_11 = arith.constant 3 : i32
    %34 = tpu.dynamic_rotate %0 by %c3_i32_11 dim 2 : vector<4x16x16xf32>, i32 -> vector<4x16x16xf32>
    %cst_12 = arith.constant 0.000000e+00 : f32
    %35 = vector.broadcast %cst_12 : f32 to vector<4x16x16xf32>
    %36 = arith.select %33, %34, %35 : vector<4x16x16xi1>, vector<4x16x16xf32>
    %37 = arith.addf %31, %36 : vector<4x16x16xf32>
    %c12_i32 = arith.constant 12 : i32
    %38 = vector.broadcast %c12_i32 : i32 to vector<4x16x16xi32>
    %39 = arith.cmpi slt, %1, %38 : vector<4x16x16xi32>
    %c12_i32_13 = arith.constant 12 : i32
    %40 = tpu.dynamic_rotate %0 by %c12_i32_13 dim 2 : vector<4x16x16xf32>, i32 -> vector<4x16x16xf32>
    %cst_14 = arith.constant 0.000000e+00 : f32
    %41 = vector.broadcast %cst_14 : f32 to vector<4x16x16xf32>
    %42 = arith.select %39, %40, %41 : vector<4x16x16xi1>, vector<4x16x16xf32>
    %43 = arith.addf %37, %42 : vector<4x16x16xf32>
    %c4_i32 = arith.constant 4 : i32
    %44 = vector.broadcast %c4_i32 : i32 to vector<4x16x16xi32>
    %45 = arith.cmpi sge, %1, %44 : vector<4x16x16xi32>
    %c4_i32_15 = arith.constant 4 : i32
    %46 = tpu.dynamic_rotate %0 by %c4_i32_15 dim 2 : vector<4x16x16xf32>, i32 -> vector<4x16x16xf32>
    %cst_16 = arith.constant 0.000000e+00 : f32
    %47 = vector.broadcast %cst_16 : f32 to vector<4x16x16xf32>
    %48 = arith.select %45, %46, %47 : vector<4x16x16xi1>, vector<4x16x16xf32>
    %49 = arith.addf %43, %48 : vector<4x16x16xf32>
    %c11_i32 = arith.constant 11 : i32
    %50 = vector.broadcast %c11_i32 : i32 to vector<4x16x16xi32>
    %51 = arith.cmpi slt, %1, %50 : vector<4x16x16xi32>
    %c11_i32_17 = arith.constant 11 : i32
    %52 = tpu.dynamic_rotate %0 by %c11_i32_17 dim 2 : vector<4x16x16xf32>, i32 -> vector<4x16x16xf32>
    %cst_18 = arith.constant 0.000000e+00 : f32
    %53 = vector.broadcast %cst_18 : f32 to vector<4x16x16xf32>
    %54 = arith.select %51, %52, %53 : vector<4x16x16xi1>, vector<4x16x16xf32>
    %55 = arith.addf %49, %54 : vector<4x16x16xf32>
    %c5_i32 = arith.constant 5 : i32
    %56 = vector.broadcast %c5_i32 : i32 to vector<4x16x16xi32>
    %57 = arith.cmpi sge, %1, %56 : vector<4x16x16xi32>
    %c5_i32_19 = arith.constant 5 : i32
    %58 = tpu.dynamic_rotate %0 by %c5_i32_19 dim 2 : vector<4x16x16xf32>, i32 -> vector<4x16x16xf32>
    %cst_20 = arith.constant 0.000000e+00 : f32
    %59 = vector.broadcast %cst_20 : f32 to vector<4x16x16xf32>
    %60 = arith.select %57, %58, %59 : vector<4x16x16xi1>, vector<4x16x16xf32>
    %61 = arith.addf %55, %60 : vector<4x16x16xf32>
    %c10_i32 = arith.constant 10 : i32
    %62 = vector.broadcast %c10_i32 : i32 to vector<4x16x16xi32>
    %63 = arith.cmpi slt, %1, %62 : vector<4x16x16xi32>
    %c10_i32_21 = arith.constant 10 : i32
    %64 = tpu.dynamic_rotate %0 by %c10_i32_21 dim 2 : vector<4x16x16xf32>, i32 -> vector<4x16x16xf32>
    %cst_22 = arith.constant 0.000000e+00 : f32
    %65 = vector.broadcast %cst_22 : f32 to vector<4x16x16xf32>
    %66 = arith.select %63, %64, %65 : vector<4x16x16xi1>, vector<4x16x16xf32>
    %67 = arith.addf %61, %66 : vector<4x16x16xf32>
    %c6_i32 = arith.constant 6 : i32
    %68 = vector.broadcast %c6_i32 : i32 to vector<4x16x16xi32>
    %69 = arith.cmpi sge, %1, %68 : vector<4x16x16xi32>
    %c6_i32_23 = arith.constant 6 : i32
    %70 = tpu.dynamic_rotate %0 by %c6_i32_23 dim 2 : vector<4x16x16xf32>, i32 -> vector<4x16x16xf32>
    %cst_24 = arith.constant 0.000000e+00 : f32
    %71 = vector.broadcast %cst_24 : f32 to vector<4x16x16xf32>
    %72 = arith.select %69, %70, %71 : vector<4x16x16xi1>, vector<4x16x16xf32>
    %73 = arith.addf %67, %72 : vector<4x16x16xf32>
    %c9_i32 = arith.constant 9 : i32
    %74 = vector.broadcast %c9_i32 : i32 to vector<4x16x16xi32>
    %75 = arith.cmpi slt, %1, %74 : vector<4x16x16xi32>
    %c9_i32_25 = arith.constant 9 : i32
    %76 = tpu.dynamic_rotate %0 by %c9_i32_25 dim 2 : vector<4x16x16xf32>, i32 -> vector<4x16x16xf32>
    %cst_26 = arith.constant 0.000000e+00 : f32
    %77 = vector.broadcast %cst_26 : f32 to vector<4x16x16xf32>
    %78 = arith.select %75, %76, %77 : vector<4x16x16xi1>, vector<4x16x16xf32>
    %79 = arith.addf %73, %78 : vector<4x16x16xf32>
    %c7_i32 = arith.constant 7 : i32
    %80 = vector.broadcast %c7_i32 : i32 to vector<4x16x16xi32>
    %81 = arith.cmpi sge, %1, %80 : vector<4x16x16xi32>
    %c7_i32_27 = arith.constant 7 : i32
    %82 = tpu.dynamic_rotate %0 by %c7_i32_27 dim 2 : vector<4x16x16xf32>, i32 -> vector<4x16x16xf32>
    %cst_28 = arith.constant 0.000000e+00 : f32
    %83 = vector.broadcast %cst_28 : f32 to vector<4x16x16xf32>
    %84 = arith.select %81, %82, %83 : vector<4x16x16xi1>, vector<4x16x16xf32>
    %85 = arith.addf %79, %84 : vector<4x16x16xf32>
    %86 = tpu.iota {dimensions = array<i32: 1>} : vector<4x16x16xi32>
    %c15_i32_29 = arith.constant 15 : i32
    %87 = vector.broadcast %c15_i32_29 : i32 to vector<4x16x16xi32>
    %88 = arith.cmpi slt, %86, %87 : vector<4x16x16xi32>
    %c15_i32_30 = arith.constant 15 : i32
    %89 = tpu.dynamic_rotate %85 by %c15_i32_30 dim 1 : vector<4x16x16xf32>, i32 -> vector<4x16x16xf32>
    %cst_31 = arith.constant 0.000000e+00 : f32
    %90 = vector.broadcast %cst_31 : f32 to vector<4x16x16xf32>
    %91 = arith.select %88, %89, %90 : vector<4x16x16xi1>, vector<4x16x16xf32>
    %92 = arith.addf %85, %91 : vector<4x16x16xf32>
    %c1_i32_32 = arith.constant 1 : i32
    %93 = vector.broadcast %c1_i32_32 : i32 to vector<4x16x16xi32>
    %94 = arith.cmpi sge, %86, %93 : vector<4x16x16xi32>
    %c1_i32_33 = arith.constant 1 : i32
    %95 = tpu.dynamic_rotate %85 by %c1_i32_33 dim 1 : vector<4x16x16xf32>, i32 -> vector<4x16x16xf32>
    %cst_34 = arith.constant 0.000000e+00 : f32
    %96 = vector.broadcast %cst_34 : f32 to vector<4x16x16xf32>
    %97 = arith.select %94, %95, %96 : vector<4x16x16xi1>, vector<4x16x16xf32>
    %98 = arith.addf %92, %97 : vector<4x16x16xf32>
    %c14_i32_35 = arith.constant 14 : i32
    %99 = vector.broadcast %c14_i32_35 : i32 to vector<4x16x16xi32>
    %100 = arith.cmpi slt, %86, %99 : vector<4x16x16xi32>
    %c14_i32_36 = arith.constant 14 : i32
    %101 = tpu.dynamic_rotate %85 by %c14_i32_36 dim 1 : vector<4x16x16xf32>, i32 -> vector<4x16x16xf32>
    %cst_37 = arith.constant 0.000000e+00 : f32
    %102 = vector.broadcast %cst_37 : f32 to vector<4x16x16xf32>
    %103 = arith.select %100, %101, %102 : vector<4x16x16xi1>, vector<4x16x16xf32>
    %104 = arith.addf %98, %103 : vector<4x16x16xf32>
    %c2_i32_38 = arith.constant 2 : i32
    %105 = vector.broadcast %c2_i32_38 : i32 to vector<4x16x16xi32>
    %106 = arith.cmpi sge, %86, %105 : vector<4x16x16xi32>
    %c2_i32_39 = arith.constant 2 : i32
    %107 = tpu.dynamic_rotate %85 by %c2_i32_39 dim 1 : vector<4x16x16xf32>, i32 -> vector<4x16x16xf32>
    %cst_40 = arith.constant 0.000000e+00 : f32
    %108 = vector.broadcast %cst_40 : f32 to vector<4x16x16xf32>
    %109 = arith.select %106, %107, %108 : vector<4x16x16xi1>, vector<4x16x16xf32>
    %110 = arith.addf %104, %109 : vector<4x16x16xf32>
    %c13_i32_41 = arith.constant 13 : i32
    %111 = vector.broadcast %c13_i32_41 : i32 to vector<4x16x16xi32>
    %112 = arith.cmpi slt, %86, %111 : vector<4x16x16xi32>
    %c13_i32_42 = arith.constant 13 : i32
    %113 = tpu.dynamic_rotate %85 by %c13_i32_42 dim 1 : vector<4x16x16xf32>, i32 -> vector<4x16x16xf32>
    %cst_43 = arith.constant 0.000000e+00 : f32
    %114 = vector.broadcast %cst_43 : f32 to vector<4x16x16xf32>
    %115 = arith.select %112, %113, %114 : vector<4x16x16xi1>, vector<4x16x16xf32>
    %116 = arith.addf %110, %115 : vector<4x16x16xf32>
    %c3_i32_44 = arith.constant 3 : i32
    %117 = vector.broadcast %c3_i32_44 : i32 to vector<4x16x16xi32>
    %118 = arith.cmpi sge, %86, %117 : vector<4x16x16xi32>
    %c3_i32_45 = arith.constant 3 : i32
    %119 = tpu.dynamic_rotate %85 by %c3_i32_45 dim 1 : vector<4x16x16xf32>, i32 -> vector<4x16x16xf32>
    %cst_46 = arith.constant 0.000000e+00 : f32
    %120 = vector.broadcast %cst_46 : f32 to vector<4x16x16xf32>
    %121 = arith.select %118, %119, %120 : vector<4x16x16xi1>, vector<4x16x16xf32>
    %122 = arith.addf %116, %121 : vector<4x16x16xf32>
    %c12_i32_47 = arith.constant 12 : i32
    %123 = vector.broadcast %c12_i32_47 : i32 to vector<4x16x16xi32>
    %124 = arith.cmpi slt, %86, %123 : vector<4x16x16xi32>
    %c12_i32_48 = arith.constant 12 : i32
    %125 = tpu.dynamic_rotate %85 by %c12_i32_48 dim 1 : vector<4x16x16xf32>, i32 -> vector<4x16x16xf32>
    %cst_49 = arith.constant 0.000000e+00 : f32
    %126 = vector.broadcast %cst_49 : f32 to vector<4x16x16xf32>
    %127 = arith.select %124, %125, %126 : vector<4x16x16xi1>, vector<4x16x16xf32>
    %128 = arith.addf %122, %127 : vector<4x16x16xf32>
    %c4_i32_50 = arith.constant 4 : i32
    %129 = vector.broadcast %c4_i32_50 : i32 to vector<4x16x16xi32>
    %130 = arith.cmpi sge, %86, %129 : vector<4x16x16xi32>
    %c4_i32_51 = arith.constant 4 : i32
    %131 = tpu.dynamic_rotate %85 by %c4_i32_51 dim 1 : vector<4x16x16xf32>, i32 -> vector<4x16x16xf32>
    %cst_52 = arith.constant 0.000000e+00 : f32
    %132 = vector.broadcast %cst_52 : f32 to vector<4x16x16xf32>
    %133 = arith.select %130, %131, %132 : vector<4x16x16xi1>, vector<4x16x16xf32>
    %134 = arith.addf %128, %133 : vector<4x16x16xf32>
    %c11_i32_53 = arith.constant 11 : i32
    %135 = vector.broadcast %c11_i32_53 : i32 to vector<4x16x16xi32>
    %136 = arith.cmpi slt, %86, %135 : vector<4x16x16xi32>
    %c11_i32_54 = arith.constant 11 : i32
    %137 = tpu.dynamic_rotate %85 by %c11_i32_54 dim 1 : vector<4x16x16xf32>, i32 -> vector<4x16x16xf32>
    %cst_55 = arith.constant 0.000000e+00 : f32
    %138 = vector.broadcast %cst_55 : f32 to vector<4x16x16xf32>
    %139 = arith.select %136, %137, %138 : vector<4x16x16xi1>, vector<4x16x16xf32>
    %140 = arith.addf %134, %139 : vector<4x16x16xf32>
    %c5_i32_56 = arith.constant 5 : i32
    %141 = vector.broadcast %c5_i32_56 : i32 to vector<4x16x16xi32>
    %142 = arith.cmpi sge, %86, %141 : vector<4x16x16xi32>
    %c5_i32_57 = arith.constant 5 : i32
    %143 = tpu.dynamic_rotate %85 by %c5_i32_57 dim 1 : vector<4x16x16xf32>, i32 -> vector<4x16x16xf32>
    %cst_58 = arith.constant 0.000000e+00 : f32
    %144 = vector.broadcast %cst_58 : f32 to vector<4x16x16xf32>
    %145 = arith.select %142, %143, %144 : vector<4x16x16xi1>, vector<4x16x16xf32>
    %146 = arith.addf %140, %145 : vector<4x16x16xf32>
    %c10_i32_59 = arith.constant 10 : i32
    %147 = vector.broadcast %c10_i32_59 : i32 to vector<4x16x16xi32>
    %148 = arith.cmpi slt, %86, %147 : vector<4x16x16xi32>
    %c10_i32_60 = arith.constant 10 : i32
    %149 = tpu.dynamic_rotate %85 by %c10_i32_60 dim 1 : vector<4x16x16xf32>, i32 -> vector<4x16x16xf32>
    %cst_61 = arith.constant 0.000000e+00 : f32
    %150 = vector.broadcast %cst_61 : f32 to vector<4x16x16xf32>
    %151 = arith.select %148, %149, %150 : vector<4x16x16xi1>, vector<4x16x16xf32>
    %152 = arith.addf %146, %151 : vector<4x16x16xf32>
    %c6_i32_62 = arith.constant 6 : i32
    %153 = vector.broadcast %c6_i32_62 : i32 to vector<4x16x16xi32>
    %154 = arith.cmpi sge, %86, %153 : vector<4x16x16xi32>
    %c6_i32_63 = arith.constant 6 : i32
    %155 = tpu.dynamic_rotate %85 by %c6_i32_63 dim 1 : vector<4x16x16xf32>, i32 -> vector<4x16x16xf32>
    %cst_64 = arith.constant 0.000000e+00 : f32
    %156 = vector.broadcast %cst_64 : f32 to vector<4x16x16xf32>
    %157 = arith.select %154, %155, %156 : vector<4x16x16xi1>, vector<4x16x16xf32>
    %158 = arith.addf %152, %157 : vector<4x16x16xf32>
    %c9_i32_65 = arith.constant 9 : i32
    %159 = vector.broadcast %c9_i32_65 : i32 to vector<4x16x16xi32>
    %160 = arith.cmpi slt, %86, %159 : vector<4x16x16xi32>
    %c9_i32_66 = arith.constant 9 : i32
    %161 = tpu.dynamic_rotate %85 by %c9_i32_66 dim 1 : vector<4x16x16xf32>, i32 -> vector<4x16x16xf32>
    %cst_67 = arith.constant 0.000000e+00 : f32
    %162 = vector.broadcast %cst_67 : f32 to vector<4x16x16xf32>
    %163 = arith.select %160, %161, %162 : vector<4x16x16xi1>, vector<4x16x16xf32>
    %164 = arith.addf %158, %163 : vector<4x16x16xf32>
    %c7_i32_68 = arith.constant 7 : i32
    %165 = vector.broadcast %c7_i32_68 : i32 to vector<4x16x16xi32>
    %166 = arith.cmpi sge, %86, %165 : vector<4x16x16xi32>
    %c7_i32_69 = arith.constant 7 : i32
    %167 = tpu.dynamic_rotate %85 by %c7_i32_69 dim 1 : vector<4x16x16xf32>, i32 -> vector<4x16x16xf32>
    %cst_70 = arith.constant 0.000000e+00 : f32
    %168 = vector.broadcast %cst_70 : f32 to vector<4x16x16xf32>
    %169 = arith.select %166, %167, %168 : vector<4x16x16xi1>, vector<4x16x16xf32>
    %170 = arith.addf %164, %169 : vector<4x16x16xf32>
    %171 = arith.mulf %0, %0 : vector<4x16x16xf32>
    %172 = tpu.iota {dimensions = array<i32: 2>} : vector<4x16x16xi32>
    %c15_i32_71 = arith.constant 15 : i32
    %173 = vector.broadcast %c15_i32_71 : i32 to vector<4x16x16xi32>
    %174 = arith.cmpi slt, %172, %173 : vector<4x16x16xi32>
    %c15_i32_72 = arith.constant 15 : i32
    %175 = tpu.dynamic_rotate %171 by %c15_i32_72 dim 2 : vector<4x16x16xf32>, i32 -> vector<4x16x16xf32>
    %cst_73 = arith.constant 0.000000e+00 : f32
    %176 = vector.broadcast %cst_73 : f32 to vector<4x16x16xf32>
    %177 = arith.select %174, %175, %176 : vector<4x16x16xi1>, vector<4x16x16xf32>
    %178 = arith.addf %171, %177 : vector<4x16x16xf32>
    %c1_i32_74 = arith.constant 1 : i32
    %179 = vector.broadcast %c1_i32_74 : i32 to vector<4x16x16xi32>
    %180 = arith.cmpi sge, %172, %179 : vector<4x16x16xi32>
    %c1_i32_75 = arith.constant 1 : i32
    %181 = tpu.dynamic_rotate %171 by %c1_i32_75 dim 2 : vector<4x16x16xf32>, i32 -> vector<4x16x16xf32>
    %cst_76 = arith.constant 0.000000e+00 : f32
    %182 = vector.broadcast %cst_76 : f32 to vector<4x16x16xf32>
    %183 = arith.select %180, %181, %182 : vector<4x16x16xi1>, vector<4x16x16xf32>
    %184 = arith.addf %178, %183 : vector<4x16x16xf32>
    %c14_i32_77 = arith.constant 14 : i32
    %185 = vector.broadcast %c14_i32_77 : i32 to vector<4x16x16xi32>
    %186 = arith.cmpi slt, %172, %185 : vector<4x16x16xi32>
    %c14_i32_78 = arith.constant 14 : i32
    %187 = tpu.dynamic_rotate %171 by %c14_i32_78 dim 2 : vector<4x16x16xf32>, i32 -> vector<4x16x16xf32>
    %cst_79 = arith.constant 0.000000e+00 : f32
    %188 = vector.broadcast %cst_79 : f32 to vector<4x16x16xf32>
    %189 = arith.select %186, %187, %188 : vector<4x16x16xi1>, vector<4x16x16xf32>
    %190 = arith.addf %184, %189 : vector<4x16x16xf32>
    %c2_i32_80 = arith.constant 2 : i32
    %191 = vector.broadcast %c2_i32_80 : i32 to vector<4x16x16xi32>
    %192 = arith.cmpi sge, %172, %191 : vector<4x16x16xi32>
    %c2_i32_81 = arith.constant 2 : i32
    %193 = tpu.dynamic_rotate %171 by %c2_i32_81 dim 2 : vector<4x16x16xf32>, i32 -> vector<4x16x16xf32>
    %cst_82 = arith.constant 0.000000e+00 : f32
    %194 = vector.broadcast %cst_82 : f32 to vector<4x16x16xf32>
    %195 = arith.select %192, %193, %194 : vector<4x16x16xi1>, vector<4x16x16xf32>
    %196 = arith.addf %190, %195 : vector<4x16x16xf32>
    %c13_i32_83 = arith.constant 13 : i32
    %197 = vector.broadcast %c13_i32_83 : i32 to vector<4x16x16xi32>
    %198 = arith.cmpi slt, %172, %197 : vector<4x16x16xi32>
    %c13_i32_84 = arith.constant 13 : i32
    %199 = tpu.dynamic_rotate %171 by %c13_i32_84 dim 2 : vector<4x16x16xf32>, i32 -> vector<4x16x16xf32>
    %cst_85 = arith.constant 0.000000e+00 : f32
    %200 = vector.broadcast %cst_85 : f32 to vector<4x16x16xf32>
    %201 = arith.select %198, %199, %200 : vector<4x16x16xi1>, vector<4x16x16xf32>
    %202 = arith.addf %196, %201 : vector<4x16x16xf32>
    %c3_i32_86 = arith.constant 3 : i32
    %203 = vector.broadcast %c3_i32_86 : i32 to vector<4x16x16xi32>
    %204 = arith.cmpi sge, %172, %203 : vector<4x16x16xi32>
    %c3_i32_87 = arith.constant 3 : i32
    %205 = tpu.dynamic_rotate %171 by %c3_i32_87 dim 2 : vector<4x16x16xf32>, i32 -> vector<4x16x16xf32>
    %cst_88 = arith.constant 0.000000e+00 : f32
    %206 = vector.broadcast %cst_88 : f32 to vector<4x16x16xf32>
    %207 = arith.select %204, %205, %206 : vector<4x16x16xi1>, vector<4x16x16xf32>
    %208 = arith.addf %202, %207 : vector<4x16x16xf32>
    %c12_i32_89 = arith.constant 12 : i32
    %209 = vector.broadcast %c12_i32_89 : i32 to vector<4x16x16xi32>
    %210 = arith.cmpi slt, %172, %209 : vector<4x16x16xi32>
    %c12_i32_90 = arith.constant 12 : i32
    %211 = tpu.dynamic_rotate %171 by %c12_i32_90 dim 2 : vector<4x16x16xf32>, i32 -> vector<4x16x16xf32>
    %cst_91 = arith.constant 0.000000e+00 : f32
    %212 = vector.broadcast %cst_91 : f32 to vector<4x16x16xf32>
    %213 = arith.select %210, %211, %212 : vector<4x16x16xi1>, vector<4x16x16xf32>
    %214 = arith.addf %208, %213 : vector<4x16x16xf32>
    %c4_i32_92 = arith.constant 4 : i32
    %215 = vector.broadcast %c4_i32_92 : i32 to vector<4x16x16xi32>
    %216 = arith.cmpi sge, %172, %215 : vector<4x16x16xi32>
    %c4_i32_93 = arith.constant 4 : i32
    %217 = tpu.dynamic_rotate %171 by %c4_i32_93 dim 2 : vector<4x16x16xf32>, i32 -> vector<4x16x16xf32>
    %cst_94 = arith.constant 0.000000e+00 : f32
    %218 = vector.broadcast %cst_94 : f32 to vector<4x16x16xf32>
    %219 = arith.select %216, %217, %218 : vector<4x16x16xi1>, vector<4x16x16xf32>
    %220 = arith.addf %214, %219 : vector<4x16x16xf32>
    %c11_i32_95 = arith.constant 11 : i32
    %221 = vector.broadcast %c11_i32_95 : i32 to vector<4x16x16xi32>
    %222 = arith.cmpi slt, %172, %221 : vector<4x16x16xi32>
    %c11_i32_96 = arith.constant 11 : i32
    %223 = tpu.dynamic_rotate %171 by %c11_i32_96 dim 2 : vector<4x16x16xf32>, i32 -> vector<4x16x16xf32>
    %cst_97 = arith.constant 0.000000e+00 : f32
    %224 = vector.broadcast %cst_97 : f32 to vector<4x16x16xf32>
    %225 = arith.select %222, %223, %224 : vector<4x16x16xi1>, vector<4x16x16xf32>
    %226 = arith.addf %220, %225 : vector<4x16x16xf32>
    %c5_i32_98 = arith.constant 5 : i32
    %227 = vector.broadcast %c5_i32_98 : i32 to vector<4x16x16xi32>
    %228 = arith.cmpi sge, %172, %227 : vector<4x16x16xi32>
    %c5_i32_99 = arith.constant 5 : i32
    %229 = tpu.dynamic_rotate %171 by %c5_i32_99 dim 2 : vector<4x16x16xf32>, i32 -> vector<4x16x16xf32>
    %cst_100 = arith.constant 0.000000e+00 : f32
    %230 = vector.broadcast %cst_100 : f32 to vector<4x16x16xf32>
    %231 = arith.select %228, %229, %230 : vector<4x16x16xi1>, vector<4x16x16xf32>
    %232 = arith.addf %226, %231 : vector<4x16x16xf32>
    %c10_i32_101 = arith.constant 10 : i32
    %233 = vector.broadcast %c10_i32_101 : i32 to vector<4x16x16xi32>
    %234 = arith.cmpi slt, %172, %233 : vector<4x16x16xi32>
    %c10_i32_102 = arith.constant 10 : i32
    %235 = tpu.dynamic_rotate %171 by %c10_i32_102 dim 2 : vector<4x16x16xf32>, i32 -> vector<4x16x16xf32>
    %cst_103 = arith.constant 0.000000e+00 : f32
    %236 = vector.broadcast %cst_103 : f32 to vector<4x16x16xf32>
    %237 = arith.select %234, %235, %236 : vector<4x16x16xi1>, vector<4x16x16xf32>
    %238 = arith.addf %232, %237 : vector<4x16x16xf32>
    %c6_i32_104 = arith.constant 6 : i32
    %239 = vector.broadcast %c6_i32_104 : i32 to vector<4x16x16xi32>
    %240 = arith.cmpi sge, %172, %239 : vector<4x16x16xi32>
    %c6_i32_105 = arith.constant 6 : i32
    %241 = tpu.dynamic_rotate %171 by %c6_i32_105 dim 2 : vector<4x16x16xf32>, i32 -> vector<4x16x16xf32>
    %cst_106 = arith.constant 0.000000e+00 : f32
    %242 = vector.broadcast %cst_106 : f32 to vector<4x16x16xf32>
    %243 = arith.select %240, %241, %242 : vector<4x16x16xi1>, vector<4x16x16xf32>
    %244 = arith.addf %238, %243 : vector<4x16x16xf32>
    %c9_i32_107 = arith.constant 9 : i32
    %245 = vector.broadcast %c9_i32_107 : i32 to vector<4x16x16xi32>
    %246 = arith.cmpi slt, %172, %245 : vector<4x16x16xi32>
    %c9_i32_108 = arith.constant 9 : i32
    %247 = tpu.dynamic_rotate %171 by %c9_i32_108 dim 2 : vector<4x16x16xf32>, i32 -> vector<4x16x16xf32>
    %cst_109 = arith.constant 0.000000e+00 : f32
    %248 = vector.broadcast %cst_109 : f32 to vector<4x16x16xf32>
    %249 = arith.select %246, %247, %248 : vector<4x16x16xi1>, vector<4x16x16xf32>
    %250 = arith.addf %244, %249 : vector<4x16x16xf32>
    %c7_i32_110 = arith.constant 7 : i32
    %251 = vector.broadcast %c7_i32_110 : i32 to vector<4x16x16xi32>
    %252 = arith.cmpi sge, %172, %251 : vector<4x16x16xi32>
    %c7_i32_111 = arith.constant 7 : i32
    %253 = tpu.dynamic_rotate %171 by %c7_i32_111 dim 2 : vector<4x16x16xf32>, i32 -> vector<4x16x16xf32>
    %cst_112 = arith.constant 0.000000e+00 : f32
    %254 = vector.broadcast %cst_112 : f32 to vector<4x16x16xf32>
    %255 = arith.select %252, %253, %254 : vector<4x16x16xi1>, vector<4x16x16xf32>
    %256 = arith.addf %250, %255 : vector<4x16x16xf32>
    %257 = tpu.iota {dimensions = array<i32: 1>} : vector<4x16x16xi32>
    %c15_i32_113 = arith.constant 15 : i32
    %258 = vector.broadcast %c15_i32_113 : i32 to vector<4x16x16xi32>
    %259 = arith.cmpi slt, %257, %258 : vector<4x16x16xi32>
    %c15_i32_114 = arith.constant 15 : i32
    %260 = tpu.dynamic_rotate %256 by %c15_i32_114 dim 1 : vector<4x16x16xf32>, i32 -> vector<4x16x16xf32>
    %cst_115 = arith.constant 0.000000e+00 : f32
    %261 = vector.broadcast %cst_115 : f32 to vector<4x16x16xf32>
    %262 = arith.select %259, %260, %261 : vector<4x16x16xi1>, vector<4x16x16xf32>
    %263 = arith.addf %256, %262 : vector<4x16x16xf32>
    %c1_i32_116 = arith.constant 1 : i32
    %264 = vector.broadcast %c1_i32_116 : i32 to vector<4x16x16xi32>
    %265 = arith.cmpi sge, %257, %264 : vector<4x16x16xi32>
    %c1_i32_117 = arith.constant 1 : i32
    %266 = tpu.dynamic_rotate %256 by %c1_i32_117 dim 1 : vector<4x16x16xf32>, i32 -> vector<4x16x16xf32>
    %cst_118 = arith.constant 0.000000e+00 : f32
    %267 = vector.broadcast %cst_118 : f32 to vector<4x16x16xf32>
    %268 = arith.select %265, %266, %267 : vector<4x16x16xi1>, vector<4x16x16xf32>
    %269 = arith.addf %263, %268 : vector<4x16x16xf32>
    %c14_i32_119 = arith.constant 14 : i32
    %270 = vector.broadcast %c14_i32_119 : i32 to vector<4x16x16xi32>
    %271 = arith.cmpi slt, %257, %270 : vector<4x16x16xi32>
    %c14_i32_120 = arith.constant 14 : i32
    %272 = tpu.dynamic_rotate %256 by %c14_i32_120 dim 1 : vector<4x16x16xf32>, i32 -> vector<4x16x16xf32>
    %cst_121 = arith.constant 0.000000e+00 : f32
    %273 = vector.broadcast %cst_121 : f32 to vector<4x16x16xf32>
    %274 = arith.select %271, %272, %273 : vector<4x16x16xi1>, vector<4x16x16xf32>
    %275 = arith.addf %269, %274 : vector<4x16x16xf32>
    %c2_i32_122 = arith.constant 2 : i32
    %276 = vector.broadcast %c2_i32_122 : i32 to vector<4x16x16xi32>
    %277 = arith.cmpi sge, %257, %276 : vector<4x16x16xi32>
    %c2_i32_123 = arith.constant 2 : i32
    %278 = tpu.dynamic_rotate %256 by %c2_i32_123 dim 1 : vector<4x16x16xf32>, i32 -> vector<4x16x16xf32>
    %cst_124 = arith.constant 0.000000e+00 : f32
    %279 = vector.broadcast %cst_124 : f32 to vector<4x16x16xf32>
    %280 = arith.select %277, %278, %279 : vector<4x16x16xi1>, vector<4x16x16xf32>
    %281 = arith.addf %275, %280 : vector<4x16x16xf32>
    %c13_i32_125 = arith.constant 13 : i32
    %282 = vector.broadcast %c13_i32_125 : i32 to vector<4x16x16xi32>
    %283 = arith.cmpi slt, %257, %282 : vector<4x16x16xi32>
    %c13_i32_126 = arith.constant 13 : i32
    %284 = tpu.dynamic_rotate %256 by %c13_i32_126 dim 1 : vector<4x16x16xf32>, i32 -> vector<4x16x16xf32>
    %cst_127 = arith.constant 0.000000e+00 : f32
    %285 = vector.broadcast %cst_127 : f32 to vector<4x16x16xf32>
    %286 = arith.select %283, %284, %285 : vector<4x16x16xi1>, vector<4x16x16xf32>
    %287 = arith.addf %281, %286 : vector<4x16x16xf32>
    %c3_i32_128 = arith.constant 3 : i32
    %288 = vector.broadcast %c3_i32_128 : i32 to vector<4x16x16xi32>
    %289 = arith.cmpi sge, %257, %288 : vector<4x16x16xi32>
    %c3_i32_129 = arith.constant 3 : i32
    %290 = tpu.dynamic_rotate %256 by %c3_i32_129 dim 1 : vector<4x16x16xf32>, i32 -> vector<4x16x16xf32>
    %cst_130 = arith.constant 0.000000e+00 : f32
    %291 = vector.broadcast %cst_130 : f32 to vector<4x16x16xf32>
    %292 = arith.select %289, %290, %291 : vector<4x16x16xi1>, vector<4x16x16xf32>
    %293 = arith.addf %287, %292 : vector<4x16x16xf32>
    %c12_i32_131 = arith.constant 12 : i32
    %294 = vector.broadcast %c12_i32_131 : i32 to vector<4x16x16xi32>
    %295 = arith.cmpi slt, %257, %294 : vector<4x16x16xi32>
    %c12_i32_132 = arith.constant 12 : i32
    %296 = tpu.dynamic_rotate %256 by %c12_i32_132 dim 1 : vector<4x16x16xf32>, i32 -> vector<4x16x16xf32>
    %cst_133 = arith.constant 0.000000e+00 : f32
    %297 = vector.broadcast %cst_133 : f32 to vector<4x16x16xf32>
    %298 = arith.select %295, %296, %297 : vector<4x16x16xi1>, vector<4x16x16xf32>
    %299 = arith.addf %293, %298 : vector<4x16x16xf32>
    %c4_i32_134 = arith.constant 4 : i32
    %300 = vector.broadcast %c4_i32_134 : i32 to vector<4x16x16xi32>
    %301 = arith.cmpi sge, %257, %300 : vector<4x16x16xi32>
    %c4_i32_135 = arith.constant 4 : i32
    %302 = tpu.dynamic_rotate %256 by %c4_i32_135 dim 1 : vector<4x16x16xf32>, i32 -> vector<4x16x16xf32>
    %cst_136 = arith.constant 0.000000e+00 : f32
    %303 = vector.broadcast %cst_136 : f32 to vector<4x16x16xf32>
    %304 = arith.select %301, %302, %303 : vector<4x16x16xi1>, vector<4x16x16xf32>
    %305 = arith.addf %299, %304 : vector<4x16x16xf32>
    %c11_i32_137 = arith.constant 11 : i32
    %306 = vector.broadcast %c11_i32_137 : i32 to vector<4x16x16xi32>
    %307 = arith.cmpi slt, %257, %306 : vector<4x16x16xi32>
    %c11_i32_138 = arith.constant 11 : i32
    %308 = tpu.dynamic_rotate %256 by %c11_i32_138 dim 1 : vector<4x16x16xf32>, i32 -> vector<4x16x16xf32>
    %cst_139 = arith.constant 0.000000e+00 : f32
    %309 = vector.broadcast %cst_139 : f32 to vector<4x16x16xf32>
    %310 = arith.select %307, %308, %309 : vector<4x16x16xi1>, vector<4x16x16xf32>
    %311 = arith.addf %305, %310 : vector<4x16x16xf32>
    %c5_i32_140 = arith.constant 5 : i32
    %312 = vector.broadcast %c5_i32_140 : i32 to vector<4x16x16xi32>
    %313 = arith.cmpi sge, %257, %312 : vector<4x16x16xi32>
    %c5_i32_141 = arith.constant 5 : i32
    %314 = tpu.dynamic_rotate %256 by %c5_i32_141 dim 1 : vector<4x16x16xf32>, i32 -> vector<4x16x16xf32>
    %cst_142 = arith.constant 0.000000e+00 : f32
    %315 = vector.broadcast %cst_142 : f32 to vector<4x16x16xf32>
    %316 = arith.select %313, %314, %315 : vector<4x16x16xi1>, vector<4x16x16xf32>
    %317 = arith.addf %311, %316 : vector<4x16x16xf32>
    %c10_i32_143 = arith.constant 10 : i32
    %318 = vector.broadcast %c10_i32_143 : i32 to vector<4x16x16xi32>
    %319 = arith.cmpi slt, %257, %318 : vector<4x16x16xi32>
    %c10_i32_144 = arith.constant 10 : i32
    %320 = tpu.dynamic_rotate %256 by %c10_i32_144 dim 1 : vector<4x16x16xf32>, i32 -> vector<4x16x16xf32>
    %cst_145 = arith.constant 0.000000e+00 : f32
    %321 = vector.broadcast %cst_145 : f32 to vector<4x16x16xf32>
    %322 = arith.select %319, %320, %321 : vector<4x16x16xi1>, vector<4x16x16xf32>
    %323 = arith.addf %317, %322 : vector<4x16x16xf32>
    %c6_i32_146 = arith.constant 6 : i32
    %324 = vector.broadcast %c6_i32_146 : i32 to vector<4x16x16xi32>
    %325 = arith.cmpi sge, %257, %324 : vector<4x16x16xi32>
    %c6_i32_147 = arith.constant 6 : i32
    %326 = tpu.dynamic_rotate %256 by %c6_i32_147 dim 1 : vector<4x16x16xf32>, i32 -> vector<4x16x16xf32>
    %cst_148 = arith.constant 0.000000e+00 : f32
    %327 = vector.broadcast %cst_148 : f32 to vector<4x16x16xf32>
    %328 = arith.select %325, %326, %327 : vector<4x16x16xi1>, vector<4x16x16xf32>
    %329 = arith.addf %323, %328 : vector<4x16x16xf32>
    %c9_i32_149 = arith.constant 9 : i32
    %330 = vector.broadcast %c9_i32_149 : i32 to vector<4x16x16xi32>
    %331 = arith.cmpi slt, %257, %330 : vector<4x16x16xi32>
    %c9_i32_150 = arith.constant 9 : i32
    %332 = tpu.dynamic_rotate %256 by %c9_i32_150 dim 1 : vector<4x16x16xf32>, i32 -> vector<4x16x16xf32>
    %cst_151 = arith.constant 0.000000e+00 : f32
    %333 = vector.broadcast %cst_151 : f32 to vector<4x16x16xf32>
    %334 = arith.select %331, %332, %333 : vector<4x16x16xi1>, vector<4x16x16xf32>
    %335 = arith.addf %329, %334 : vector<4x16x16xf32>
    %c7_i32_152 = arith.constant 7 : i32
    %336 = vector.broadcast %c7_i32_152 : i32 to vector<4x16x16xi32>
    %337 = arith.cmpi sge, %257, %336 : vector<4x16x16xi32>
    %c7_i32_153 = arith.constant 7 : i32
    %338 = tpu.dynamic_rotate %256 by %c7_i32_153 dim 1 : vector<4x16x16xf32>, i32 -> vector<4x16x16xf32>
    %cst_154 = arith.constant 0.000000e+00 : f32
    %339 = vector.broadcast %cst_154 : f32 to vector<4x16x16xf32>
    %340 = arith.select %337, %338, %339 : vector<4x16x16xi1>, vector<4x16x16xf32>
    %341 = arith.addf %335, %340 : vector<4x16x16xf32>
    %cst_155 = arith.constant 0.00444444455 : f32
    %342 = vector.broadcast %cst_155 : f32 to vector<4x16x16xf32>
    %343 = arith.mulf %170, %342 : vector<4x16x16xf32>
    %cst_156 = arith.constant 0.00444444455 : f32
    %344 = vector.broadcast %cst_156 : f32 to vector<4x16x16xf32>
    %345 = arith.mulf %341, %344 : vector<4x16x16xf32>
    %346 = arith.mulf %343, %343 : vector<4x16x16xf32>
    %347 = arith.subf %345, %346 : vector<4x16x16xf32>
    %cst_157 = arith.constant 9.99999997E-7 : f32
    %348 = vector.broadcast %cst_157 : f32 to vector<4x16x16xf32>
    %349 = arith.maximumf %347, %348 : vector<4x16x16xf32>
    %350 = math.sqrt %349 : vector<4x16x16xf32>
    %351 = arith.subf %0, %343 : vector<4x16x16xf32>
    %cst_158 = arith.constant 9.99999997E-7 : f32
    %352 = vector.broadcast %cst_158 : f32 to vector<4x16x16xf32>
    %353 = arith.addf %350, %352 : vector<4x16x16xf32>
    %354 = arith.divf %351, %353 : vector<4x16x16xf32>
    %c0_159 = arith.constant 0 : index
    %c0_160 = arith.constant 0 : index
    %c0_161 = arith.constant 0 : index
    %355 = vector.load %arg2[%c0_159, %c0_160, %c0_161] : memref<4x16x16xf32, #tpu.memory_space<vmem>>, vector<4x16x16xf32>
    tpu.vector_store %arg2[%c0_159, %c0_160, %c0_161], %354 {strides = array<i32>} : memref<4x16x16xf32, #tpu.memory_space<vmem>>, vector<4x16x16xf32>,
    return
  }
  func.func @transform_0(%arg0: i32) -> (i32, i32, i32) {
    %c0_i32 = arith.constant 0 : i32
    %c0_i32_0 = arith.constant 0 : i32
    %c0_i32_1 = arith.constant 0 : i32
    return %arg0, %c0_i32, %c0_i32_0 : i32, i32, i32
  }
  func.func @transform_1(%arg0: i32) -> (i32, i32, i32) {
    %c0_i32 = arith.constant 0 : i32
    %c0_i32_0 = arith.constant 0 : i32
    %c0_i32_1 = arith.constant 0 : i32
    return %arg0, %c0_i32, %c0_i32_0 : i32, i32, i32
  }
}

</mosaic_0001>

<bundles_post_ra>
// kernel: tpu_custom_call.1
= control target key start
LH: loop header
LB: loop body
LE: loop exit
PB: predicated region body
PF: predicated region fallthrough
CT: control target
= control target key end

     0   :  { %6 = vsyncpa [#allocation3], 0  ;;  %s5683_s0 = inlined_call_operand.hbm [shape: f32[8,16,16], index: 0, kind: input, shape index: {}]   ;;  %s5684_s1 = inlined_call_operand.hbm [shape: f32[8,16,16], index: 1, kind: output, shape index: {}]  }
   0x1   :  { %8 = vsyncpa [#allocation3 + $0x1], 0 }
   0x2   :  { %9 = vsyncpa [#allocation4], 0 }
   0x3   :  { %11 = vsyncpa [#allocation4 + $0x1], 0  ;;  %s2592_s6 = smov 0   ;;  %s2594_s7 = smov 0  }
   0x4   :  { %s2596_s8 = smov 0   ;;  %s2598_s9 = smov 0  }
   0x5 LB: > { %s2613_s10 = sadd.s32 4294967295, %s2559_s9   ;;  %s2338_s11 = sadd.s32 4294967294, %s2559_s9   ;;  %s2559_s9 = sphi %s2598_s9, %s6078_s9   ;;  %s2555_s8 = sphi %s2596_s8, %s6077_s8   ;;  %s2551_s7 = sphi %s2594_s7, %s6076_s7   ;;  %s2547_s6 = sphi %s2592_s6, %s6075_s6  }
   0x6   : > { %s2617_s12 = sadd.s32 1, %s2559_s9   ;;  %s24_s13 = sadd.s32 1, %s2555_s8 }
   0x7   : > { %s21_s14 = ssub.s32 %s2559_s9, %s2617_s12  ;;  %p31_p0 = scmp.ne.s32.totalorder %s2555_s8, %s2551_s7 }
   0x8   : > { %p22_p1 = scmp.eq.s32.totalorder %s21_s14, 0  ;;  %p32_p2 = scmp.eq.s32.totalorder %s2559_s9, 0 }
   0x9   : > { %p37_p3 = scmp.ne.s32.totalorder %s2551_s7, %s2547_s6  ;;  %p38_p4 = scmp.eq.s32.totalorder %s2613_s10, 0 }
   0xa   : > { %s2629_s15 = scalar_select %p22_p1, %s2555_s8, %s24_s13  }
   0xb   : > { %p2631_p5 = por %p32_p2, %p31_p0  ;;  %p2635_p6 = por %p38_p4, %p37_p3 }
   0xc   : > { %p61_p7 = scmp.eq.s32.totalorder %s2613_s10, 1  ;;  %p67_p8 = scmp.eq.s32.totalorder %s2338_s11, 1 }
   0xd   : > { %p2370_p10 = scmp.lt.s32.totalorder %s2559_s9, 2  ;;  %s87_s20 = sand.u32 1, %s2555_s8  }
   0xe   : > { %p2642_p11 = por %p61_p7, %p31_p0  ;;  %p2646_p12 = por %p67_p8, %p37_p3 }
   0xf   : > { %s2355_s21 = sshll.u32 %s2559_s9, 10  ;;  %s2341_s22 = sshll.u32 %s87_s20, 6 }
  0x10   : > { %s5720_s18 = scalar_select %p2642_p11, 1, 0 }
  0x11   : > { %s5721_s19 = scalar_select %p2646_p12, 1, 0 }
  0x12   : > { %s2655_s25 = scalar_lea.hbm %s5683_s0, %s2355_s21  ;;  %s91_s26 = scalar_lea.vmem [#allocation2], %s2341_s22 }
  0x13   : > { %s99_s27 = sshll.u32 %s91_s26, 4  ;;  %p2659_p13 = pnand %p2370_p10, %p2631_p5  ;;  %s2663_s27 = int_to_ptr.vmem [resolvable:$true] %s99_s27 }
  0x14   : > { %s2665_s29 = scalar_lea.sflag [#allocation3], %s87_s20  ;;  %s2463_s30 = scalar_lea.hbm %s2655_s25, 1024 }
  0x15   : > { %p2464_p0 = scmp.ne.s32.totalorder %s2655_s25, %s2463_s30  ;;  %p2465_p1 = pneg %p2659_p13 }
  0x16   : > { %s2468_s4 = scalar_lea.hbm %s5683_s0, 2048  ;;  %p2469_p4 = scmp.lt.u32.totalorder %s2655_s25, %s5683_s0 }
  0x17   : > { %p2466_p2 = pnand %p2465_p1, %p2464_p0  ;;  %p2470_p5 = scmp.lt.u32.totalorder %s2468_s4, %s2463_s30 }
  0x18   : > { %p2472_p8 = scmp.lt.u32.totalorder %s2463_s30, %s2655_s25 }
  0x19   : > { %p2467_p3 = pneg %p2466_p2  ;;  %p2471_p7 = por %p2470_p5, %p2469_p4 }
  0x1b   : > { %p2473_p10 = por %p2472_p8, %p2471_p7 }
  0x1d   : > { %p2474_p9 = pnand %p2473_p10, %p2467_p3 }
  0x1f   : > { %2477 = shalt.err (!%p2474_p9)
}
  0x20   : > { %s2478_s13 = scalar_lea.vmem %s2663_s27, 1024  ;;  %s2561_s14 = smov [#allocation2]  }
  0x21   : > { %p2479_p0 = scmp.ne.s32.totalorder %s2663_s27, %s2478_s13  ;;  %s2483_s16 = sshll.u32 %s2561_s14, 4  ;;  %s2484_s16 = int_to_ptr.vmem [resolvable:$false] %s2483_s16 }
  0x22   : > { %s2485_s20 = scalar_lea.vmem %s2484_s16, 2048  ;;  %p2486_p11 = scmp.lt.s32.totalorder %s2663_s27, %s2484_s16 }
  0x23   : > { %p2481_p2 = pnand %p2479_p0, %p2465_p1  ;;  %p2487_p4 = scmp.lt.s32.totalorder %s2485_s20, %s2478_s13 }
  0x25   : > { %p2482_p12 = pneg %p2481_p2  ;;  %p2488_p5 = por %p2487_p4, %p2486_p11 }
  0x27   : > { %p2489_p7 = pnand %p2488_p5, %p2482_p12 }
  0x29   : > { %2492 = shalt.err (!%p2489_p7)
}
  0x2a   : > { %s2562_s21 = smov 128   ;;  %s2563_s22 = smov 8  }
  0x2b   : > { %2365 = dma.hbm_to_vmem [thread:$0]  (!%p2659_p13), %s2655_s25, 1024, %s2663_s27, %s2665_s29, %s2562_s21, %s2562_s21, %s2563_s22  }
  0x2c   : > { %p2345_p9 = scmp.ge.s32.totalorder %s2559_s9, 1  ;;  %p107_p1 = scmp.lt.s32.totalorder %s2559_s9, 3 }
  0x2e   : > { %p108_p3 = pnand %p2345_p9, %p107_p1 }
  0x30   : > { %111 = sbr.rel (%p108_p3) target bundleno = 1220 (0x4c4), region = 24 }
  0x37   : > { %s2696_s23 = sand.u32 1, %s2551_s7  }
  0x38   : > { %s2346_s24 = sshll.u32 %s2696_s23, 6  ;;  %s114_s26 = scalar_lea.sflag [#allocation3], %s2696_s23 }
  0x39   : > { %s2702_s30 = scalar_lea.vmem [#allocation2], %s2346_s24 }
  0x3a   : > { %2538 = dma.done.wait (%p2635_p6), %s114_s26, 1024  }
  0x3b   : > { %2540 = vsyncadd (%p2635_p6), %s114_s26, 4294966272  ;;  %v2709_v0 = vld [vmem:[%s2702_s30] sm:$0xff]  ;;  %v2712_v1 = vld [vmem:[%s2702_s30 + $0x10] sm:$0xff]  ;;  %s2564_s25 = smov 16   ;;  %vm149_vm0 = vcmask 1047680   ;;  %s2565_s17 = smov 127  }
  0x3c   : > { %150 = vrot.lane.b32.xlu0 %v2709_v0, %s2564_s25  ;;  %156 = vrot.lane.b32.xlu1 %v2712_v1, %s2564_s25  ;;  %v2719_v2 = vld [vmem:[%s2702_s30 + $0x8] sm:$0xff]  ;;  %v2722_v3 = vld [vmem:[%s2702_s30 + $0x18] sm:$0xff]  ;;  %v2754_v9 = vmul.f32 %v2709_v0, %v2709_v0  ;;  %v2762_v10 = vmul.f32 %v2712_v1, %v2712_v1  ;;  %s2566_s27 = smov 113   ;;  %s2567_s28 = smov 126  }
  0x3d   : > { %v2729_v4 = vld [vmem:[%s2702_s30 + $0x20] sm:$0xff]  ;;  %v2732_v5 = vld [vmem:[%s2702_s30 + $0x28] sm:$0xff]  ;;  %v2739_v6 = vld [vmem:[%s2702_s30 + $0x30] sm:$0xff]  ;;  %v2750_v8 = vmul.f32 %v2719_v2, %v2719_v2  ;;  %s2568_s29 = smov 114   ;;  %s2569_s2 = smov 125  }
  0x3e   : > { %v2742_v7 = vld [vmem:[%s2702_s30 + $0x38] sm:$0xff]  ;;  %s2570_s3 = smov 115   ;;  %s2571_s4 = smov 124  }
  0x3f   : > { %s2572_s5 = smov 116   ;;  %s2573_s11 = smov 123  }
  0x40   : > { %153 = vrot.lane.b32.xlu0 %v2719_v2, %s2564_s25  ;;  %159 = vrot.lane.b32.xlu1 %v2722_v3, %s2564_s25  ;;  %s2574_s13 = smov 117   ;;  %s2575_s14 = smov 122  }
  0x41   : > { %s2576_s16 = smov 118   ;;  %s2577_s20 = smov 121  }
  0x42   : > { %s2578_s21 = smov 119   ;;  %s5570_s22 = scalar_lea.vmem [#allocation5], %s2346_s24 }
  0x43   : > { %s2357_s24 = sshll.u32 %s2613_s10, 10  ;;  %s2265_s26 = sshll.u32 %s5570_s22, 4  ;;  %s5635_s26 = int_to_ptr.vmem [resolvable:$true] %s2265_s26 }
  0x44   : > { %162 = vrot.lane.b32.xlu0 %v2729_v4, %s2564_s25  ;;  %165 = vrot.lane.b32.xlu1 %v2732_v5, %s2564_s25  ;;  %s2251_s10 = scalar_lea.sflag [#allocation4], %s2696_s23  ;;  %p6072_p11 = scmp.ne.s32.totalorder %s5720_s18, 0 }
  0x48   : > { %168 = vrot.lane.b32.xlu0 %v2739_v6, %s2564_s25  ;;  %171 = vrot.lane.b32.xlu1 %v2742_v7, %s2564_s25 }
  0x4c   : > { %1164 = vrot.lane.b32.xlu0 %v2750_v8, %s2564_s25  ;;  %1161 = vrot.lane.b32.xlu1 %v2754_v9, %s2564_s25 }
  0x50   : > { %1167 = vrot.lane.b32.xlu1 %v2762_v10, %s2564_s25 }
  0xae   : > { %v151_v11 = vpop.permute.xlu0 %150  ;;  %v157_v12 = vpop.permute.xlu1 %156 }
  0xaf   : > { %v152_v13 = vsel %vm149_vm0, %v151_v11, %v2709_v0  ;;  %v158_v14 = vsel %vm149_vm0, %v157_v12, %v2712_v1 }
  0xb0   : > { %174 = vrot.lane.b32.xlu0 %v152_v13, %s2564_s25 }
  0xb2   : > { %v154_v15 = vpop.permute.xlu0 %153  ;;  %v160_v16 = vpop.permute.xlu1 %159 }
  0xb3   : > { %v155_v17 = vsel %vm149_vm0, %v154_v15, %v2719_v2  ;;  %v161_v18 = vsel %vm149_vm0, %v160_v16, %v2722_v3 }
  0xb4   : > { %178 = vrot.lane.b32.xlu0 %v158_v14, %s2564_s25  ;;  %176 = vrot.lane.b32.xlu1 %v155_v17, %s2564_s25 }
  0xb6   : > { %v163_v19 = vpop.permute.xlu0 %162  ;;  %v166_v20 = vpop.permute.xlu1 %165 }
  0xb7   : > { %v164_v21 = vsel %vm149_vm0, %v163_v19, %v2729_v4  ;;  %v167_v22 = vsel %vm149_vm0, %v166_v20, %v2732_v5 }
  0xb8   : > { %182 = vrot.lane.b32.xlu0 %v164_v21, %s2564_s25  ;;  %180 = vrot.lane.b32.xlu1 %v161_v18, %s2564_s25 }
  0xba   : > { %v169_v23 = vpop.permute.xlu0 %168  ;;  %v172_v24 = vpop.permute.xlu1 %171 }
  0xbb   : > { %v170_v25 = vsel %vm149_vm0, %v169_v23, %v2739_v6  ;;  %v173_v26 = vsel %vm149_vm0, %v172_v24, %v2742_v7 }
  0xbc   : > { %186 = vrot.lane.b32.xlu0 %v170_v25, %s2564_s25  ;;  %184 = vrot.lane.b32.xlu1 %v167_v22, %s2564_s25 }
  0xbe   : > { %v2790_v27 = vpop.permute.xlu1 %1161  ;;  %v2792_v28 = vpop.permute.xlu0 %1164 }
  0xc0   : > { %188 = vrot.lane.b32.xlu1 %v173_v26, %s2564_s25 }
  0xc2   : > { %v2794_v29 = vpop.permute.xlu1 %1167 }
 0x122   : > { %v175_v30 = vpop.permute.xlu0 %174 }
 0x123   : > { %v2798_v31 = vsel %vm149_vm0, %v175_v30, %v2709_v0 }
 0x124   : > { %206 = vrot.lane.b32.xlu0 %v2798_v31, %s2565_s17 }
 0x126   : > { %v179_v32 = vpop.permute.xlu0 %178  ;;  %v177_v33 = vpop.permute.xlu1 %176 }
 0x127   : > { %v2804_v34 = vsel %vm149_vm0, %v179_v32, %v2712_v1  ;;  %v2808_v35 = vsel %vm149_vm0, %v177_v33, %v2719_v2 }
 0x128   : > { %210 = vrot.lane.b32.xlu0 %v2804_v34, %s2565_s17  ;;  %208 = vrot.lane.b32.xlu1 %v2808_v35, %s2565_s17 }
 0x12a   : > { %v183_v36 = vpop.permute.xlu0 %182  ;;  %v181_v37 = vpop.permute.xlu1 %180 }
 0x12b   : > { %v2816_v38 = vsel %vm149_vm0, %v183_v36, %v2729_v4  ;;  %v2820_v39 = vsel %vm149_vm0, %v181_v37, %v2722_v3 }
 0x12c   : > { %214 = vrot.lane.b32.xlu0 %v2816_v38, %s2565_s17  ;;  %212 = vrot.lane.b32.xlu1 %v2820_v39, %s2565_s17 }
 0x12e   : > { %v187_v40 = vpop.permute.xlu0 %186  ;;  %v185_v41 = vpop.permute.xlu1 %184 }
 0x12f   : > { %v2828_v42 = vsel %vm149_vm0, %v187_v40, %v2739_v6  ;;  %v2832_v43 = vsel %vm149_vm0, %v185_v41, %v2732_v5 }
 0x130   : > { %218 = vrot.lane.b32.xlu0 %v2828_v42, %s2565_s17  ;;  %216 = vrot.lane.b32.xlu1 %v2832_v43, %s2565_s17 }
 0x132   : > { %v189_v44 = vpop.permute.xlu1 %188 }
 0x133   : > { %v2840_v45 = vsel %vm149_vm0, %v189_v44, %v2742_v7 }
 0x134   : > { %247 = vrot.lane.b32.xlu0 %v2798_v31, %s2566_s27  ;;  %220 = vrot.lane.b32.xlu1 %v2840_v45, %s2565_s17 }
 0x138   : > { %251 = vrot.lane.b32.xlu0 %v2804_v34, %s2566_s27  ;;  %249 = vrot.lane.b32.xlu1 %v2808_v35, %s2566_s27 }
 0x13c   : > { %255 = vrot.lane.b32.xlu0 %v2816_v38, %s2566_s27  ;;  %253 = vrot.lane.b32.xlu1 %v2820_v39, %s2566_s27 }
 0x140   : > { %259 = vrot.lane.b32.xlu0 %v2828_v42, %s2566_s27  ;;  %257 = vrot.lane.b32.xlu1 %v2832_v43, %s2566_s27 }
 0x144   : > { %288 = vrot.lane.b32.xlu0 %v2798_v31, %s2567_s28  ;;  %261 = vrot.lane.b32.xlu1 %v2840_v45, %s2566_s27 }
 0x148   : > { %292 = vrot.lane.b32.xlu0 %v2804_v34, %s2567_s28  ;;  %290 = vrot.lane.b32.xlu1 %v2808_v35, %s2567_s28 }
 0x14c   : > { %296 = vrot.lane.b32.xlu0 %v2816_v38, %s2567_s28  ;;  %294 = vrot.lane.b32.xlu1 %v2820_v39, %s2567_s28 }
 0x150   : > { %300 = vrot.lane.b32.xlu0 %v2828_v42, %s2567_s28  ;;  %298 = vrot.lane.b32.xlu1 %v2832_v43, %s2567_s28 }
 0x154   : > { %329 = vrot.lane.b32.xlu0 %v2798_v31, %s2568_s29  ;;  %302 = vrot.lane.b32.xlu1 %v2840_v45, %s2567_s28 }
 0x158   : > { %333 = vrot.lane.b32.xlu0 %v2804_v34, %s2568_s29  ;;  %331 = vrot.lane.b32.xlu1 %v2808_v35, %s2568_s29 }
 0x15c   : > { %337 = vrot.lane.b32.xlu0 %v2816_v38, %s2568_s29  ;;  %335 = vrot.lane.b32.xlu1 %v2820_v39, %s2568_s29 }
 0x160   : > { %341 = vrot.lane.b32.xlu0 %v2828_v42, %s2568_s29  ;;  %339 = vrot.lane.b32.xlu1 %v2832_v43, %s2568_s29 }
 0x164   : > { %370 = vrot.lane.b32.xlu0 %v2798_v31, %s2569_s2  ;;  %343 = vrot.lane.b32.xlu1 %v2840_v45, %s2568_s29 }
 0x168   : > { %374 = vrot.lane.b32.xlu0 %v2804_v34, %s2569_s2  ;;  %372 = vrot.lane.b32.xlu1 %v2808_v35, %s2569_s2 }
 0x16c   : > { %378 = vrot.lane.b32.xlu0 %v2816_v38, %s2569_s2  ;;  %376 = vrot.lane.b32.xlu1 %v2820_v39, %s2569_s2 }
 0x170   : > { %382 = vrot.lane.b32.xlu0 %v2828_v42, %s2569_s2  ;;  %380 = vrot.lane.b32.xlu1 %v2832_v43, %s2569_s2 }
 0x174   : > { %411 = vrot.lane.b32.xlu0 %v2798_v31, %s2570_s3  ;;  %384 = vrot.lane.b32.xlu1 %v2840_v45, %s2569_s2 }
 0x178   : > { %415 = vrot.lane.b32.xlu0 %v2804_v34, %s2570_s3  ;;  %413 = vrot.lane.b32.xlu1 %v2808_v35, %s2570_s3 }
 0x17c   : > { %419 = vrot.lane.b32.xlu0 %v2816_v38, %s2570_s3  ;;  %417 = vrot.lane.b32.xlu1 %v2820_v39, %s2570_s3 }
 0x180   : > { %423 = vrot.lane.b32.xlu0 %v2828_v42, %s2570_s3  ;;  %421 = vrot.lane.b32.xlu1 %v2832_v43, %s2570_s3 }
 0x184   : > { %452 = vrot.lane.b32.xlu0 %v2798_v31, %s2571_s4  ;;  %425 = vrot.lane.b32.xlu1 %v2840_v45, %s2570_s3 }
 0x188   : > { %456 = vrot.lane.b32.xlu0 %v2804_v34, %s2571_s4  ;;  %454 = vrot.lane.b32.xlu1 %v2808_v35, %s2571_s4 }
 0x18c   : > { %460 = vrot.lane.b32.xlu0 %v2816_v38, %s2571_s4  ;;  %458 = vrot.lane.b32.xlu1 %v2820_v39, %s2571_s4 }
 0x190   : > { %464 = vrot.lane.b32.xlu0 %v2828_v42, %s2571_s4  ;;  %462 = vrot.lane.b32.xlu1 %v2832_v43, %s2571_s4 }
 0x194   : > { %493 = vrot.lane.b32.xlu0 %v2798_v31, %s2572_s5  ;;  %466 = vrot.lane.b32.xlu1 %v2840_v45, %s2571_s4 }
 0x196   : > { %v2942_v46 = vpop.permute.xlu0 %206 }
 0x198   : > { %497 = vrot.lane.b32.xlu0 %v2804_v34, %s2572_s5  ;;  %495 = vrot.lane.b32.xlu1 %v2808_v35, %s2572_s5 }
 0x19a   : > { %v2948_v47 = vpop.permute.xlu0 %210  ;;  %v2950_v48 = vpop.permute.xlu1 %208 }
 0x19c   : > { %501 = vrot.lane.b32.xlu0 %v2816_v38, %s2572_s5  ;;  %499 = vrot.lane.b32.xlu1 %v2820_v39, %s2572_s5 }
 0x19e   : > { %v2956_v49 = vpop.permute.xlu0 %214  ;;  %v2958_v50 = vpop.permute.xlu1 %212 }
 0x1a0   : > { %505 = vrot.lane.b32.xlu0 %v2828_v42, %s2572_s5  ;;  %503 = vrot.lane.b32.xlu1 %v2832_v43, %s2572_s5 }
 0x1a2   : > { %v2964_v51 = vpop.permute.xlu0 %218  ;;  %v2966_v52 = vpop.permute.xlu1 %216 }
 0x1a4   : > { %534 = vrot.lane.b32.xlu0 %v2798_v31, %s2573_s11  ;;  %507 = vrot.lane.b32.xlu1 %v2840_v45, %s2572_s5 }
 0x1a6   : > { %v2972_v53 = vpop.permute.xlu0 %247  ;;  %v2974_v54 = vpop.permute.xlu1 %220 }
 0x1a8   : > { %538 = vrot.lane.b32.xlu0 %v2804_v34, %s2573_s11  ;;  %536 = vrot.lane.b32.xlu1 %v2808_v35, %s2573_s11 }
 0x1aa   : > { %v2980_v55 = vpop.permute.xlu0 %251  ;;  %v2982_v56 = vpop.permute.xlu1 %249 }
 0x1ac   : > { %542 = vrot.lane.b32.xlu0 %v2816_v38, %s2573_s11  ;;  %540 = vrot.lane.b32.xlu1 %v2820_v39, %s2573_s11 }
 0x1ae   : > { %v2988_v57 = vpop.permute.xlu0 %255  ;;  %v2990_v58 = vpop.permute.xlu1 %253 }
 0x1b0   : > { %546 = vrot.lane.b32.xlu0 %v2828_v42, %s2573_s11  ;;  %544 = vrot.lane.b32.xlu1 %v2832_v43, %s2573_s11 }
 0x1b2   : > { %v2996_v59 = vpop.permute.xlu0 %259  ;;  %v2998_v60 = vpop.permute.xlu1 %257 }
 0x1b4   : > { %575 = vrot.lane.b32.xlu0 %v2798_v31, %s2574_s13  ;;  %548 = vrot.lane.b32.xlu1 %v2840_v45, %s2573_s11 }
 0x1b6   : > { %v3004_v61 = vpop.permute.xlu0 %288  ;;  %v3006_v62 = vpop.permute.xlu1 %261 }
 0x1b8   : > { %579 = vrot.lane.b32.xlu0 %v2804_v34, %s2574_s13  ;;  %577 = vrot.lane.b32.xlu1 %v2808_v35, %s2574_s13 }
 0x1ba   : > { %v3012_v63 = vpop.permute.xlu0 %292  ;;  %v3014_v11 = vpop.permute.xlu1 %290 }
 0x1bc   : > { %583 = vrot.lane.b32.xlu0 %v2816_v38, %s2574_s13  ;;  %581 = vrot.lane.b32.xlu1 %v2820_v39, %s2574_s13 }
 0x1be   : > { %v3020_v12 = vpop.permute.xlu0 %296  ;;  %v3022_v13 = vpop.permute.xlu1 %294 }
 0x1c0   : > { %587 = vrot.lane.b32.xlu0 %v2828_v42, %s2574_s13  ;;  %585 = vrot.lane.b32.xlu1 %v2832_v43, %s2574_s13 }
 0x1c2   : > { %v3028_v14 = vpop.permute.xlu0 %300  ;;  %v3030_v15 = vpop.permute.xlu1 %298 }
 0x1c4   : > { %616 = vrot.lane.b32.xlu0 %v2798_v31, %s2575_s14  ;;  %589 = vrot.lane.b32.xlu1 %v2840_v45, %s2574_s13 }
 0x1c6   : > { %v3036_v16 = vpop.permute.xlu0 %329  ;;  %v3038_v17 = vpop.permute.xlu1 %302 }
 0x1c7   : > { %5723 = vst [vmem:[#allocation8_spill] sm:$0xff] %v3036_v16  ;;  %5724 = vst [vmem:[#allocation9_spill] sm:$0xff] %v3038_v17 }
 0x1c8   : > { %620 = vrot.lane.b32.xlu0 %v2804_v34, %s2575_s14  ;;  %618 = vrot.lane.b32.xlu1 %v2808_v35, %s2575_s14 }
 0x1ca   : > { %v3044_v18 = vpop.permute.xlu0 %333  ;;  %v3046_v19 = vpop.permute.xlu1 %331 }
 0x1cb   : > { %5725 = vst [vmem:[#allocation10_spill] sm:$0xff] %v3044_v18  ;;  %5726 = vst [vmem:[#allocation11_spill] sm:$0xff] %v3046_v19 }
 0x1cc   : > { %624 = vrot.lane.b32.xlu0 %v2816_v38, %s2575_s14  ;;  %622 = vrot.lane.b32.xlu1 %v2820_v39, %s2575_s14 }
 0x1ce   : > { %v3052_v20 = vpop.permute.xlu0 %337  ;;  %v3054_v21 = vpop.permute.xlu1 %335 }
 0x1cf   : > { %5727 = vst [vmem:[#allocation12_spill] sm:$0xff] %v3052_v20  ;;  %5728 = vst [vmem:[#allocation13_spill] sm:$0xff] %v3054_v21 }
 0x1d0   : > { %628 = vrot.lane.b32.xlu0 %v2828_v42, %s2575_s14  ;;  %626 = vrot.lane.b32.xlu1 %v2832_v43, %s2575_s14 }
 0x1d2   : > { %v3060_v22 = vpop.permute.xlu0 %341  ;;  %v3062_v23 = vpop.permute.xlu1 %339 }
 0x1d3   : > { %5729 = vst [vmem:[#allocation14_spill] sm:$0xff] %v3060_v22  ;;  %5730 = vst [vmem:[#allocation15_spill] sm:$0xff] %v3062_v23  ;;  %v5687_v23 = vlaneseq }
 0x1d4   : > { %657 = vrot.lane.b32.xlu0 %v2798_v31, %s2576_s16  ;;  %630 = vrot.lane.b32.xlu1 %v2840_v45, %s2575_s14 }
 0x1d6   : > { %v3068_v24 = vpop.permute.xlu0 %370  ;;  %v3070_v25 = vpop.permute.xlu1 %343 }
 0x1d7   : > { %5731 = vst [vmem:[#allocation16_spill] sm:$0xff] %v3068_v24  ;;  %5732 = vst [vmem:[#allocation17_spill] sm:$0xff] %v3070_v25 }
 0x1d8   : > { %661 = vrot.lane.b32.xlu0 %v2804_v34, %s2576_s16  ;;  %659 = vrot.lane.b32.xlu1 %v2808_v35, %s2576_s16 }
 0x1da   : > { %v3076_v26 = vpop.permute.xlu0 %374  ;;  %v3078_v30 = vpop.permute.xlu1 %372 }
 0x1db   : > { %5733 = vst [vmem:[#allocation18_spill] sm:$0xff] %v3076_v26  ;;  %5734 = vst [vmem:[#allocation19_spill] sm:$0xff] %v3078_v30 }
 0x1dc   : > { %665 = vrot.lane.b32.xlu0 %v2816_v38, %s2576_s16  ;;  %663 = vrot.lane.b32.xlu1 %v2820_v39, %s2576_s16 }
 0x1de   : > { %v3084_v32 = vpop.permute.xlu0 %378  ;;  %v3086_v33 = vpop.permute.xlu1 %376 }
 0x1df   : > { %5735 = vst [vmem:[#allocation20_spill] sm:$0xff] %v3084_v32  ;;  %5736 = vst [vmem:[#allocation21_spill] sm:$0xff] %v3086_v33 }
 0x1e0   : > { %669 = vrot.lane.b32.xlu0 %v2828_v42, %s2576_s16  ;;  %667 = vrot.lane.b32.xlu1 %v2832_v43, %s2576_s16 }
 0x1e2   : > { %v3092_v36 = vpop.permute.xlu0 %382  ;;  %v3094_v37 = vpop.permute.xlu1 %380 }
 0x1e3   : > { %5737 = vst [vmem:[#allocation22_spill] sm:$0xff] %v3092_v36  ;;  %5738 = vst [vmem:[#allocation23_spill] sm:$0xff] %v3094_v37 }
 0x1e4   : > { %698 = vrot.lane.b32.xlu0 %v2798_v31, %s2577_s20  ;;  %671 = vrot.lane.b32.xlu1 %v2840_v45, %s2576_s16 }
 0x1e6   : > { %v3100_v40 = vpop.permute.xlu0 %411  ;;  %v3102_v41 = vpop.permute.xlu1 %384 }
 0x1e7   : > { %5739 = vst [vmem:[#allocation24_spill] sm:$0xff] %v3100_v40  ;;  %5740 = vst [vmem:[#allocation25_spill] sm:$0xff] %v3102_v41 }
 0x1e8   : > { %702 = vrot.lane.b32.xlu0 %v2804_v34, %s2577_s20  ;;  %700 = vrot.lane.b32.xlu1 %v2808_v35, %s2577_s20 }
 0x1ea   : > { %v3108_v44 = vpop.permute.xlu0 %415  ;;  %v3110_v37 = vpop.permute.xlu1 %413 }
 0x1eb   : > { %5741 = vst [vmem:[#allocation26_spill] sm:$0xff] %v3108_v44  ;;  %5742 = vst [vmem:[#allocation27_spill] sm:$0xff] %v3110_v37  ;;  %v3126_v44 = vmul.f32 %v2722_v3, %v2722_v3  ;;  %v3130_v37 = vmul.f32 %v2729_v4, %v2729_v4 }
 0x1ec   : > { %706 = vrot.lane.b32.xlu0 %v2816_v38, %s2577_s20  ;;  %704 = vrot.lane.b32.xlu1 %v2820_v39, %s2577_s20 }
 0x1ed   : > { %5745 = vst [vmem:[#allocation30_spill] sm:$0xff] %v3126_v44 }
 0x1ee   : > { %v3116_v36 = vpop.permute.xlu0 %419  ;;  %v3118_v40 = vpop.permute.xlu1 %417 }
 0x1ef   : > { %5743 = vst [vmem:[#allocation28_spill] sm:$0xff] %v3116_v36  ;;  %5744 = vst [vmem:[#allocation29_spill] sm:$0xff] %v3118_v40  ;;  %v3142_v40 = vmul.f32 %v2732_v5, %v2732_v5  ;;  %v3146_v36 = vmul.f32 %v2739_v6, %v2739_v6 }
 0x1f0   : > { %710 = vrot.lane.b32.xlu0 %v2828_v42, %s2577_s20  ;;  %708 = vrot.lane.b32.xlu1 %v2832_v43, %s2577_s20 }
 0x1f1   : > { %5748 = vst [vmem:[#allocation33_spill] sm:$0xff] %v3142_v40 }
 0x1f2   : > { %v3132_v41 = vpop.permute.xlu0 %423  ;;  %v3134_v33 = vpop.permute.xlu1 %421 }
 0x1f3   : > { %5746 = vst [vmem:[#allocation31_spill] sm:$0xff] %v3132_v41  ;;  %5747 = vst [vmem:[#allocation32_spill] sm:$0xff] %v3134_v33  ;;  %v3158_v33 = vmul.f32 %v2742_v7, %v2742_v7 }
 0x1f4   : > { %1170 = vrot.lane.b32.xlu0 %v3126_v44, %s2564_s25  ;;  %1173 = vrot.lane.b32.xlu1 %v3130_v37, %s2564_s25 }
 0x1f6   : > { %v3148_v32 = vpop.permute.xlu0 %452  ;;  %v3150_v30 = vpop.permute.xlu1 %425 }
 0x1f7   : > { %5749 = vst [vmem:[#allocation34_spill] sm:$0xff] %v3148_v32  ;;  %5750 = vst [vmem:[#allocation35_spill] sm:$0xff] %v3150_v30 }
 0x1f8   : > { %1176 = vrot.lane.b32.xlu0 %v3142_v40, %s2564_s25  ;;  %1179 = vrot.lane.b32.xlu1 %v3146_v36, %s2564_s25 }
 0x1fa   : > { %v3160_v41 = vpop.permute.xlu0 %456  ;;  %v3162_v26 = vpop.permute.xlu1 %454 }
 0x1fb   : > { %5751 = vst [vmem:[#allocation36_spill] sm:$0xff] %v3160_v41  ;;  %5752 = vst [vmem:[#allocation37_spill] sm:$0xff] %v3162_v26 }
 0x1fc   : > { %1182 = vrot.lane.b32.xlu0 %v3158_v33, %s2564_s25  ;;  %712 = vrot.lane.b32.xlu1 %v2840_v45, %s2577_s20 }
 0x1fe   : > { %v3168_v30 = vpop.permute.xlu0 %460  ;;  %v3170_v32 = vpop.permute.xlu1 %458 }
 0x1ff   : > { %5753 = vst [vmem:[#allocation38_spill] sm:$0xff] %v3168_v30  ;;  %5754 = vst [vmem:[#allocation39_spill] sm:$0xff] %v3170_v32 }
 0x200   : > { %739 = vrot.lane.b32.xlu0 %v2798_v31, %s2578_s21  ;;  %741 = vrot.lane.b32.xlu1 %v2808_v35, %s2578_s21 }
 0x202   : > { %v3176_v41 = vpop.permute.xlu0 %464  ;;  %v3178_v26 = vpop.permute.xlu1 %462 }
 0x203   : > { %5755 = vst [vmem:[#allocation40_spill] sm:$0xff] %v3176_v41  ;;  %5756 = vst [vmem:[#allocation41_spill] sm:$0xff] %v3178_v26 }
 0x204   : > { %743 = vrot.lane.b32.xlu0 %v2804_v34, %s2578_s21  ;;  %745 = vrot.lane.b32.xlu1 %v2820_v39, %s2578_s21 }
 0x206   : > { %v3184_v30 = vpop.permute.xlu0 %493  ;;  %v3186_v32 = vpop.permute.xlu1 %466 }
 0x207   : > { %5757 = vst [vmem:[#allocation42_spill] sm:$0xff] %v3184_v30  ;;  %5758 = vst [vmem:[#allocation43_spill] sm:$0xff] %v3186_v32 }
 0x208   : > { %747 = vrot.lane.b32.xlu0 %v2816_v38, %s2578_s21  ;;  %749 = vrot.lane.b32.xlu1 %v2832_v43, %s2578_s21  ;;  %v1166_v38 = vsel %vm149_vm0, %v2792_v28, %v2750_v8  ;;  %v1163_v43 = vsel %vm149_vm0, %v2790_v27, %v2754_v9 }
 0x20a   : > { %v3192_v31 = vpop.permute.xlu0 %497  ;;  %v3194_v35 = vpop.permute.xlu1 %495 }
 0x20b   : > { %5759 = vst [vmem:[#allocation44_spill] sm:$0xff] %v3192_v31  ;;  %5760 = vst [vmem:[#allocation45_spill] sm:$0xff] %v3194_v35 }
 0x20c   : > { %751 = vrot.lane.b32.xlu0 %v2828_v42, %s2578_s21  ;;  %753 = vrot.lane.b32.xlu1 %v2840_v45, %s2578_s21  ;;  %v1169_v45 = vsel %vm149_vm0, %v2794_v29, %v2762_v10 }
 0x20e   : > { %v3200_v34 = vpop.permute.xlu0 %501  ;;  %v3202_v39 = vpop.permute.xlu1 %499 }
 0x20f   : > { %5761 = vst [vmem:[#allocation46_spill] sm:$0xff] %v3200_v34  ;;  %5762 = vst [vmem:[#allocation47_spill] sm:$0xff] %v3202_v39 }
 0x210   : > { %1185 = vrot.lane.b32.xlu0 %v1163_v43, %s2564_s25  ;;  %1187 = vrot.lane.b32.xlu1 %v1166_v38, %s2564_s25 }
 0x212   : > { %v3212_v42 = vpop.permute.xlu0 %505  ;;  %v3214_v35 = vpop.permute.xlu1 %503 }
 0x213   : > { %5763 = vst [vmem:[#allocation48_spill] sm:$0xff] %v3212_v42  ;;  %5764 = vst [vmem:[#allocation49_spill] sm:$0xff] %v3214_v35 }
 0x214   : > { %1189 = vrot.lane.b32.xlu0 %v1169_v45, %s2564_s25 }
 0x216   : > { %v3220_v39 = vpop.permute.xlu0 %534  ;;  %v3222_v28 = vpop.permute.xlu1 %507 }
 0x217   : > { %5765 = vst [vmem:[#allocation50_spill] sm:$0xff] %v3220_v39  ;;  %5766 = vst [vmem:[#allocation51_spill] sm:$0xff] %v3222_v28 }
 0x21a   : > { %v3224_v34 = vpop.permute.xlu0 %538  ;;  %v3226_v27 = vpop.permute.xlu1 %536 }
 0x21b   : > { %5767 = vst [vmem:[#allocation52_spill] sm:$0xff] %v3224_v34  ;;  %5768 = vst [vmem:[#allocation53_spill] sm:$0xff] %v3226_v27 }
 0x21e   : > { %v3228_v43 = vpop.permute.xlu0 %542  ;;  %v3230_v38 = vpop.permute.xlu1 %540 }
 0x21f   : > { %5769 = vst [vmem:[#allocation54_spill] sm:$0xff] %v3228_v43  ;;  %5770 = vst [vmem:[#allocation55_spill] sm:$0xff] %v3230_v38 }
 0x222   : > { %v3232_v42 = vpop.permute.xlu0 %546  ;;  %v3234_v35 = vpop.permute.xlu1 %544 }
 0x223   : > { %5771 = vst [vmem:[#allocation56_spill] sm:$0xff] %v3232_v42  ;;  %5772 = vst [vmem:[#allocation57_spill] sm:$0xff] %v3234_v35 }
 0x226   : > { %v3236_v31 = vpop.permute.xlu0 %575  ;;  %v3238_v29 = vpop.permute.xlu1 %548 }
 0x227   : > { %5773 = vst [vmem:[#allocation58_spill] sm:$0xff] %v3236_v31  ;;  %5774 = vst [vmem:[#allocation59_spill] sm:$0xff] %v3238_v29 }
 0x22a   : > { %v3240_v45 = vpop.permute.xlu0 %579  ;;  %v3242_v39 = vpop.permute.xlu1 %577 }
 0x22b   : > { %5775 = vst [vmem:[#allocation60_spill] sm:$0xff] %v3240_v45  ;;  %5776 = vst [vmem:[#allocation61_spill] sm:$0xff] %v3242_v39 }
 0x22e   : > { %v3244_v28 = vpop.permute.xlu0 %583  ;;  %v3246_v34 = vpop.permute.xlu1 %581 }
 0x22f   : > { %5777 = vst [vmem:[#allocation62_spill] sm:$0xff] %v3244_v28  ;;  %5778 = vst [vmem:[#allocation63_spill] sm:$0xff] %v3246_v34 }
 0x232   : > { %v3248_v27 = vpop.permute.xlu0 %587  ;;  %v3250_v43 = vpop.permute.xlu1 %585 }
 0x233   : > { %5779 = vst [vmem:[#allocation64_spill] sm:$0xff] %v3248_v27  ;;  %5780 = vst [vmem:[#allocation65_spill] sm:$0xff] %v3250_v43 }
 0x236   : > { %v3252_v38 = vpop.permute.xlu0 %616  ;;  %v3254_v42 = vpop.permute.xlu1 %589 }
 0x237   : > { %5781 = vst [vmem:[#allocation66_spill] sm:$0xff] %v3252_v38  ;;  %5782 = vst [vmem:[#allocation67_spill] sm:$0xff] %v3254_v42 }
 0x23a   : > { %v3256_v35 = vpop.permute.xlu0 %620  ;;  %v3258_v31 = vpop.permute.xlu1 %618 }
 0x23b   : > { %5783 = vst [vmem:[#allocation68_spill] sm:$0xff] %v3256_v35  ;;  %5784 = vst [vmem:[#allocation69_spill] sm:$0xff] %v3258_v31 }
 0x23e   : > { %v3260_v29 = vpop.permute.xlu0 %624  ;;  %v3262_v45 = vpop.permute.xlu1 %622 }
 0x23f   : > { %5785 = vst [vmem:[#allocation70_spill] sm:$0xff] %v3260_v29  ;;  %5786 = vst [vmem:[#allocation71_spill] sm:$0xff] %v3262_v45 }
 0x242   : > { %v3264_v39 = vpop.permute.xlu0 %628  ;;  %v3266_v28 = vpop.permute.xlu1 %626 }
 0x243   : > { %5787 = vst [vmem:[#allocation72_spill] sm:$0xff] %v3264_v39  ;;  %5788 = vst [vmem:[#allocation73_spill] sm:$0xff] %v3266_v28 }
 0x246   : > { %v3268_v34 = vpop.permute.xlu0 %657  ;;  %v3270_v27 = vpop.permute.xlu1 %630 }
 0x247   : > { %5789 = vst [vmem:[#allocation74_spill] sm:$0xff] %v3268_v34  ;;  %5790 = vst [vmem:[#allocation75_spill] sm:$0xff] %v3270_v27 }
 0x24a   : > { %v3272_v43 = vpop.permute.xlu0 %661  ;;  %v3274_v38 = vpop.permute.xlu1 %659 }
 0x24b   : > { %5791 = vst [vmem:[#allocation76_spill] sm:$0xff] %v3272_v43  ;;  %5792 = vst [vmem:[#allocation77_spill] sm:$0xff] %v3274_v38 }
 0x24e   : > { %v3276_v42 = vpop.permute.xlu0 %665  ;;  %v3278_v35 = vpop.permute.xlu1 %663 }
 0x24f   : > { %5793 = vst [vmem:[#allocation78_spill] sm:$0xff] %v3276_v42  ;;  %5794 = vst [vmem:[#allocation79_spill] sm:$0xff] %v3278_v35 }
 0x252   : > { %v3280_v31 = vpop.permute.xlu0 %669  ;;  %v3282_v29 = vpop.permute.xlu1 %667 }
 0x253   : > { %5795 = vst [vmem:[#allocation80_spill] sm:$0xff] %v3280_v31  ;;  %5796 = vst [vmem:[#allocation81_spill] sm:$0xff] %v3282_v29 }
 0x256   : > { %v3284_v45 = vpop.permute.xlu0 %698  ;;  %v3286_v39 = vpop.permute.xlu1 %671 }
 0x257   : > { %5797 = vst [vmem:[#allocation82_spill] sm:$0xff] %v3284_v45  ;;  %5798 = vst [vmem:[#allocation83_spill] sm:$0xff] %v3286_v39 }
 0x25a   : > { %v3288_v28 = vpop.permute.xlu0 %702  ;;  %v3290_v34 = vpop.permute.xlu1 %700 }
 0x25b   : > { %5799 = vst [vmem:[#allocation84_spill] sm:$0xff] %v3288_v28  ;;  %5800 = vst [vmem:[#allocation85_spill] sm:$0xff] %v3290_v34 }
 0x25e   : > { %v3292_v27 = vpop.permute.xlu0 %706  ;;  %v3294_v43 = vpop.permute.xlu1 %704 }
 0x25f   : > { %5801 = vst [vmem:[#allocation86_spill] sm:$0xff] %v3292_v27  ;;  %5802 = vst [vmem:[#allocation87_spill] sm:$0xff] %v3294_v43 }
 0x262   : > { %v3296_v38 = vpop.permute.xlu0 %710  ;;  %v3298_v42 = vpop.permute.xlu1 %708 }
 0x263   : > { %5803 = vst [vmem:[#allocation88_spill] sm:$0xff] %v3296_v38  ;;  %5804 = vst [vmem:[#allocation89_spill] sm:$0xff] %v3298_v42 }
 0x266   : > { %v1171_v35 = vpop.permute.xlu0 %1170  ;;  %v1174_v31 = vpop.permute.xlu1 %1173 }
 0x267   : > { %v1172_v29 = vsel %vm149_vm0, %v1171_v35, %v3126_v44  ;;  %v1175_v39 = vsel %vm149_vm0, %v1174_v31, %v3130_v37 }
 0x268   : > { %1191 = vrot.lane.b32.xlu1 %v1172_v29, %s2564_s25  ;;  %1193 = vrot.lane.b32.xlu0 %v1175_v39, %s2564_s25 }
 0x26a   : > { %v1177_v28 = vpop.permute.xlu0 %1176  ;;  %v1180_v27 = vpop.permute.xlu1 %1179 }
 0x26b   : > { %v1178_v43 = vsel %vm149_vm0, %v1177_v28, %v3142_v40  ;;  %v1181_v42 = vsel %vm149_vm0, %v1180_v27, %v3146_v36 }
 0x26c   : > { %1195 = vrot.lane.b32.xlu1 %v1178_v43, %s2564_s25  ;;  %1197 = vrot.lane.b32.xlu0 %v1181_v42, %s2564_s25 }
 0x26e   : > { %v1183_v35 = vpop.permute.xlu0 %1182  ;;  %v3321_v28 = vpop.permute.xlu1 %712 }
 0x26f   : > { %v1184_v31 = vsel %vm149_vm0, %v1183_v35, %v3158_v33  ;;  %5808 = vst [vmem:[#allocation93_spill] sm:$0xff] %v3321_v28 }
 0x270   : > { %1199 = vrot.lane.b32.xlu1 %v1184_v31, %s2564_s25 }
 0x272   : > { %v3315_v29 = vpop.permute.xlu0 %739  ;;  %v3325_v27 = vpop.permute.xlu1 %741 }
 0x273   : > { %5805 = vst [vmem:[#allocation90_spill] sm:$0xff] %v3315_v29  ;;  %5810 = vst [vmem:[#allocation95_spill] sm:$0xff] %v3325_v27 }
 0x276   : > { %v3317_v39 = vpop.permute.xlu0 %743  ;;  %v3327_v42 = vpop.permute.xlu1 %745 }
 0x277   : > { %5806 = vst [vmem:[#allocation91_spill] sm:$0xff] %v3317_v39  ;;  %5811 = vst [vmem:[#allocation96_spill] sm:$0xff] %v3327_v42 }
 0x27a   : > { %v3319_v38 = vpop.permute.xlu0 %747  ;;  %v3335_v31 = vpop.permute.xlu1 %749 }
 0x27b   : > { %5807 = vst [vmem:[#allocation92_spill] sm:$0xff] %v3319_v38  ;;  %5812 = vst [vmem:[#allocation97_spill] sm:$0xff] %v3335_v31 }
 0x27e   : > { %v3323_v34 = vpop.permute.xlu0 %751  ;;  %v3337_v39 = vpop.permute.xlu1 %753 }
 0x27f   : > { %5809 = vst [vmem:[#allocation94_spill] sm:$0xff] %v3323_v34  ;;  %5813 = vst [vmem:[#allocation98_spill] sm:$0xff] %v3337_v39 }
 0x282   : > { %v1186_v43 = vpop.permute.xlu0 %1185  ;;  %v1188_v38 = vpop.permute.xlu1 %1187 }
 0x283   : > { %v3331_v35 = vsel %vm149_vm0, %v1186_v43, %v2754_v9  ;;  %v3341_v34 = vsel %vm149_vm0, %v1188_v38, %v2750_v8 }
 0x284   : > { %1217 = vrot.lane.b32.xlu0 %v3331_v35, %s2565_s17  ;;  %1219 = vrot.lane.b32.xlu1 %v3341_v34, %s2565_s17 }
 0x286   : > { %v1190_v28 = vpop.permute.xlu0 %1189 }
 0x287   : > { %v3345_v42 = vsel %vm149_vm0, %v1190_v28, %v2762_v10 }
 0x288   : > { %1221 = vrot.lane.b32.xlu0 %v3345_v42, %s2565_s17 }
 0x2da   : > { %v1194_v43 = vpop.permute.xlu0 %1193  ;;  %v1192_v31 = vpop.permute.xlu1 %1191 }
 0x2db   : > { %v3353_v39 = vsel %vm149_vm0, %v1194_v43, %v3130_v37  ;;  %v3357_v38 = vsel %vm149_vm0, %v1192_v31, %v3126_v44 }
 0x2dc   : > { %1225 = vrot.lane.b32.xlu0 %v3353_v39, %s2565_s17  ;;  %1223 = vrot.lane.b32.xlu1 %v3357_v38, %s2565_s17 }
 0x2de   : > { %v1198_v28 = vpop.permute.xlu0 %1197  ;;  %v1196_v27 = vpop.permute.xlu1 %1195 }
 0x2df   : > { %v3365_v29 = vsel %vm149_vm0, %v1198_v28, %v3146_v36  ;;  %v3369_v43 = vsel %vm149_vm0, %v1196_v27, %v3142_v40  ;;  %v3522_v40 = vand.u32 127, %v5687_v23 }
 0x2e0   : > { %1229 = vrot.lane.b32.xlu0 %v3365_v29, %s2565_s17  ;;  %1227 = vrot.lane.b32.xlu1 %v3369_v43, %s2565_s17 }
 0x2e1   : > { %vm148_vm1 = vcmp.lt.s32.totalorder %v3522_v40, 15  ;;  %vm246_vm2 = vcmp.ge.s32.totalorder %v3522_v40, 1  ;;  %vm287_vm3 = vcmp.lt.s32.totalorder %v3522_v40, 14  ;;  %vm328_vm4 = vcmp.ge.s32.totalorder %v3522_v40, 2 }
 0x2e2   : > { %v1200_v31 = vpop.permute.xlu1 %1199  ;;  %v230_v23 = vsel %vm148_vm1, %v2942_v46, 0.0  ;;  %v232_v44 = vsel %vm148_vm1, %v2948_v47, 0.0  ;;  %v234_v17 = vsel %vm148_vm1, %v2956_v49, 0.0  ;;  %v233_v47 = vsel %vm148_vm1, %v2958_v50, 0.0 }
 0x2e3   : > { %v3377_v45 = vsel %vm149_vm0, %v1200_v31, %v3158_v33  ;;  %v238_v46 = vadd.f32 %v230_v23, %v2709_v0  ;;  %v240_v49 = vadd.f32 %v232_v44, %v2712_v1  ;;  %v235_v16 = vsel %vm148_vm1, %v2966_v52, 0.0 }
 0x2e4   : > { %1257 = vrot.lane.b32.xlu0 %v3331_v35, %s2566_s27  ;;  %1231 = vrot.lane.b32.xlu1 %v3377_v45, %s2565_s17  ;;  %v271_v0 = vsel %vm246_vm2, %v2972_v53, 0.0  ;;  %v273_v1 = vsel %vm246_vm2, %v2980_v55, 0.0  ;;  %v241_v52 = vadd.f32 %v233_v47, %v2722_v3  ;;  %v243_v55 = vadd.f32 %v235_v16, %v2732_v5 }
 0x2e5   : > { %v277_v3 = vsel %vm246_vm2, %v2996_v59, 0.0  ;;  %v278_v59 = vsel %vm246_vm2, %v3006_v62, 0.0  ;;  %vm369_vm5 = vcmp.lt.s32.totalorder %v3522_v40, 13  ;;  %vm410_vm6 = vcmp.ge.s32.totalorder %v3522_v40, 3 }
 0x2e6   : > { %vm451_vm7 = vcmp.lt.s32.totalorder %v3522_v40, 12  ;;  %vm492_vm8 = vcmp.ge.s32.totalorder %v3522_v40, 4  ;;  %vm533_vm9 = vcmp.lt.s32.totalorder %v3522_v40, 11  ;;  %vm5691_vm10 = vcmp.ge.s32.totalorder %v3522_v40, 5 }
 0x2e7   : > { %vm5690_vm11 = vcmp.lt.s32.totalorder %v3522_v40, 10  ;;  %vm5689_vm12 = vcmp.ge.s32.totalorder %v3522_v40, 6  ;;  %vm5692_vm13 = vcmp.lt.s32.totalorder %v3522_v40, 9  ;;  %vm5706_vm14 = vcmp.ge.s32.totalorder %v3522_v40, 7 }
 0x2e8   : > { %1261 = vrot.lane.b32.xlu0 %v3345_v42, %s2566_s27  ;;  %1259 = vrot.lane.b32.xlu1 %v3341_v34, %s2566_s27 }
 0x2ec   : > { %1265 = vrot.lane.b32.xlu0 %v3353_v39, %s2566_s27  ;;  %1263 = vrot.lane.b32.xlu1 %v3357_v38, %s2566_s27 }
 0x2f0   : > { %1269 = vrot.lane.b32.xlu0 %v3365_v29, %s2566_s27  ;;  %1267 = vrot.lane.b32.xlu1 %v3369_v43, %s2566_s27 }
 0x2f4   : > { %1297 = vrot.lane.b32.xlu0 %v3331_v35, %s2567_s28  ;;  %1271 = vrot.lane.b32.xlu1 %v3377_v45, %s2566_s27  ;;  %s5633_s27 = scalar_lea.hbm %s5684_s1, %s2357_s24 }
 0x2f6   : > { %v3475_v27 = vpop.permute.xlu0 %1217  ;;  %v3485_v28 = vpop.permute.xlu1 %1219 }
 0x2f8   : > { %1301 = vrot.lane.b32.xlu0 %v3345_v42, %s2567_s28  ;;  %1299 = vrot.lane.b32.xlu1 %v3341_v34, %s2567_s28 }
 0x2fa   : > { %v3487_v31 = vpop.permute.xlu0 %1221 }
 0x2fc   : > { %1305 = vrot.lane.b32.xlu0 %v3353_v39, %s2567_s28  ;;  %1303 = vrot.lane.b32.xlu1 %v3357_v38, %s2567_s28 }
 0x300   : > { %1309 = vrot.lane.b32.xlu0 %v3365_v29, %s2567_s28  ;;  %1307 = vrot.lane.b32.xlu1 %v3369_v43, %s2567_s28 }
 0x304   : > { %1337 = vrot.lane.b32.xlu0 %v3331_v35, %s2568_s29  ;;  %1311 = vrot.lane.b32.xlu1 %v3377_v45, %s2567_s28  ;;  %s2579_s28 = smov [#allocation5]  }
 0x308   : > { %1341 = vrot.lane.b32.xlu0 %v3345_v42, %s2568_s29  ;;  %1339 = vrot.lane.b32.xlu1 %v3341_v34, %s2568_s29 }
 0x30c   : > { %1345 = vrot.lane.b32.xlu0 %v3353_v39, %s2568_s29  ;;  %1343 = vrot.lane.b32.xlu1 %v3357_v38, %s2568_s29 }
 0x310   : > { %1349 = vrot.lane.b32.xlu0 %v3365_v29, %s2568_s29  ;;  %1347 = vrot.lane.b32.xlu1 %v3369_v43, %s2568_s29 }
 0x314   : > { %1377 = vrot.lane.b32.xlu0 %v3331_v35, %s2569_s2  ;;  %1351 = vrot.lane.b32.xlu1 %v3377_v45, %s2568_s29  ;;  %s2497_s29 = sshll.u32 %s2579_s28, 4  ;;  %s2498_s29 = int_to_ptr.vmem [resolvable:$false] %s2497_s29 }
 0x315   : > { %p2500_p8 = scmp.lt.s32.totalorder %s5635_s26, %s2498_s29 }
 0x318   : > { %1381 = vrot.lane.b32.xlu0 %v3345_v42, %s2569_s2  ;;  %1379 = vrot.lane.b32.xlu1 %v3341_v34, %s2569_s2 }
 0x31c   : > { %1385 = vrot.lane.b32.xlu0 %v3353_v39, %s2569_s2  ;;  %1383 = vrot.lane.b32.xlu1 %v3357_v38, %s2569_s2 }
 0x320   : > { %1389 = vrot.lane.b32.xlu0 %v3365_v29, %s2569_s2  ;;  %1387 = vrot.lane.b32.xlu1 %v3369_v43, %s2569_s2 }
 0x324   : > { %1417 = vrot.lane.b32.xlu0 %v3331_v35, %s2570_s3  ;;  %1391 = vrot.lane.b32.xlu1 %v3377_v45, %s2569_s2  ;;  %s2499_s2 = scalar_lea.vmem %s2498_s29, 2048 }
 0x328   : > { %1421 = vrot.lane.b32.xlu0 %v3345_v42, %s2570_s3  ;;  %1419 = vrot.lane.b32.xlu1 %v3341_v34, %s2570_s3 }
 0x32c   : > { %1425 = vrot.lane.b32.xlu0 %v3353_v39, %s2570_s3  ;;  %1423 = vrot.lane.b32.xlu1 %v3357_v38, %s2570_s3 }
 0x330   : > { %1429 = vrot.lane.b32.xlu0 %v3365_v29, %s2570_s3  ;;  %1427 = vrot.lane.b32.xlu1 %v3369_v43, %s2570_s3 }
 0x334   : > { %1457 = vrot.lane.b32.xlu0 %v3331_v35, %s2571_s4  ;;  %1431 = vrot.lane.b32.xlu1 %v3377_v45, %s2570_s3 }
 0x338   : > { %1461 = vrot.lane.b32.xlu0 %v3345_v42, %s2571_s4  ;;  %1459 = vrot.lane.b32.xlu1 %v3341_v34, %s2571_s4 }
 0x33c   : > { %1465 = vrot.lane.b32.xlu0 %v3353_v39, %s2571_s4  ;;  %1463 = vrot.lane.b32.xlu1 %v3357_v38, %s2571_s4 }
 0x340   : > { %1469 = vrot.lane.b32.xlu0 %v3365_v29, %s2571_s4  ;;  %1467 = vrot.lane.b32.xlu1 %v3369_v43, %s2571_s4 }
 0x344   : > { %1497 = vrot.lane.b32.xlu0 %v3331_v35, %s2572_s5  ;;  %1471 = vrot.lane.b32.xlu1 %v3377_v45, %s2571_s4 }
 0x348   : > { %1501 = vrot.lane.b32.xlu0 %v3345_v42, %s2572_s5  ;;  %1499 = vrot.lane.b32.xlu1 %v3341_v34, %s2572_s5 }
 0x34c   : > { %1505 = vrot.lane.b32.xlu0 %v3353_v39, %s2572_s5  ;;  %1503 = vrot.lane.b32.xlu1 %v3357_v38, %s2572_s5 }
 0x34e   : > { %v3493_v32 = vpop.permute.xlu0 %1225  ;;  %v3495_v30 = vpop.permute.xlu1 %1223 }
 0x350   : > { %1509 = vrot.lane.b32.xlu0 %v3365_v29, %s2572_s5  ;;  %1507 = vrot.lane.b32.xlu1 %v3369_v43, %s2572_s5 }
 0x352   : > { %v3501_v26 = vpop.permute.xlu0 %1229  ;;  %v3503_v41 = vpop.permute.xlu1 %1227 }
 0x353   : > { %5814 = vst [vmem:[#allocation99_spill] sm:$0xff] %v3503_v41 }
 0x354   : > { %1537 = vrot.lane.b32.xlu0 %v3331_v35, %s2573_s11  ;;  %1511 = vrot.lane.b32.xlu1 %v3377_v45, %s2572_s5 }
 0x356   : > { %v3509_v25 = vpop.permute.xlu0 %1257  ;;  %v3511_v24 = vpop.permute.xlu1 %1231 }
 0x358   : > { %1541 = vrot.lane.b32.xlu0 %v3345_v42, %s2573_s11  ;;  %1539 = vrot.lane.b32.xlu1 %v3341_v34, %s2573_s11 }
 0x35a   : > { %v3517_v22 = vpop.permute.xlu0 %1261  ;;  %v3519_v21 = vpop.permute.xlu1 %1259 }
 0x35c   : > { %1545 = vrot.lane.b32.xlu0 %v3353_v39, %s2573_s11  ;;  %1543 = vrot.lane.b32.xlu1 %v3357_v38, %s2573_s11 }
 0x35e   : > { %v3528_v20 = vpop.permute.xlu0 %1265  ;;  %v3530_v19 = vpop.permute.xlu1 %1263 }
 0x35f   : > { %5815 = vst [vmem:[#allocation100_spill] sm:$0xff] %v3528_v20  ;;  %5816 = vst [vmem:[#allocation101_spill] sm:$0xff] %v3530_v19  ;;  %v231_v19 = vsel %vm148_vm1, %v2950_v48, 0.0  ;;  %v236_v48 = vsel %vm148_vm1, %v2964_v51, 0.0  ;;  %v242_v20 = vadd.f32 %v234_v17, %v2729_v4  ;;  %v237_v51 = vsel %vm148_vm1, %v2974_v54, 0.0 }
 0x360   : > { %1549 = vrot.lane.b32.xlu0 %v3365_v29, %s2573_s11  ;;  %1547 = vrot.lane.b32.xlu1 %v3369_v43, %s2573_s11  ;;  %v244_v53 = vadd.f32 %v236_v48, %v2739_v6  ;;  %v275_v4 = vsel %vm246_vm2, %v2988_v57, 0.0  ;;  %v274_v54 = vsel %vm246_vm2, %v2990_v58, 0.0  ;;  %v276_v6 = vsel %vm246_vm2, %v2998_v60, 0.0 }
 0x361   : > { %v245_v57 = vadd.f32 %v237_v51, %v2742_v7  ;;  %v281_v58 = vadd.f32 %v273_v1, %v240_v49  ;;  %v283_v5 = vadd.f32 %v275_v4, %v242_v20  ;;  %v282_v16 = vadd.f32 %v274_v54, %v241_v52 }
 0x362   : > { %v1270_v18 = vpop.permute.xlu0 %1269  ;;  %v3540_v41 = vpop.permute.xlu1 %1267  ;;  %v314_v60 = vsel %vm287_vm3, %v3012_v63, 0.0  ;;  %v284_v7 = vadd.f32 %v276_v6, %v243_v55  ;;  %v315_v63 = vsel %vm287_vm3, %v3022_v13, 0.0  ;;  %v317_v49 = vsel %vm287_vm3, %v3030_v15, 0.0 }
 0x363   : > { %5817 = vst [vmem:[#allocation102_spill] sm:$0xff] %v3540_v41  ;;  %v239_v41 = vadd.f32 %v231_v19, %v2719_v2  ;;  %v272_v2 = vsel %vm246_vm2, %v2982_v56, 0.0  ;;  %v279_v56 = vadd.f32 %v271_v0, %v238_v46  ;;  %v312_v19 = vsel %vm287_vm3, %v3004_v61, 0.0 }
 0x364   : > { %1577 = vrot.lane.b32.xlu0 %v3331_v35, %s2574_s13  ;;  %1551 = vrot.lane.b32.xlu1 %v3377_v45, %s2573_s11  ;;  %v285_v46 = vadd.f32 %v277_v3, %v244_v53  ;;  %v316_v61 = vsel %vm287_vm3, %v3020_v12, 0.0  ;;  %v1247_v12 = vsel %vm148_vm1, %v3501_v26, 0.0  ;;  %v3632_v20 = vadd.f32 %v278_v59, %v245_v57 }
 0x365   : > { %v280_v17 = vadd.f32 %v272_v2, %v239_v41  ;;  %v313_v41 = vsel %vm287_vm3, %v3014_v11, 0.0  ;;  %v3621_v62 = vadd.f32 %v312_v19, %v279_v56  ;;  %v318_v11 = vsel %vm287_vm3, %v3028_v14, 0.0 }
 0x366   : > { %v1298_v23 = vpop.permute.xlu0 %1297  ;;  %v1272_v50 = vpop.permute.xlu1 %1271  ;;  %v3634_v48 = vadd.f32 %v314_v60, %v281_v58  ;;  %v1241_v13 = vsel %vm148_vm1, %v3475_v27, 0.0  ;;  %v3644_v14 = vadd.f32 %v316_v61, %v283_v5  ;;  %v1243_v26 = vsel %vm148_vm1, %v3487_v31, 0.0  ;;  %v5820_v61 = vld [vmem:[#allocation9_spill] sm:$0xff] }
 0x367   : > { %v3642_v1 = vadd.f32 %v313_v41, %v280_v17  ;;  %v1287_v2 = vsel %vm246_vm2, %v1270_v18, 0.0  ;;  %v3651_v52 = vadd.f32 %v315_v63, %v282_v16  ;;  %v3653_v15 = vadd.f32 %v318_v11, %v285_v46  ;;  %v5818_v17 = vld [vmem:[#allocation100_spill] sm:$0xff]  ;;  %v5821_v11 = vld [vmem:[#allocation30_spill] sm:$0xff] }
 0x368   : > { %1581 = vrot.lane.b32.xlu0 %v3345_v42, %s2574_s13  ;;  %1579 = vrot.lane.b32.xlu1 %v3341_v34, %s2574_s13  ;;  %v1255_v53 = vadd.f32 %v1247_v12, %v3146_v36  ;;  %v3660_v27 = vadd.f32 %v317_v49, %v284_v7  ;;  %v1249_v4 = vadd.f32 %v1241_v13, %v2754_v9  ;;  %v1281_v18 = vsel %vm246_vm2, %v3509_v25, 0.0  ;;  %v5822_v49 = vld [vmem:[#allocation101_spill] sm:$0xff] }
 0x369   : > { %v1248_v31 = vsel %vm148_vm1, %v3511_v24, 0.0  ;;  %v1242_v36 = vsel %vm148_vm1, %v3485_v28, 0.0  ;;  %v1251_v54 = vadd.f32 %v1243_v26, %v2762_v10  ;;  %v1245_v55 = vsel %vm148_vm1, %v3493_v32, 0.0  ;;  %v5823_v26 = vld [vmem:[#allocation99_spill] sm:$0xff] }
 0x36a   : > { %v1302_v44 = vpop.permute.xlu0 %1301  ;;  %v1300_v47 = vpop.permute.xlu1 %1299  ;;  %v1295_v56 = vadd.f32 %v1287_v2, %v1255_v53  ;;  %v1283_v25 = vsel %vm246_vm2, %v3517_v22, 0.0  ;;  %v1321_v24 = vsel %vm287_vm3, %v1298_v23, 0.0  ;;  %v1288_v28 = vsel %vm246_vm2, %v1272_v50, 0.0 }
 0x36b   : > { %v1289_v32 = vadd.f32 %v1281_v18, %v1249_v4  ;;  %v1256_v6 = vadd.f32 %v1248_v31, %v3158_v33  ;;  %v1250_v22 = vadd.f32 %v1242_v36, %v2750_v8  ;;  %v1253_v23 = vadd.f32 %v1245_v55, %v3130_v37 }
 0x36c   : > { %1585 = vrot.lane.b32.xlu0 %v3353_v39, %s2574_s13  ;;  %1583 = vrot.lane.b32.xlu1 %v3357_v38, %s2574_s13  ;;  %v1244_v50 = vsel %vm148_vm1, %v3495_v30, 0.0  ;;  %v1282_v33 = vsel %vm246_vm2, %v3519_v21, 0.0  ;;  %v1291_v58 = vadd.f32 %v1283_v25, %v1251_v54  ;;  %v1285_v19 = vsel %vm246_vm2, %v5818_v17, 0.0  ;;  %v5824_v25 = vld [vmem:[#allocation10_spill] sm:$0xff]  ;;  %v5828_v17 = vld [vmem:[#allocation33_spill] sm:$0xff] }
 0x36d   : > { %v1329_v5 = vadd.f32 %v1321_v24, %v1289_v32  ;;  %v1296_v16 = vadd.f32 %v1288_v28, %v1256_v6  ;;  %v1323_v8 = vsel %vm287_vm3, %v1302_v44, 0.0  ;;  %v1322_v37 = vsel %vm287_vm3, %v1300_v47, 0.0  ;;  %v5819_v44 = vld [vmem:[#allocation8_spill] sm:$0xff]  ;;  %v5825_v6 = vld [vmem:[#allocation11_spill] sm:$0xff] }
 0x36e   : > { %v1306_v0 = vpop.permute.xlu0 %1305  ;;  %v1304_v51 = vpop.permute.xlu1 %1303  ;;  %v1290_v46 = vadd.f32 %v1282_v33, %v1250_v22  ;;  %v353_v47 = vsel %vm328_vm4, %v5819_v44, 0.0  ;;  %v319_v63 = vsel %vm287_vm3, %v5820_v61, 0.0  ;;  %v1252_v12 = vadd.f32 %v1244_v50, %v5821_v11  ;;  %v5827_v33 = vld [vmem:[#allocation12_spill] sm:$0xff]  ;;  %v5830_v61 = vld [vmem:[#allocation14_spill] sm:$0xff]  ;;  %v5831_v11 = vld [vmem:[#allocation15_spill] sm:$0xff] }
 0x36f   : > { %v1284_v13 = vsel %vm246_vm2, %v5822_v49, 0.0  ;;  %v1246_v2 = vsel %vm148_vm1, %v5823_v26, 0.0  ;;  %v1293_v53 = vadd.f32 %v1285_v19, %v1253_v23  ;;  %v1331_v4 = vadd.f32 %v1323_v8, %v1291_v58  ;;  %v5826_v23 = vld [vmem:[#allocation102_spill] sm:$0xff]  ;;  %v5832_v49 = vld [vmem:[#allocation16_spill] sm:$0xff]  ;;  %v5833_v26 = vld [vmem:[#allocation17_spill] sm:$0xff] }
 0x370   : > { %1589 = vrot.lane.b32.xlu0 %v3365_v29, %s2574_s13  ;;  %1587 = vrot.lane.b32.xlu1 %v3369_v43, %s2574_s13  ;;  %v1330_v18 = vadd.f32 %v1322_v37, %v1290_v46  ;;  %v1325_v54 = vsel %vm287_vm3, %v1306_v0, 0.0  ;;  %v1324_v55 = vsel %vm287_vm3, %v1304_v51, 0.0  ;;  %v355_v24 = vsel %vm328_vm4, %v5824_v25, 0.0  ;;  %v5836_v25 = vld [vmem:[#allocation20_spill] sm:$0xff] }
 0x371   : > { %v1292_v28 = vadd.f32 %v1284_v13, %v1252_v12  ;;  %v361_v0 = vadd.f32 %v353_v47, %v3621_v62  ;;  %v327_v51 = vadd.f32 %v319_v63, %v3632_v20  ;;  %v354_v22 = vsel %vm328_vm4, %v5825_v6, 0.0 }
 0x372   : > { %v1310_v9 = vpop.permute.xlu0 %1309  ;;  %v3676_v3 = vpop.permute.xlu1 %1307  ;;  %v1286_v50 = vsel %vm246_vm2, %v5826_v23, 0.0  ;;  %v357_v58 = vsel %vm328_vm4, %v5827_v33, 0.0  ;;  %v1254_v19 = vadd.f32 %v1246_v2, %v5828_v17  ;;  %v363_v20 = vadd.f32 %v355_v24, %v3634_v48  ;;  %v5837_v33 = vld [vmem:[#allocation21_spill] sm:$0xff] }
 0x373   : > { %v1327_v10 = vsel %vm287_vm3, %v1310_v9, 0.0  ;;  %v362_v48 = vadd.f32 %v354_v22, %v3642_v1  ;;  %v359_v63 = vsel %vm328_vm4, %v5830_v61, 0.0  ;;  %v358_v12 = vsel %vm328_vm4, %v5831_v11, 0.0 }
 0x374   : > { %v3689_v57 = vadd.f32 %v1327_v10, %v1295_v56  ;;  %1617 = vrot.lane.b32.xlu0 %v3331_v35, %s2575_s14  ;;  %1591 = vrot.lane.b32.xlu1 %v3377_v45, %s2574_s13  ;;  %v1294_v46 = vadd.f32 %v1286_v50, %v1254_v19  ;;  %v394_v13 = vsel %vm369_vm5, %v5832_v49, 0.0  ;;  %v360_v2 = vsel %vm328_vm4, %v5833_v26, 0.0  ;;  %v5839_v19 = vld [vmem:[#allocation23_spill] sm:$0xff]  ;;  %v5844_v49 = vld [vmem:[#allocation28_spill] sm:$0xff] }
 0x375   : > { %v398_v24 = vsel %vm369_vm5, %v5836_v25, 0.0  ;;  %v366_v6 = vadd.f32 %v358_v12, %v3660_v27  ;;  %v402_v22 = vadd.f32 %v394_v13, %v361_v0  ;;  %v368_v23 = vadd.f32 %v360_v2, %v327_v51  ;;  %v5840_v27 = vld [vmem:[#allocation24_spill] sm:$0xff]  ;;  %v5846_v26 = vld [vmem:[#allocation31_spill] sm:$0xff] }
 0x376   : > { %v1338_v59 = vpop.permute.xlu0 %1337  ;;  %v1312_v60 = vpop.permute.xlu1 %1311  ;;  %v435_v0 = vsel %vm410_vm6, %v5840_v27, 0.0  ;;  %v441_v2 = vsel %vm410_vm6, %v5846_v26, 0.0 }
 0x377   : > { %v1361_v30 = vsel %vm328_vm4, %v1338_v59, 0.0  ;;  %v1328_v21 = vsel %vm287_vm3, %v1312_v60, 0.0  ;;  %v1326_v60 = vsel %vm287_vm3, %v3676_v3, 0.0  ;;  %v365_v3 = vadd.f32 %v357_v58, %v3644_v14 }
 0x378   : > { %v3715_v7 = vadd.f32 %v1361_v30, %v1329_v5  ;;  %v3717_v41 = vadd.f32 %v1328_v21, %v1296_v16  ;;  %1621 = vrot.lane.b32.xlu0 %v3345_v42, %s2575_s14  ;;  %1619 = vrot.lane.b32.xlu1 %v3341_v34, %s2575_s14  ;;  %v1333_v5 = vadd.f32 %v1325_v54, %v1293_v53  ;;  %v5829_v30 = vld [vmem:[#allocation13_spill] sm:$0xff]  ;;  %v5834_v53 = vld [vmem:[#allocation18_spill] sm:$0xff]  ;;  %v397_v58 = vsel %vm369_vm5, %v5837_v33, 0.0 }
 0x379   : > { %v1332_v16 = vadd.f32 %v1324_v55, %v1292_v28  ;;  %v356_v21 = vsel %vm328_vm4, %v5829_v30, 0.0  ;;  %v396_v1 = vsel %vm369_vm5, %v5834_v53, 0.0  ;;  %v1334_v14 = vadd.f32 %v1326_v60, %v1294_v46  ;;  %v5841_v60 = vld [vmem:[#allocation25_spill] sm:$0xff] }
 0x37a   : > { %v1342_v31 = vpop.permute.xlu0 %1341  ;;  %v1340_v36 = vpop.permute.xlu1 %1339  ;;  %v443_v12 = vadd.f32 %v435_v0, %v402_v22  ;;  %v5848_v22 = vld [vmem:[#allocation34_spill] sm:$0xff]  ;;  %v5851_v33 = vld [vmem:[#allocation37_spill] sm:$0xff] }
 0x37b   : > { %v1363_v56 = vsel %vm328_vm4, %v1342_v31, 0.0  ;;  %v1362_v9 = vsel %vm328_vm4, %v1340_v36, 0.0  ;;  %v364_v31 = vadd.f32 %v356_v21, %v3651_v52  ;;  %v5835_v36 = vld [vmem:[#allocation19_spill] sm:$0xff] }
 0x37c   : > { %v3748_v10 = vadd.f32 %v1363_v56, %v1331_v4  ;;  %v3750_v32 = vadd.f32 %v1362_v9, %v1330_v18  ;;  %1625 = vrot.lane.b32.xlu0 %v3353_v39, %s2575_s14  ;;  %1623 = vrot.lane.b32.xlu1 %v3357_v38, %s2575_s14  ;;  %v395_v54 = vsel %vm369_vm5, %v5835_v36, 0.0  ;;  %v367_v9 = vadd.f32 %v359_v63, %v3653_v15  ;;  %v5843_v63 = vld [vmem:[#allocation27_spill] sm:$0xff] }
 0x37d   : > { %v404_v15 = vadd.f32 %v396_v1, %v363_v20  ;;  %v403_v50 = vadd.f32 %v395_v54, %v362_v48  ;;  %v405_v48 = vadd.f32 %v397_v58, %v364_v31  ;;  %v436_v11 = vsel %vm410_vm6, %v5843_v63, 0.0  ;;  %v5847_v54 = vld [vmem:[#allocation32_spill] sm:$0xff] }
 0x37e   : > { %v1346_v59 = vpop.permute.xlu0 %1345  ;;  %v1344_v62 = vpop.permute.xlu1 %1343  ;;  %v477_v58 = vsel %vm451_vm7, %v5851_v33, 0.0 }
 0x37f   : > { %v1365_v8 = vsel %vm328_vm4, %v1346_v59, 0.0  ;;  %v1364_v37 = vsel %vm328_vm4, %v1344_v62, 0.0  ;;  %v406_v62 = vadd.f32 %v398_v24, %v365_v3  ;;  %v444_v36 = vadd.f32 %v436_v11, %v403_v50  ;;  %v5850_v50 = vld [vmem:[#allocation36_spill] sm:$0xff]  ;;  %v5855_v11 = vld [vmem:[#allocation41_spill] sm:$0xff] }
 0x380   : > { %v3779_v44 = vadd.f32 %v1365_v8, %v1333_v5  ;;  %v3781_v47 = vadd.f32 %v1364_v37, %v1332_v16  ;;  %1629 = vrot.lane.b32.xlu0 %v3365_v29, %s2575_s14  ;;  %1627 = vrot.lane.b32.xlu1 %v3369_v43, %s2575_s14  ;;  %v399_v5 = vsel %vm369_vm5, %v5839_v19, 0.0  ;;  %v401_v8 = vsel %vm369_vm5, %v5841_v60, 0.0  ;;  %v5842_v37 = vld [vmem:[#allocation26_spill] sm:$0xff] }
 0x381   : > { %v437_v30 = vsel %vm410_vm6, %v5842_v37, 0.0  ;;  %v407_v61 = vadd.f32 %v399_v5, %v366_v6 }
 0x382   : > { %v1350_v4 = vpop.permute.xlu0 %1349  ;;  %v1348_v18 = vpop.permute.xlu1 %1347 }
 0x383   : > { %v1367_v55 = vsel %vm328_vm4, %v1350_v4, 0.0  ;;  %v1366_v56 = vsel %vm328_vm4, %v1348_v18, 0.0  ;;  %v445_v4 = vadd.f32 %v437_v30, %v404_v15  ;;  %v5849_v15 = vld [vmem:[#allocation35_spill] sm:$0xff] }
 0x384   : > { %v3818_v28 = vadd.f32 %v1367_v55, %v3689_v57  ;;  %v3820_v52 = vadd.f32 %v1366_v56, %v1334_v14  ;;  %1657 = vrot.lane.b32.xlu0 %v3331_v35, %s2576_s16  ;;  %1631 = vrot.lane.b32.xlu1 %v3377_v45, %s2575_s14  ;;  %v5838_v57 = vld [vmem:[#allocation22_spill] sm:$0xff]  ;;  %v409_v14 = vadd.f32 %v401_v8, %v368_v23  ;;  %v440_v55 = vsel %vm410_vm6, %v5847_v54, 0.0 }
 0x385   : > { %v400_v17 = vsel %vm369_vm5, %v5838_v57, 0.0  ;;  %v476_v23 = vsel %vm451_vm7, %v5848_v22, 0.0  ;;  %v5852_v57 = vld [vmem:[#allocation38_spill] sm:$0xff]  ;;  %v5861_v22 = vld [vmem:[#allocation47_spill] sm:$0xff] }
 0x386   : > { %v1378_v16 = vpop.permute.xlu0 %1377  ;;  %v1352_v59 = vpop.permute.xlu1 %1351  ;;  %v408_v3 = vadd.f32 %v400_v17, %v367_v9  ;;  %v480_v17 = vsel %vm451_vm7, %v5852_v57, 0.0 }
 0x387   : > { %v1401_v51 = vsel %vm369_vm5, %v1378_v16, 0.0  ;;  %v1368_v20 = vsel %vm328_vm4, %v1352_v59, 0.0  ;;  %v448_v16 = vadd.f32 %v440_v55, %v407_v61  ;;  %v5853_v59 = vld [vmem:[#allocation39_spill] sm:$0xff] }
 0x388   : > { %v3851_v21 = vadd.f32 %v1401_v51, %v3715_v7  ;;  %v3854_v46 = vadd.f32 %v1368_v20, %v3717_v41  ;;  %1661 = vrot.lane.b32.xlu0 %v3345_v42, %s2576_s16  ;;  %1659 = vrot.lane.b32.xlu1 %v3341_v34, %s2576_s16  ;;  %v439_v7 = vsel %vm410_vm6, %v5844_v49, 0.0  ;;  %v5845_v41 = vld [vmem:[#allocation29_spill] sm:$0xff]  ;;  %v449_v6 = vadd.f32 %v441_v2, %v408_v3  ;;  %v5854_v20 = vld [vmem:[#allocation40_spill] sm:$0xff]  ;;  %v5857_v49 = vld [vmem:[#allocation43_spill] sm:$0xff] }
 0x389   : > { %v438_v13 = vsel %vm410_vm6, %v5845_v41, 0.0  ;;  %v447_v25 = vadd.f32 %v439_v7, %v406_v62  ;;  %v479_v62 = vsel %vm451_vm7, %v5853_v59, 0.0  ;;  %v484_v51 = vadd.f32 %v476_v23, %v443_v12  ;;  %v5858_v2 = vld [vmem:[#allocation44_spill] sm:$0xff] }
 0x38a   : > { %v1382_v53 = vpop.permute.xlu0 %1381  ;;  %v1380_v1 = vpop.permute.xlu1 %1379  ;;  %v446_v24 = vadd.f32 %v438_v13, %v405_v48  ;;  %v482_v60 = vsel %vm451_vm7, %v5854_v20, 0.0  ;;  %v485_v3 = vadd.f32 %v477_v58, %v444_v36  ;;  %v481_v12 = vsel %vm451_vm7, %v5855_v11, 0.0  ;;  %v5869_v11 = vld [vmem:[#allocation55_spill] sm:$0xff] }
 0x38b   : > { %v1403_v18 = vsel %vm369_vm5, %v1382_v53, 0.0  ;;  %v1402_v31 = vsel %vm369_vm5, %v1380_v1, 0.0  ;;  %v488_v61 = vadd.f32 %v480_v17, %v447_v25  ;;  %v483_v7 = vsel %vm451_vm7, %v5857_v49, 0.0  ;;  %v5870_v49 = vld [vmem:[#allocation56_spill] sm:$0xff] }
 0x38c   : > { %v3881_v56 = vadd.f32 %v1403_v18, %v3748_v10  ;;  %v3884_v9 = vadd.f32 %v1402_v31, %v3750_v32  ;;  %1665 = vrot.lane.b32.xlu0 %v3353_v39, %s2576_s16  ;;  %1663 = vrot.lane.b32.xlu1 %v3357_v38, %s2576_s16  ;;  %v442_v10 = vsel %vm410_vm6, %v5849_v15, 0.0  ;;  %v478_v32 = vsel %vm451_vm7, %v5850_v50, 0.0  ;;  %v5860_v31 = vld [vmem:[#allocation46_spill] sm:$0xff] }
 0x38d   : > { %v450_v30 = vadd.f32 %v442_v10, %v409_v14  ;;  %v486_v48 = vadd.f32 %v478_v32, %v445_v4  ;;  %v487_v63 = vadd.f32 %v479_v62, %v446_v24  ;;  %v490_v26 = vadd.f32 %v482_v60, %v449_v6  ;;  %v5859_v4 = vld [vmem:[#allocation45_spill] sm:$0xff]  ;;  %v5862_v10 = vld [vmem:[#allocation48_spill] sm:$0xff]  ;;  %v5864_v32 = vld [vmem:[#allocation50_spill] sm:$0xff] }
 0x38e   : > { %v1386_v19 = vpop.permute.xlu0 %1385  ;;  %v1384_v5 = vpop.permute.xlu1 %1383  ;;  %v519_v53 = vsel %vm492_vm8, %v5858_v2, 0.0  ;;  %v518_v18 = vsel %vm492_vm8, %v5859_v4, 0.0  ;;  %v521_v36 = vsel %vm492_vm8, %v5860_v31, 0.0  ;;  %v489_v25 = vadd.f32 %v481_v12, %v448_v16  ;;  %v5865_v60 = vld [vmem:[#allocation51_spill] sm:$0xff] }
 0x38f   : > { %v1405_v27 = vsel %vm369_vm5, %v1386_v19, 0.0  ;;  %v1404_v0 = vsel %vm369_vm5, %v1384_v5, 0.0  ;;  %v491_v6 = vadd.f32 %v483_v7, %v450_v30  ;;  %v520_v23 = vsel %vm492_vm8, %v5861_v22, 0.0 }
 0x390   : > { %v3917_v8 = vadd.f32 %v1405_v27, %v3779_v44  ;;  %v3920_v37 = vadd.f32 %v1404_v0, %v3781_v47  ;;  %1669 = vrot.lane.b32.xlu0 %v3365_v29, %s2576_s16  ;;  %1667 = vrot.lane.b32.xlu1 %v3369_v43, %s2576_s16  ;;  %v5856_v44 = vld [vmem:[#allocation42_spill] sm:$0xff]  ;;  %v527_v15 = vadd.f32 %v519_v53, %v486_v48  ;;  %v558_v33 = vsel %vm533_vm9, %v5864_v32, 0.0  ;;  %v5866_v48 = vld [vmem:[#allocation52_spill] sm:$0xff] }
 0x391   : > { %v517_v47 = vsel %vm492_vm8, %v5856_v44, 0.0  ;;  %v526_v17 = vadd.f32 %v518_v18, %v485_v3  ;;  %v529_v19 = vadd.f32 %v521_v36, %v488_v61  ;;  %v528_v59 = vadd.f32 %v520_v23, %v487_v63  ;;  %v5867_v3 = vld [vmem:[#allocation53_spill] sm:$0xff]  ;;  %v5868_v61 = vld [vmem:[#allocation54_spill] sm:$0xff] }
 0x392   : > { %v1390_v41 = vpop.permute.xlu0 %1389  ;;  %v1388_v13 = vpop.permute.xlu1 %1387  ;;  %v525_v24 = vadd.f32 %v517_v47, %v484_v51  ;;  %v524_v30 = vsel %vm492_vm8, %v5865_v60, 0.0  ;;  %v562_v63 = vsel %vm533_vm9, %v5868_v61, 0.0  ;;  %v561_v12 = vsel %vm533_vm9, %v5869_v11, 0.0  ;;  %v5872_v36 = vld [vmem:[#allocation61_spill] sm:$0xff] }
 0x393   : > { %v1407_v1 = vsel %vm369_vm5, %v1390_v41, 0.0  ;;  %v1406_v14 = vsel %vm369_vm5, %v1388_v13, 0.0  ;;  %v564_v7 = vsel %vm533_vm9, %v5870_v49, 0.0  ;;  %v5871_v41 = vld [vmem:[#allocation58_spill] sm:$0xff]  ;;  %v532_v53 = vadd.f32 %v524_v30, %v491_v6  ;;  %v5882_v11 = vld [vmem:[#allocation77_spill] sm:$0xff] }
 0x394   : > { %v3950_v54 = vadd.f32 %v1407_v1, %v3818_v28  ;;  %v3953_v55 = vadd.f32 %v1406_v14, %v3820_v52  ;;  %1697 = vrot.lane.b32.xlu0 %v3331_v35, %s2577_s20  ;;  %1671 = vrot.lane.b32.xlu1 %v3377_v45, %s2576_s16  ;;  %v523_v28 = vsel %vm492_vm8, %v5862_v10, 0.0  ;;  %v5863_v52 = vld [vmem:[#allocation49_spill] sm:$0xff]  ;;  %v566_v20 = vadd.f32 %v558_v33, %v525_v24  ;;  %v5880_v30 = vld [vmem:[#allocation62_spill] sm:$0xff] }
 0x395   : > { %v522_v50 = vsel %vm492_vm8, %v5863_v52, 0.0  ;;  %v531_v0 = vadd.f32 %v523_v28, %v490_v26  ;;  %v599_v13 = vsel %vm5691_vm10, %v5871_v41, 0.0  ;;  %v570_v31 = vadd.f32 %v562_v63, %v529_v19  ;;  %v5874_v28 = vld [vmem:[#allocation66_spill] sm:$0xff] }
 0x396   : > { %v1418_v58 = vpop.permute.xlu0 %1417  ;;  %v1392_v57 = vpop.permute.xlu1 %1391  ;;  %v530_v51 = vadd.f32 %v522_v50, %v489_v25  ;;  %v600_v25 = vsel %vm5691_vm10, %v5872_v36, 0.0  ;;  %v569_v24 = vadd.f32 %v561_v12, %v528_v59  ;;  %v607_v22 = vadd.f32 %v599_v13, %v566_v20  ;;  %v5877_v59 = vld [vmem:[#allocation59_spill] sm:$0xff]  ;;  %v5878_v20 = vld [vmem:[#allocation60_spill] sm:$0xff] }
 0x397   : > { %v1441_v5 = vsel %vm410_vm6, %v1418_v58, 0.0  ;;  %v1408_v16 = vsel %vm369_vm5, %v1392_v57, 0.0  ;;  %v572_v6 = vadd.f32 %v564_v7, %v531_v0  ;;  %v640_v52 = vsel %vm5690_vm11, %v5874_v28, 0.0 }
 0x398   : > { %v3978_v62 = vadd.f32 %v1441_v5, %v3851_v21  ;;  %v3981_v27 = vadd.f32 %v1408_v16, %v3854_v46  ;;  %1701 = vrot.lane.b32.xlu0 %v3345_v42, %s2577_s20  ;;  %1699 = vrot.lane.b32.xlu1 %v3341_v34, %s2577_s20  ;;  %v560_v21 = vsel %vm533_vm9, %v5866_v48, 0.0  ;;  %v559_v46 = vsel %vm533_vm9, %v5867_v3, 0.0 }
 0x399   : > { %v568_v4 = vadd.f32 %v560_v21, %v527_v15  ;;  %v567_v18 = vadd.f32 %v559_v46, %v526_v17  ;;  %v5875_v15 = vld [vmem:[#allocation69_spill] sm:$0xff]  ;;  %v5876_v57 = vlaneseq  ;;  %v565_v0 = vsel %vm533_vm9, %v5877_v59, 0.0  ;;  %v5881_v21 = vld [vmem:[#allocation63_spill] sm:$0xff] }
 0x39a   : > { %v1422_v44 = vpop.permute.xlu0 %1421  ;;  %v1420_v47 = vpop.permute.xlu1 %1419  ;;  %v641_v50 = vsel %vm5690_vm11, %v5875_v15, 0.0  ;;  %v601_v60 = vsel %vm5691_vm10, %v5878_v20, 0.0  ;;  %v603_v48 = vsel %vm5691_vm10, %v5880_v30, 0.0  ;;  %v648_v3 = vadd.f32 %v640_v52, %v607_v22  ;;  %v5893_v30 = vld [vmem:[#allocation72_spill] sm:$0xff] }
 0x39b   : > { %v1443_v26 = vsel %vm410_vm6, %v1422_v44, 0.0  ;;  %v1442_v2 = vsel %vm410_vm6, %v1420_v47, 0.0  ;;  %v608_v58 = vadd.f32 %v600_v25, %v567_v18  ;;  %v4040_v17 = vshrl.u32 %v5876_v57, 7  ;;  %v5883_v44 = vld [vmem:[#allocation82_spill] sm:$0xff] }
 0x39c   : > { %v4014_v1 = vadd.f32 %v1443_v26, %v3881_v56  ;;  %v4017_v14 = vadd.f32 %v1442_v2, %v3884_v9  ;;  %1705 = vrot.lane.b32.xlu0 %v3353_v39, %s2577_s20  ;;  %1703 = vrot.lane.b32.xlu1 %v3357_v38, %s2577_s20  ;;  %v5873_v56 = vld [vmem:[#allocation57_spill] sm:$0xff]  ;;  %v682_v12 = vsel %vm5689_vm12, %v5882_v11, 0.0  ;;  %v722_v47 = vsel %vm5692_vm13, %v5883_v44, 0.0 }
 0x39d   : > { %v563_v9 = vsel %vm533_vm9, %v5873_v56, 0.0  ;;  %v649_v46 = vadd.f32 %v641_v50, %v608_v58  ;;  %v4078_v13 = vadd.s32 8, %v4040_v17  ;;  %v573_v18 = vadd.f32 %v565_v0, %v532_v53  ;;  %v5884_v56 = vld [vmem:[#allocation85_spill] sm:$0xff]  ;;  %v5887_v53 = vld [vmem:[#allocation95_spill] sm:$0xff] }
 0x39e   : > { %v1426_v23 = vpop.permute.xlu0 %1425  ;;  %v1424_v10 = vpop.permute.xlu1 %1423  ;;  %v571_v16 = vadd.f32 %v563_v9, %v530_v51  ;;  %v602_v51 = vsel %vm5691_vm10, %v5881_v21, 0.0  ;;  %v609_v36 = vadd.f32 %v601_v60, %v568_v4  ;;  %v611_v25 = vadd.f32 %v603_v48, %v570_v31  ;;  %v5888_v50 = vld [vmem:[#allocation65_spill] sm:$0xff]  ;;  %v5889_v0 = vld [vmem:[#allocation67_spill] sm:$0xff]  ;;  %v5890_v60 = vld [vmem:[#allocation68_spill] sm:$0xff] }
 0x39f   : > { %v1445_v32 = vsel %vm410_vm6, %v1426_v23, 0.0  ;;  %v1444_v33 = vsel %vm410_vm6, %v1424_v10, 0.0  ;;  %v723_v9 = vsel %vm5692_vm13, %v5884_v56, 0.0  ;;  %v610_v22 = vadd.f32 %v602_v51, %v569_v24  ;;  %v5885_v23 = vld [vmem:[#allocation64_spill] sm:$0xff]  ;;  %v5895_v56 = vld [vmem:[#allocation75_spill] sm:$0xff] }
 0x3a0   : > { %v4043_v19 = vadd.f32 %v1445_v32, %v3917_v8  ;;  %v4046_v5 = vadd.f32 %v1444_v33, %v3920_v37  ;;  %1709 = vrot.lane.b32.xlu0 %v3365_v29, %s2577_s20  ;;  %1707 = vrot.lane.b32.xlu1 %v3369_v43, %s2577_s20  ;;  %v5879_v8 = vld [vmem:[#allocation74_spill] sm:$0xff]  ;;  %vm5705_vm15 = vcmp.lt.s32.totalorder %v4040_v17, 7  ;;  %v764_v4 = vsel %vm5706_vm14, %v5887_v53, 0.0 }
 0x3a1   : > { %v681_v37 = vsel %vm5689_vm12, %v5879_v8, 0.0  ;;  %v604_v32 = vsel %vm5691_vm10, %v5888_v50, 0.0  ;;  %v606_v20 = vsel %vm5691_vm10, %v5889_v0, 0.0  ;;  %v642_v8 = vsel %vm5690_vm11, %v5890_v60, 0.0 }
 0x3a2   : > { %v1430_v61 = vpop.permute.xlu0 %1429  ;;  %v1428_v63 = vpop.permute.xlu1 %1427  ;;  %v689_v41 = vadd.f32 %v681_v37, %v648_v3  ;;  %v5892_v37 = vld [vmem:[#allocation71_spill] sm:$0xff]  ;;  %vm5710_vm0 = vcmp.lt.s32.totalorder %v4040_v17, 1  ;;  %v612_v3 = vadd.f32 %v604_v32, %v571_v16  ;;  %vm5716_vm1 = vcmp.lt.s32.totalorder %v4078_v13, 15 }
 0x3a3   : > { %v1447_v49 = vsel %vm410_vm6, %v1430_v61, 0.0  ;;  %v1446_v7 = vsel %vm410_vm6, %v1428_v63, 0.0  ;;  %v650_v16 = vadd.f32 %v642_v8, %v609_v36  ;;  %vm5693_vm2 = vcmp.ge.s32.totalorder %v4040_v17, 1  ;;  %v5897_v36 = vld [vmem:[#allocation78_spill] sm:$0xff] }
 0x3a4   : > { %v4081_v26 = vadd.f32 %v1447_v49, %v3950_v54  ;;  %v4084_v2 = vadd.f32 %v1446_v7, %v3953_v55  ;;  %1737 = vrot.lane.b32.xlu0 %v3331_v35, %s2578_s21  ;;  %1711 = vrot.lane.b32.xlu1 %v3377_v45, %s2577_s20  ;;  %v605_v54 = vsel %vm5691_vm10, %v5885_v23, 0.0  ;;  %v690_v55 = vadd.f32 %v682_v12, %v649_v46  ;;  %v5886_v35 = vld [vmem:[#allocation90_spill] sm:$0xff]  ;;  %v5894_v46 = vld [vmem:[#allocation73_spill] sm:$0xff] }
 0x3a5   : > { %v730_v10 = vadd.f32 %v722_v47, %v689_v41  ;;  %v763_v15 = vsel %vm5706_vm14, %v5886_v35, 0.0  ;;  %v613_v59 = vadd.f32 %v605_v54, %v572_v6  ;;  %v645_v61 = vsel %vm5690_vm11, %v5894_v46, 0.0  ;;  %v5896_v54 = vld [vmem:[#allocation76_spill] sm:$0xff]  ;;  %v5905_v46 = vld [vmem:[#allocation86_spill] sm:$0xff] }
 0x3a6   : > { %v1458_v28 = vpop.permute.xlu0 %1457  ;;  %v1432_v52 = vpop.permute.xlu1 %1431  ;;  %v731_v33 = vadd.f32 %v723_v9, %v690_v55  ;;  %v614_v12 = vadd.f32 %v606_v20, %v573_v18  ;;  %v653_v18 = vadd.f32 %v645_v61, %v612_v3  ;;  %vm5694_vm3 = vcmp.lt.s32.totalorder %v4040_v17, 6  ;;  %v5906_v61 = vld [vmem:[#allocation87_spill] sm:$0xff] }
 0x3a7   : > { %v1481_v31 = vsel %vm451_vm7, %v1458_v28, 0.0  ;;  %v1448_v24 = vsel %vm410_vm6, %v1432_v52, 0.0  ;;  %v4135_v6 = vadd.f32 %v763_v15, %v730_v10  ;;  %v5898_v10 = vld [vmem:[#allocation79_spill] sm:$0xff]  ;;  %v5899_v52 = vld [vmem:[#allocation80_spill] sm:$0xff]  ;;  %vm853_vm4 = vcmp.lt.s32.totalorder %v4078_v13, 14 }
 0x3a8   : > { %v4111_v58 = vadd.f32 %v1481_v31, %v3978_v62  ;;  %v4114_v57 = vadd.f32 %v1448_v24, %v3981_v27  ;;  %1741 = vrot.lane.b32.xlu0 %v3345_v42, %s2578_s21  ;;  %1739 = vrot.lane.b32.xlu1 %v3341_v34, %s2578_s21  ;;  %v5891_v62 = vld [vmem:[#allocation70_spill] sm:$0xff]  ;;  %v643_v42 = vsel %vm5690_vm11, %v5892_v37, 0.0  ;;  %v646_v34 = vsel %vm5690_vm11, %v5893_v30, 0.0  ;;  %v5900_v31 = vld [vmem:[#allocation81_spill] sm:$0xff] }
 0x3a9   : > { %v644_v27 = vsel %vm5690_vm11, %v5891_v62, 0.0  ;;  %v4138_v48 = vadd.f32 %v764_v4, %v731_v33  ;;  %v651_v7 = vadd.f32 %v643_v42, %v610_v22  ;;  %v654_v41 = vadd.f32 %v646_v34, %v613_v59  ;;  %v5901_v59 = vld [vmem:[#allocation83_spill] sm:$0xff] }
 0x3aa   : > { %v1462_v21 = vpop.permute.xlu0 %1461  ;;  %v1460_v51 = vpop.permute.xlu1 %1459  ;;  %v652_v49 = vadd.f32 %v644_v27, %v611_v25  ;;  %v685_v25 = vsel %vm5689_vm12, %v5897_v36, 0.0  ;;  %v684_v28 = vsel %vm5689_vm12, %v5898_v10, 0.0  ;;  %v687_v35 = vsel %vm5689_vm12, %v5899_v52, 0.0  ;;  %v5908_v36 = vld [vmem:[#allocation89_spill] sm:$0xff] }
 0x3ab   : > { %v1483_v63 = vsel %vm451_vm7, %v1462_v21, 0.0  ;;  %v1482_v11 = vsel %vm451_vm7, %v1460_v51, 0.0  ;;  %v788_v9 = vrot.slane %v4138_v48, 1  ;;  %v686_v24 = vsel %vm5689_vm12, %v5900_v31, 0.0  ;;  %v5904_v21 = vld [vmem:[#allocation84_spill] sm:$0xff] }
 0x3ac   : > { %v4149_v44 = vadd.f32 %v1483_v63, %v4014_v1  ;;  %v4152_v47 = vadd.f32 %v1482_v11, %v4017_v14  ;;  %1745 = vrot.lane.b32.xlu0 %v3353_v39, %s2578_s21  ;;  %1743 = vrot.lane.b32.xlu1 %v3357_v38, %s2578_s21  ;;  %v647_v1 = vsel %vm5690_vm11, %v5895_v56, 0.0  ;;  %v784_v14 = vrot.slane %v4135_v6, 1  ;;  %v5907_v63 = vld [vmem:[#allocation88_spill] sm:$0xff] }
 0x3ad   : > { %v683_v38 = vsel %vm5689_vm12, %v5896_v54, 0.0  ;;  %v655_v4 = vadd.f32 %v647_v1, %v614_v12  ;;  %v819_v50 = vrot.slane %v4135_v6, 7  ;;  %v823_v32 = vrot.slane %v4138_v48, 7 }
 0x3ae   : > { %v1466_v23 = vpop.permute.xlu0 %1465  ;;  %v1464_v39 = vpop.permute.xlu1 %1463  ;;  %v693_v33 = vadd.f32 %v685_v25, %v652_v49  ;;  %v692_v20 = vadd.f32 %v684_v28, %v651_v7  ;;  %v695_v60 = vadd.f32 %v687_v35, %v654_v41  ;;  %v694_v27 = vadd.f32 %v686_v24, %v653_v18 }
 0x3af   : > { %v1485_v22 = vsel %vm451_vm7, %v1466_v23, 0.0  ;;  %v1484_v55 = vsel %vm451_vm7, %v1464_v39, 0.0  ;;  %vm897_vm5 = vcmp.lt.s32.totalorder %v4040_v17, 2  ;;  %v4211_v37 = vsel %vm5705_vm15, %v784_v14, %v788_v9 }
 0x3b0   : > { %v4182_v15 = vadd.f32 %v1485_v22, %v4043_v19  ;;  %v4185_v53 = vadd.f32 %v1484_v55, %v4046_v5  ;;  %1749 = vrot.lane.b32.xlu0 %v3365_v29, %s2578_s21  ;;  %1747 = vrot.lane.b32.xlu1 %v3369_v43, %s2578_s21  ;;  %v691_v19 = vadd.f32 %v683_v38, %v650_v16  ;;  %v688_v5 = vsel %vm5689_vm12, %v5901_v59, 0.0 }
 0x3b1   : > { %v4201_v29 = vsel %vm5705_vm15, %v788_v9, %v784_v14  ;;  %5903 = vst [vmem:[#allocation8_spill] sm:$0xff] %v4211_v37  ;;  %v4221_v34 = vadd.f32 %v688_v5, %v655_v4  ;;  %v724_v51 = vsel %vm5692_vm13, %v5904_v21, 0.0  ;;  %v728_v11 = vsel %vm5692_vm13, %v5907_v63, 0.0 }
 0x3b2   : > { %5902 = vst [vmem:[#allocation100_spill] sm:$0xff] %v4201_v29  ;;  %v1470_v43 = vpop.permute.xlu0 %1469  ;;  %v1468_v0 = vpop.permute.xlu1 %1467  ;;  %v802_v3 = vsel %vm5716_vm1, %v4201_v29, 0.0  ;;  %v854_v12 = vrot.slane %v4135_v6, 2  ;;  %vm887_vm6 = vcmp.ge.s32.totalorder %v4040_v17, 2  ;;  %v809_v7 = vadd.f32 %v4211_v37, %v4135_v6 }
 0x3b3   : > { %v1487_v8 = vsel %vm451_vm7, %v1470_v43, 0.0  ;;  %v1486_v62 = vsel %vm451_vm7, %v1468_v0, 0.0  ;;  %v858_v41 = vrot.slane %v4138_v48, 2  ;;  %vm932_vm12 = vcmp.lt.s32.totalorder %v4040_v17, 5 }
 0x3b4   : > { %v4214_v42 = vadd.f32 %v1487_v8, %v4081_v26  ;;  %v4217_v30 = vadd.f32 %v1486_v62, %v4084_v2  ;;  %1751 = vrot.lane.b32.xlu1 %v3377_v45, %s2578_s21  ;;  %v4231_v26 = vsel %vm5710_vm0, %v823_v32, %v819_v50  ;;  %v726_v2 = vsel %vm5692_vm13, %v5905_v46, 0.0  ;;  %v5911_v8 = vld [vmem:[#allocation96_spill] sm:$0xff] }
 0x3b5   : > { %v725_v45 = vsel %vm5692_vm13, %v5906_v61, 0.0  ;;  %v810_v1 = vadd.f32 %v802_v3, %v4138_v48  ;;  %v836_v14 = vsel %vm5693_vm2, %v4231_v26, 0.0  ;;  %v732_v39 = vadd.f32 %v724_v51, %v691_v19 }
 0x3b6   : > { %v1498_v16 = vpop.permute.xlu0 %1497  ;;  %v1472_v49 = vpop.permute.xlu1 %1471  ;;  %v734_v54 = vadd.f32 %v726_v2, %v693_v33  ;;  %v733_v38 = vadd.f32 %v725_v45, %v692_v20  ;;  %v727_v25 = vsel %vm5692_vm13, %v5908_v36, 0.0  ;;  %v4265_v22 = vadd.f32 %v728_v11, %v695_v60  ;;  %v5909_v33 = vld [vmem:[#allocation93_spill] sm:$0xff] }
 0x3b7   : > { %v1521_v18 = vsel %vm492_vm8, %v1498_v16, 0.0  ;;  %v1488_v56 = vsel %vm451_vm7, %v1472_v49, 0.0  ;;  %v889_v55 = vrot.slane %v4135_v6, 6  ;;  %v4270_v10 = vsel %vm5710_vm0, %v819_v50, %v823_v32 }
 0x3b8   : > { %v4257_v9 = vadd.f32 %v1521_v18, %v4111_v58  ;;  %v4260_v23 = vadd.f32 %v1488_v56, %v4114_v57  ;;  %v893_v58 = vrot.slane %v4138_v48, 6  ;;  %vm923_vm7 = vcmp.lt.s32.totalorder %v4078_v13, 13  ;;  %v5913_v18 = vld [vmem:[#allocation97_spill] sm:$0xff] }
 0x3b9   : > { %vm967_vm11 = vcmp.lt.s32.totalorder %v4040_v17, 3  ;;  %v844_v52 = vadd.f32 %v836_v14, %v809_v7  ;;  %v4277_v35 = vsel %vm5694_vm3, %v858_v41, %v854_v12  ;;  %v735_v24 = vadd.f32 %v727_v25, %v694_v27 }
 0x3ba   : > { %v1502_v28 = vpop.permute.xlu0 %1501  ;;  %v1500_v57 = vpop.permute.xlu1 %1499  ;;  %vm1002_vm10 = vcmp.lt.s32.totalorder %v4040_v17, 4  ;;  %v845_v50 = vadd.f32 %v4270_v10, %v810_v1  ;;  %v729_v59 = vsel %vm5692_vm13, %v5909_v33, 0.0  ;;  %v924_v5 = vrot.slane %v4135_v6, 3 }
 0x3bb   : > { %v1523_v4 = vsel %vm492_vm8, %v1502_v28, 0.0  ;;  %v1522_v31 = vsel %vm492_vm8, %v1500_v57, 0.0  ;;  %v959_v43 = vrot.slane %v4135_v6, 5  ;;  %v928_v0 = vrot.slane %v4138_v48, 3 }
 0x3bc   : > { %v4286_v32 = vadd.f32 %v1523_v4, %v4149_v44  ;;  %v4289_v19 = vadd.f32 %v1522_v31, %v4152_v47  ;;  %v4299_v20 = vsel %vm5694_vm3, %v854_v12, %v858_v41  ;;  %v872_v44 = vsel %vm853_vm4, %v4277_v35, 0.0  ;;  %v5910_v47 = vld [vmem:[#allocation91_spill] sm:$0xff] }
 0x3bd   : > { %v765_v60 = vsel %vm5706_vm14, %v5910_v47, 0.0  ;;  %v766_v62 = vsel %vm5706_vm14, %v5911_v8, 0.0  ;;  %vm5712_vm13 = vcmp.ge.s32.totalorder %v4040_v17, 3  ;;  %vm5707_vm2 = vcmp.lt.s32.totalorder %v4078_v13, 12 }
 0x3be   : > { %v1506_v27 = vpop.permute.xlu0 %1505  ;;  %v1504_v21 = vpop.permute.xlu1 %1503  ;;  %vm5695_vm3 = vcmp.ge.s32.totalorder %v4040_v17, 4  ;;  %v879_v51 = vadd.f32 %v4299_v20, %v844_v52  ;;  %v4316_v3 = vsel %vm897_vm5, %v893_v58, %v889_v55  ;;  %v994_v61 = vrot.slane %v4135_v6, 4 }
 0x3bf   : > { %v1525_v46 = vsel %vm492_vm8, %v1506_v27, 0.0  ;;  %v1524_v2 = vsel %vm492_vm8, %v1504_v21, 0.0  ;;  %v880_v45 = vadd.f32 %v872_v44, %v845_v50  ;;  %v963_v12 = vrot.slane %v4138_v48, 5 }
 0x3c0   : > { %v4324_v63 = vadd.f32 %v1525_v46, %v4182_v15  ;;  %v4327_v11 = vadd.f32 %v1524_v2, %v4185_v53  ;;  %v998_v16 = vrot.slane %v4138_v48, 4  ;;  %v4331_v49 = vadd.f32 %v765_v60, %v732_v39  ;;  %v5912_v15 = vld [vmem:[#allocation92_spill] sm:$0xff] }
 0x3c1   : > { %v4333_v7 = vadd.f32 %v766_v62, %v733_v38  ;;  %v4337_v41 = vsel %vm897_vm5, %v889_v55, %v893_v58  ;;  %v906_v6 = vsel %vm887_vm6, %v4316_v3, 0.0  ;;  %v767_v53 = vsel %vm5706_vm14, %v5912_v15, 0.0 }
 0x3c2   : > { %v768_v48 = vsel %vm5706_vm14, %v5913_v18, 0.0  ;;  %v1510_v56 = vpop.permute.xlu0 %1509  ;;  %v1508_v1 = vpop.permute.xlu1 %1507  ;;  %v914_v14 = vadd.f32 %v906_v6, %v879_v51  ;;  %v4350_v39 = vsel %vm932_vm12, %v928_v0, %v924_v5  ;;  %v4357_v25 = vadd.f32 %v729_v59, %v4221_v34 }
 0x3c3   : > { %v1527_v38 = vsel %vm492_vm8, %v1510_v56, 0.0  ;;  %v1526_v36 = vsel %vm492_vm8, %v1508_v1, 0.0  ;;  %v915_v55 = vadd.f32 %v4337_v41, %v880_v45  ;;  %v785_v57 = vrot.slane %v4331_v49, 1 }
 0x3c4   : > { %v4361_v58 = vadd.f32 %v1527_v38, %v4214_v42  ;;  %v4364_v28 = vadd.f32 %v1526_v36, %v4217_v30  ;;  %v789_v52 = vrot.slane %v4333_v7, 1  ;;  %v4368_v4 = vadd.f32 %v767_v53, %v734_v54 }
 0x3c5   : > { %v4370_v31 = vadd.f32 %v768_v48, %v735_v24  ;;  %v4374_v34 = vsel %vm932_vm12, %v924_v5, %v928_v0  ;;  %v942_v42 = vsel %vm923_vm7, %v4350_v39, 0.0  ;;  %v4381_v30 = vsel %vm967_vm11, %v959_v43, %v963_v12 }
 0x3c6   : > { %v4385_v50 = vsel %vm967_vm11, %v963_v12, %v959_v43  ;;  %v1538_v54 = vpop.permute.xlu0 %1537  ;;  %v1512_v33 = vpop.permute.xlu1 %1511  ;;  %v949_v24 = vadd.f32 %v4374_v34, %v914_v14  ;;  %v1007_v59 = vsel %vm1002_vm10, %v998_v16, %v994_v61  ;;  %v820_v44 = vrot.slane %v4331_v49, 7 }
 0x3c7   : > { %v1561_v5 = vsel %vm533_vm9, %v1538_v54, 0.0  ;;  %v1528_v0 = vsel %vm492_vm8, %v1512_v33, 0.0  ;;  %v824_v47 = vrot.slane %v4333_v7, 7  ;;  %v950_v8 = vadd.f32 %v942_v42, %v915_v55 }
 0x3c8   : > { %v4397_v43 = vadd.f32 %v1561_v5, %v4257_v9  ;;  %v4400_v60 = vadd.f32 %v1528_v0, %v4260_v23  ;;  %v4404_v62 = vsel %vm5705_vm15, %v789_v52, %v785_v57  ;;  %v786_v27 = vrot.slane %v4368_v4, 1 }
 0x3c9   : > { %5915 = vst [vmem:[#allocation30_spill] sm:$0xff] %v4404_v62  ;;  %v790_v21 = vrot.slane %v4370_v31, 1  ;;  %v976_v51 = vsel %vm5712_vm13, %v4385_v50, 0.0  ;;  %v4413_v9 = vsel %vm1002_vm10, %v994_v61, %v998_v16  ;;  %v4417_v23 = vsel %vm5707_vm2, %v1007_v59, 0.0 }
 0x3ca   : > { %5914 = vst [vmem:[#allocation9_spill] sm:$0xff] %v4397_v43  ;;  %v4421_v46 = vsel %vm5695_vm3, %v1007_v59, 0.0  ;;  %v1542_v2 = vpop.permute.xlu0 %1541  ;;  %v1540_v45 = vpop.permute.xlu1 %1539  ;;  %v4423_v12 = vadd.f32 %v976_v51, %v949_v24  ;;  %v4427_v6 = vsel %vm5705_vm15, %v785_v57, %v789_v52  ;;  %v804_v15 = vsel %vm5716_vm1, %v4404_v62, 0.0 }
 0x3cb   : > { %5916 = vst [vmem:[#allocation101_spill] sm:$0xff] %v4427_v6  ;;  %v1563_v61 = vsel %vm533_vm9, %v1542_v2, 0.0  ;;  %v1562_v16 = vsel %vm533_vm9, %v1540_v45, 0.0  ;;  %v4438_v53 = vsel %vm5710_vm0, %v824_v47, %v820_v44  ;;  %v4447_v56 = vadd.f32 %v4381_v30, %v950_v8 }
 0x3cc   : > { %v4441_v18 = vadd.f32 %v1563_v61, %v4286_v32  ;;  %v4444_v48 = vadd.f32 %v1562_v16, %v4289_v19  ;;  %v821_v1 = vrot.slane %v4368_v4, 7  ;;  %v4452_v14 = vsel %vm5705_vm15, %v790_v21, %v786_v27 }
 0x3cd   : > { %5919 = vst [vmem:[#allocation11_spill] sm:$0xff] %v4452_v14  ;;  %v825_v38 = vrot.slane %v4370_v31, 7  ;;  %v855_v36 = vrot.slane %v4331_v49, 2  ;;  %v890_v55 = vrot.slane %v4331_v49, 6  ;;  %v811_v32 = vadd.f32 %v4427_v6, %v4331_v49 }
 0x3ce   : > { %5917 = vst [vmem:[#allocation99_spill] sm:$0xff] %v4441_v18  ;;  %5918 = vst [vmem:[#allocation10_spill] sm:$0xff] %v4444_v48  ;;  %v859_v19 = vrot.slane %v4333_v7, 2  ;;  %v1546_v57 = vpop.permute.xlu0 %1545  ;;  %v1544_v52 = vpop.permute.xlu1 %1543  ;;  %v812_v42 = vadd.f32 %v804_v15, %v4333_v7  ;;  %vm5920_vm8 = vcmp.ge.s32.totalorder %v4040_v17, 1  ;;  %v4470_v59 = vsel %vm5705_vm15, %v786_v27, %v790_v21 }
 0x3cf   : > { %v838_v54 = vsel %vm5920_vm8, %v4438_v53, 0.0  ;;  %v1565_v33 = vsel %vm533_vm9, %v1546_v57, 0.0  ;;  %v1564_v24 = vsel %vm533_vm9, %v1544_v52, 0.0  ;;  %5921 = vst [vmem:[#allocation102_spill] sm:$0xff] %v4470_v59  ;;  %v806_v5 = vsel %vm5716_vm1, %v4452_v14, 0.0 }
 0x3d0   : > { %v4476_v0 = vadd.f32 %v1565_v33, %v4324_v63  ;;  %v4479_v8 = vadd.f32 %v1564_v24, %v4327_v11  ;;  %v925_v51 = vrot.slane %v4331_v49, 3  ;;  %v4484_v2 = vsel %vm5710_vm0, %v820_v44, %v824_v47 }
 0x3d1   : > { %5923 = vst [vmem:[#allocation33_spill] sm:$0xff] %v4484_v2  ;;  %v894_v45 = vrot.slane %v4333_v7, 6  ;;  %v4489_v27 = vsel %vm5710_vm0, %v825_v38, %v821_v1  ;;  %v846_v21 = vadd.f32 %v838_v54, %v811_v32  ;;  %vm5925_vm8 = vcmp.lt.s32.totalorder %v4040_v17, 6 }
 0x3d2   : > { %5922 = vst [vmem:[#allocation12_spill] sm:$0xff] %v4479_v8  ;;  %5924 = vst [vmem:[#allocation13_spill] sm:$0xff] %v4489_v27  ;;  %v4493_v63 = vsel %vm5925_vm8, %v859_v19, %v855_v36  ;;  %v856_v11 = vrot.slane %v4368_v4, 2  ;;  %v860_v61 = vrot.slane %v4370_v31, 2  ;;  %v1550_v16 = vpop.permute.xlu0 %1549  ;;  %v1548_v15 = vpop.permute.xlu1 %1547  ;;  %v813_v44 = vadd.f32 %v4470_v59, %v4368_v4 }
 0x3d3   : > { %v814_v47 = vadd.f32 %v806_v5, %v4370_v31  ;;  %v1567_v57 = vsel %vm533_vm9, %v1550_v16, 0.0  ;;  %v1566_v32 = vsel %vm533_vm9, %v1548_v15, 0.0  ;;  %v847_v52 = vadd.f32 %v4484_v2, %v812_v42 }
 0x3d4   : > { %vm5926_vm8 = vcmp.ge.s32.totalorder %v4040_v17, 1  ;;  %v4509_v33 = vadd.f32 %v1567_v57, %v4361_v58  ;;  %v4512_v24 = vadd.f32 %v1566_v32, %v4364_v28  ;;  %v960_v5 = vrot.slane %v4331_v49, 5 }
 0x3d5   : > { %v840_v54 = vsel %vm5926_vm8, %v4489_v27, 0.0  ;;  %vm5927_vm3 = vcmp.lt.s32.totalorder %v4040_v17, 6  ;;  %v874_v42 = vsel %vm853_vm4, %v4493_v63, 0.0  ;;  %v929_v15 = vrot.slane %v4333_v7, 3 }
 0x3d6   : > { %v4517_v16 = vsel %vm5927_vm3, %v855_v36, %v859_v19  ;;  %v4525_v8 = vsel %vm897_vm5, %v894_v45, %v890_v55  ;;  %v891_v58 = vrot.slane %v4368_v4, 6  ;;  %v4530_v28 = vsel %vm5710_vm0, %v821_v1, %v825_v38  ;;  %v4533_v36 = vpop.permute.xlu0 %1577  ;;  %v1552_v19 = vpop.permute.xlu1 %1551 }
 0x3d7   : > { %5928 = vst [vmem:[#allocation14_spill] sm:$0xff] %v4530_v28  ;;  %v895_v57 = vrot.slane %v4370_v31, 6  ;;  %5929 = vst [vmem:[#allocation15_spill] sm:$0xff] %v4533_v36  ;;  %v848_v32 = vadd.f32 %v840_v54, %v813_v44  ;;  %v849_v48 = vadd.f32 %v4530_v28, %v814_v47  ;;  %v4538_v18 = vsel %vm5927_vm3, %v860_v61, %v856_v11 }
 0x3d8   : > { %v1568_v43 = vsel %vm533_vm9, %v1552_v19, 0.0  ;;  %v881_v1 = vadd.f32 %v4517_v16, %v846_v21  ;;  %v882_v38 = vadd.f32 %v874_v42, %v847_v52  ;;  %v4549_v44 = vsel %vm897_vm5, %v890_v55, %v894_v45  ;;  %vm5930_vm9 = vmmov %vm5927_vm3 }
 0x3d9   : > { %v4545_v14 = vadd.f32 %v1568_v43, %v4400_v60  ;;  %v908_v47 = vsel %vm887_vm6, %v4525_v8, 0.0  ;;  %v4556_v54 = vsel %vm932_vm12, %v929_v15, %v925_v51  ;;  %v964_v19 = vrot.slane %v4333_v7, 5 }
 0x3da   : > { %v4561_v21 = vsel %vm932_vm12, %v925_v51, %v929_v15  ;;  %v926_v43 = vrot.slane %v4368_v4, 3  ;;  %v4566_v60 = vsel %vm5930_vm9, %v856_v11, %v860_v61  ;;  %v876_v55 = vsel %vm853_vm4, %v4538_v18, 0.0  ;;  %v4571_v45 = vpop.permute.xlu0 %1581  ;;  %v4573_v52 = vpop.permute.xlu1 %1579 }
 0x3db   : > { %5931 = vst [vmem:[#allocation16_spill] sm:$0xff] %v4571_v45  ;;  %5932 = vst [vmem:[#allocation17_spill] sm:$0xff] %v4573_v52  ;;  %v883_v42 = vadd.f32 %v4566_v60, %v848_v32  ;;  %v884_v59 = vadd.f32 %v876_v55, %v849_v48  ;;  %v4578_v51 = vsel %vm897_vm5, %v895_v57, %v891_v58  ;;  %v930_v15 = vrot.slane %v4370_v31, 3  ;;  %v5933_v32 = vld [vmem:[#allocation94_spill] sm:$0xff] }
 0x3dc   : > { %v916_v36 = vadd.f32 %v908_v47, %v881_v1  ;;  %v917_v11 = vadd.f32 %v4549_v44, %v882_v38  ;;  %v944_v61 = vsel %vm923_vm7, %v4556_v54, 0.0  ;;  %v999_v45 = vrot.slane %v4333_v7, 4  ;;  %v5934_v47 = vld [vmem:[#allocation98_spill] sm:$0xff] }
 0x3dd   : > { %v4588_v52 = vsel %vm967_vm11, %v960_v5, %v964_v19  ;;  %v4592_v48 = vsel %vm967_vm11, %v964_v19, %v960_v5  ;;  %v769_v1 = vsel %vm5706_vm14, %v5933_v32, 0.0  ;;  %v770_v38 = vsel %vm5706_vm14, %v5934_v47, 0.0 }
 0x3de   : > { %v961_v55 = vrot.slane %v4368_v4, 5  ;;  %v4603_v7 = vsel %vm897_vm5, %v891_v58, %v895_v57  ;;  %v910_v6 = vsel %vm887_vm6, %v4578_v51, 0.0  ;;  %v965_v5 = vrot.slane %v4370_v31, 5  ;;  %v1586_v19 = vpop.permute.xlu0 %1585  ;;  %v4609_v37 = vpop.permute.xlu1 %1583 }
 0x3df   : > { %5935 = vst [vmem:[#allocation18_spill] sm:$0xff] %v4609_v37  ;;  %v918_v32 = vadd.f32 %v910_v6, %v883_v42  ;;  %v919_v62 = vadd.f32 %v4603_v7, %v884_v59  ;;  %v4614_v47 = vsel %vm932_vm12, %v930_v15, %v926_v43  ;;  %vm5936_vm8 = vcmp.ge.s32.totalorder %v3522_v40, 5 }
 0x3e0   : > { %v1605_v58 = vsel %vm5936_vm8, %v1586_v19, 0.0  ;;  %vm1046_vm3 = vcmp.lt.s32.totalorder %v4078_v13, 11  ;;  %v951_v57 = vadd.f32 %v4561_v21, %v916_v36  ;;  %v4621_v29 = vadd.f32 %v769_v1, %v4265_v22  ;;  %vm5939_vm9 = vmmov %vm5936_vm8 }
 0x3e1   : > { %v4624_v28 = vadd.f32 %v770_v38, %v4357_v25  ;;  %v4627_v6 = vadd.f32 %v1605_v58, %v4476_v0  ;;  %v952_v59 = vadd.f32 %v944_v61, %v917_v11  ;;  %v978_v42 = vsel %vm5712_vm13, %v4592_v48, 0.0 }
 0x3e2   : > { %v5938_v19 = vrot.slane %v4331_v49, 4  ;;  %v996_v36 = vrot.slane %v4368_v4, 4  ;;  %v4639_v22 = vsel %vm932_vm12, %v926_v43, %v930_v15  ;;  %v946_v25 = vsel %vm923_vm7, %v4614_v47, 0.0  ;;  %v1590_v61 = vpop.permute.xlu0 %1589  ;;  %v1588_v1 = vpop.permute.xlu1 %1587 }
 0x3e3   : > { %5937 = vst [vmem:[#allocation19_spill] sm:$0xff] %v4627_v6  ;;  %v4646_v0 = vsel %vm967_vm11, %v965_v5, %v961_v55  ;;  %v1000_v11 = vrot.slane %v4370_v31, 4  ;;  %v953_v38 = vadd.f32 %v4639_v22, %v918_v32  ;;  %v954_v58 = vadd.f32 %v946_v25, %v919_v62 }
 0x3e4   : > { %v1008_v37 = vsel %vm1002_vm10, %v999_v45, %v5938_v19  ;;  %v1607_v4 = vsel %vm5939_vm9, %v1590_v61, 0.0  ;;  %v1606_v43 = vsel %vm5936_vm8, %v1588_v1, 0.0  ;;  %v787_v15 = vrot.slane %v4621_v29, 1  ;;  %vm5943_vm9 = vmmov %vm5936_vm8 }
 0x3e5   : > { %v791_v19 = vrot.slane %v4624_v28, 1  ;;  %v4657_v6 = vadd.f32 %v1607_v4, %v4509_v33  ;;  %v4660_v31 = vadd.f32 %v1606_v43, %v4512_v24  ;;  %v1019_v32 = vadd.f32 %v4413_v9, %v4423_v12 }
 0x3e6   : > { %v1020_v62 = vadd.f32 %v4417_v23, %v4447_v56  ;;  %v986_v25 = vadd.f32 %v978_v42, %v951_v57  ;;  %v987_v61 = vadd.f32 %v4588_v52, %v952_v59  ;;  %v5941_v1 = vrot.slane %v4331_v49, 4  ;;  %v4676_v12 = vpop.permute.xlu0 %1617  ;;  %v1592_v43 = vpop.permute.xlu1 %1591 }
 0x3e7   : > { %5940 = vst [vmem:[#allocation20_spill] sm:$0xff] %v4660_v31  ;;  %v980_v33 = vsel %vm5712_vm13, %v4646_v0, 0.0  ;;  %v822_v24 = vrot.slane %v4621_v29, 7  ;;  %v826_v4 = vrot.slane %v4624_v28, 7  ;;  %5942 = vst [vmem:[#allocation21_spill] sm:$0xff] %v4676_v12  ;;  %v1014_v23 = vsel %vm5707_vm2, %v1008_v37, 0.0 }
 0x3e8   : > { %v1004_v27 = vsel %vm1002_vm10, %v5941_v1, %v999_v45  ;;  %v970_v49 = vsel %vm967_vm11, %v961_v55, %v965_v5  ;;  %v988_v56 = vadd.f32 %v980_v33, %v953_v38  ;;  %v1608_v45 = vsel %vm5943_vm9, %v1592_v43, 0.0 }
 0x3e9   : > { %v989_v57 = vadd.f32 %v970_v49, %v954_v58  ;;  %v1009_v59 = vsel %vm1002_vm10, %v1000_v11, %v996_v36  ;;  %v4688_v42 = vsel %vm5705_vm15, %v791_v19, %v787_v15  ;;  %v4691_v1 = vadd.f32 %v1608_v45, %v4545_v14 }
 0x3ea   : > { %5944 = vst [vmem:[#allocation22_spill] sm:$0xff] %v4688_v42  ;;  %v1037_v31 = vadd.f32 %v4421_v46, %v1019_v32  ;;  %v1021_v12 = vadd.f32 %v1004_v27, %v986_v25  ;;  %v1022_v2 = vadd.f32 %v1014_v23, %v987_v61  ;;  %v4696_v55 = vsel %vm5705_vm15, %v787_v15, %v791_v19  ;;  %v4706_v14 = vpop.permute.xlu0 %1621  ;;  %v4708_v46 = vpop.permute.xlu1 %1619 }
 0x3eb   : > { %5945 = vst [vmem:[#allocation23_spill] sm:$0xff] %v4696_v55  ;;  %vm5717_vm8 = vcmp.ge.s32.totalorder %v4040_v17, 5  ;;  %vm5715_vm9 = vcmp.lt.s32.totalorder %v4078_v13, 10  ;;  %v1005_v5 = vsel %vm1002_vm10, %v996_v36, %v1000_v11  ;;  %v4704_v38 = vsel %vm5710_vm0, %v826_v4, %v822_v24 }
 0x3ec   : > { %v1048_v58 = vsel %vm1046_vm3, %v4385_v50, 0.0  ;;  %v1016_v15 = vsel %vm5707_vm2, %v1009_v59, 0.0  ;;  %v1023_v19 = vadd.f32 %v1005_v5, %v988_v56  ;;  %v808_v36 = vsel %vm5716_vm1, %v4688_v42, 0.0 }
 0x3ed   : > { %v1038_v11 = vadd.f32 %v1020_v62, %v4413_v9  ;;  %vm5946_vm15 = vcmp.ge.s32.totalorder %v4040_v17, 4  ;;  %v1024_v25 = vadd.f32 %v1016_v15, %v989_v57  ;;  %v815_v61 = vadd.f32 %v4696_v55, %v4621_v29 }
 0x3ee   : > { %v1031_v32 = vsel %vm5946_vm15, %v1008_v37, 0.0  ;;  %v1055_v33 = vadd.f32 %v1037_v31, %v4381_v30  ;;  %v1040_v43 = vadd.f32 %v1022_v2, %v1004_v27  ;;  %vm5947_vm14 = vcmp.ge.s32.totalorder %v4040_v17, 1  ;;  %vm5948_vm2 = vmmov %vm5946_vm15  ;;  %v4732_v45 = vpop.permute.xlu0 %1625  ;;  %v4734_v57 = vpop.permute.xlu1 %1623 }
 0x3ef   : > { %v1039_v50 = vadd.f32 %v1031_v32, %v1021_v12  ;;  %v842_v23 = vsel %vm5947_vm14, %v4704_v38, 0.0  ;;  %v1033_v56 = vsel %vm5948_vm2, %v1009_v59, 0.0  ;;  %v857_v9 = vrot.slane %v4621_v29, 2 }
 0x3f0   : > { %v816_v62 = vadd.f32 %v808_v36, %v4624_v28  ;;  %v861_v37 = vrot.slane %v4624_v28, 2  ;;  %v1065_v30 = vsel %vm5717_vm8, %v4350_v39, 0.0  ;;  %v1084_v2 = vsel %vm5715_vm9, %v4316_v3, 0.0 }
 0x3f1   : > { %v1050_v27 = vsel %vm1046_vm3, %v4592_v48, 0.0  ;;  %v1041_v31 = vadd.f32 %v1033_v56, %v1023_v19  ;;  %vm5714_vm14 = vcmp.ge.s32.totalorder %v4040_v17, 6  ;;  %v1042_v12 = vadd.f32 %v1024_v25, %v1005_v5 }
 0x3f2   : > { %v892_v59 = vrot.slane %v4621_v29, 6  ;;  %v850_v15 = vadd.f32 %v842_v23, %v815_v61  ;;  %v896_v36 = vrot.slane %v4624_v28, 6  ;;  %v1056_v32 = vadd.f32 %v1048_v58, %v1038_v11  ;;  %v1630_v25 = vpop.permute.xlu0 %1629  ;;  %v4761_v58 = vpop.permute.xlu1 %1627 }
 0x3f3   : > { %v1057_v39 = vadd.f32 %v1039_v50, %v4588_v52  ;;  %v1058_v55 = vadd.f32 %v1050_v27, %v1040_v43  ;;  %v4751_v3 = vsel %vm5710_vm0, %v822_v24, %v826_v4  ;;  %v1073_v42 = vadd.f32 %v1065_v30, %v1055_v33 }
 0x3f4   : > { %v1067_v48 = vsel %vm5717_vm8, %v4556_v54, 0.0  ;;  %v851_v5 = vadd.f32 %v4751_v3, %v816_v62  ;;  %vm5949_vm15 = vcmp.lt.s32.totalorder %v4040_v17, 6  ;;  %v1052_v52 = vsel %vm1046_vm3, %v4646_v0, 0.0 }
 0x3f5   : > { %v4759_v19 = vsel %vm5949_vm15, %v861_v37, %v857_v9  ;;  %v1059_v24 = vadd.f32 %v1041_v31, %v970_v49  ;;  %vm5950_vm2 = vmmov %vm5949_vm15  ;;  %vm5951_vm0 = vcmp.lt.s32.totalorder %v3522_v40, 10  ;;  %v1060_v11 = vadd.f32 %v1052_v52, %v1042_v12 }
 0x3f6   : > { %v4768_v4 = vsel %vm5950_vm2, %v857_v9, %v861_v37  ;;  %v1647_v54 = vsel %vm5951_vm0, %v1630_v25, 0.0  ;;  %v4775_v33 = vsel %vm897_vm5, %v896_v36, %v892_v59  ;;  %v1074_v0 = vadd.f32 %v1056_v32, %v4374_v34  ;;  %v1632_v30 = vpop.permute.xlu1 %1631 }
 0x3f7   : > { %v885_v61 = vadd.f32 %v4768_v4, %v850_v15  ;;  %v4778_v50 = vadd.f32 %v1647_v54, %v4657_v6  ;;  %v1075_v49 = vadd.f32 %v1067_v48, %v1057_v39  ;;  %v1076_v43 = vadd.f32 %v1058_v55, %v4561_v21  ;;  %v4790_v6 = vpop.permute.xlu0 %1657 }
 0x3f8   : > { %v878_v23 = vsel %vm853_vm4, %v4759_v19, 0.0  ;;  %v1069_v56 = vsel %vm5717_vm8, %v4614_v47, 0.0  ;;  %v927_v9 = vrot.slane %v4621_v29, 3  ;;  %v931_v37 = vrot.slane %v4624_v28, 3 }
 0x3f9   : > { %v886_v62 = vadd.f32 %v878_v23, %v851_v5  ;;  %v1077_v34 = vadd.f32 %v1069_v56, %v1059_v24  ;;  %v962_v27 = vrot.slane %v4621_v29, 5  ;;  %v912_v21 = vsel %vm887_vm6, %v4775_v33, 0.0 }
 0x3fa   : > { %v1648_v55 = vsel %vm5951_vm0, %v1632_v30, 0.0  ;;  %v1078_v47 = vadd.f32 %v1060_v11, %v4639_v22  ;;  %v920_v31 = vadd.f32 %v912_v21, %v885_v61  ;;  %v966_v12 = vrot.slane %v4624_v28, 5  ;;  %v5952_v21 = vld [vmem:[#allocation33_spill] sm:$0xff] }
 0x3fb   : > { %v4801_v15 = vadd.f32 %v1648_v55, %v4691_v1  ;;  %vm5711_vm15 = vcmp.lt.s32.totalorder %v4078_v13, 9  ;;  %v1091_v32 = vadd.f32 %v1073_v42, %v4337_v41  ;;  %v1092_v39 = vadd.f32 %v1084_v2, %v1074_v0  ;;  %v4818_v52 = vpop.permute.xlu0 %1661  ;;  %v4820_v41 = vpop.permute.xlu1 %1659 }
 0x3fc   : > { %v4807_v48 = vsel %vm897_vm5, %v892_v59, %v896_v36  ;;  %v1086_v5 = vsel %vm5715_vm9, %v4525_v8, 0.0  ;;  %v1093_v22 = vadd.f32 %v1075_v49, %v4549_v44  ;;  %v4816_v1 = vsel %vm932_vm12, %v931_v37, %v927_v9 }
 0x3fd   : > { %v921_v25 = vadd.f32 %v4807_v48, %v886_v62  ;;  %v1101_v42 = vsel %vm5714_vm14, %v4277_v35, 0.0  ;;  %v1094_v2 = vadd.f32 %v1086_v5, %v1076_v43  ;;  %v1088_v8 = vsel %vm5715_vm9, %v4578_v51, 0.0 }
 0x3fe   : > { %v4830_v44 = vsel %vm932_vm12, %v927_v9, %v931_v37  ;;  %v1095_v59 = vadd.f32 %v1077_v34, %v4603_v7  ;;  %v1096_v36 = vadd.f32 %v1088_v8, %v1078_v47  ;;  %v4836_v54 = vsel %vm967_vm11, %v966_v12, %v962_v27 }
 0x3ff   : > { %v955_v24 = vadd.f32 %v4830_v44, %v920_v31  ;;  %v1109_v11 = vadd.f32 %v1101_v42, %v1091_v32  ;;  %v1110_v35 = vadd.f32 %v1092_v39, %v4299_v20  ;;  %v1103_v51 = vsel %vm5714_vm14, %v4493_v63, 0.0  ;;  %v4847_v23 = vpop.permute.xlu0 %1665  ;;  %v4849_v56 = vpop.permute.xlu1 %1663  ;;  %v5953_v39 = vld [vmem:[#allocation13_spill] sm:$0xff] }
 0x400   : > { %v948_v61 = vsel %vm923_vm7, %v4816_v1, 0.0  ;;  %v1111_v0 = vadd.f32 %v1103_v51, %v1093_v22  ;;  %v997_v7 = vrot.slane %v4621_v29, 4  ;;  %v1001_v43 = vrot.slane %v4624_v28, 4 }
 0x401   : > { %v956_v49 = vadd.f32 %v948_v61, %v921_v25  ;;  %v1112_v20 = vadd.f32 %v1094_v2, %v4517_v16  ;;  %v1105_v63 = vsel %vm5714_vm14, %v4538_v18, 0.0  ;;  %v982_v9 = vsel %vm5712_vm13, %v4836_v54, 0.0  ;;  %v5956_v2 = vld [vmem:[#allocation100_spill] sm:$0xff] }
 0x402   : > { %v1120_v29 = vsel %vm5711_vm15, %v4231_v26, 0.0  ;;  %v1113_v62 = vadd.f32 %v1105_v63, %v1095_v59  ;;  %v1114_v28 = vadd.f32 %v1096_v36, %v4566_v60  ;;  %v990_v37 = vadd.f32 %v982_v9, %v955_v24  ;;  %v5957_v59 = vld [vmem:[#allocation30_spill] sm:$0xff] }
 0x403   : > { %vm5713_vm2 = vcmp.ge.s32.totalorder %v4040_v17, 7  ;;  %v1127_v16 = vadd.f32 %v1109_v11, %v4270_v10  ;;  %v1128_v30 = vadd.f32 %v1120_v29, %v1110_v35  ;;  %v971_v18 = vsel %vm967_vm11, %v962_v27, %v966_v12  ;;  %v1670_v60 = vpop.permute.xlu0 %1669  ;;  %v4872_v31 = vpop.permute.xlu1 %1667  ;;  %v5955_v12 = vld [vmem:[#allocation14_spill] sm:$0xff]  ;;  %v5959_v35 = vld [vmem:[#allocation8_spill] sm:$0xff] }
 0x404   : > { %v1122_v34 = vsel %vm5711_vm15, %v4438_v53, 0.0  ;;  %v1129_v55 = vadd.f32 %v1111_v0, %v5952_v21  ;;  %v991_v47 = vadd.f32 %v971_v18, %v956_v49  ;;  %v1010_v26 = vsel %vm1002_vm10, %v1001_v43, %v997_v7 }
 0x405   : > { %v1130_v32 = vadd.f32 %v1122_v34, %v1112_v20  ;;  %v1124_v10 = vsel %vm5711_vm15, %v5953_v39, 0.0  ;;  %v1006_v27 = vsel %vm1002_vm10, %v997_v7, %v1001_v43  ;;  %vm5954_vm0 = vcmp.ge.s32.totalorder %v3522_v40, 6  ;;  %v5961_v20 = vld [vmem:[#allocation11_spill] sm:$0xff] }
 0x406   : > { %v1687_v53 = vsel %vm5954_vm0, %v1670_v60, 0.0  ;;  %v1131_v5 = vadd.f32 %v1113_v62, %v5955_v12  ;;  %v1132_v22 = vadd.f32 %v1124_v10, %v1114_v28  ;;  %v1025_v25 = vadd.f32 %v1006_v27, %v990_v37  ;;  %v5964_v28 = vld [vmem:[#allocation102_spill] sm:$0xff] }
 0x407   : > { %v4883_v42 = vadd.f32 %v1687_v53, %v4778_v50  ;;  %v1137_v8 = vsel %vm5713_vm2, %v5956_v2, 0.0  ;;  %v1139_v36 = vsel %vm5713_vm2, %v5957_v59, 0.0  ;;  %vm5958_vm15 = vcmp.lt.s32.totalorder %v4078_v13, 12  ;;  %v1698_v7 = vpop.permute.xlu0 %1697  ;;  %v1672_v49 = vpop.permute.xlu1 %1671  ;;  %v5960_v50 = vld [vmem:[#allocation101_spill] sm:$0xff] }
 0x408   : > { %v1018_v24 = vsel %vm5958_vm15, %v1010_v26, 0.0  ;;  %v1145_v11 = vadd.f32 %v1137_v8, %v1127_v16  ;;  %v1146_v51 = vadd.f32 %v1128_v30, %v5959_v35  ;;  %v1147_v61 = vadd.f32 %v1139_v36, %v1129_v55  ;;  %v5965_v8 = vld [vmem:[#allocation15_spill] sm:$0xff]  ;;  %v5967_v35 = vld [vmem:[#allocation16_spill] sm:$0xff] }
 0x409   : > { %v1026_v0 = vadd.f32 %v1018_v24, %v991_v47  ;;  %v1148_v43 = vadd.f32 %v1130_v32, %v5960_v50  ;;  %v1141_v63 = vsel %vm5713_vm2, %v5961_v20, 0.0  ;;  %vm5962_vm0 = vcmp.ge.s32.totalorder %v4040_v17, 4  ;;  %v5971_v50 = vld [vmem:[#allocation21_spill] sm:$0xff] }
 0x40a   : > { %v1035_v9 = vsel %vm5962_vm0, %v1010_v26, 0.0  ;;  %vm5963_vm13 = vcmp.ge.s32.totalorder %v3522_v40, 6  ;;  %v1149_v62 = vadd.f32 %v1141_v63, %v1131_v5  ;;  %v1150_v37 = vadd.f32 %v1132_v22, %v5964_v28  ;;  %v5973_v63 = vld [vmem:[#allocation9_spill] sm:$0xff] }
 0x40b   : > { %v1688_v29 = vsel %vm5963_vm13, %v1672_v49, 0.0  ;;  %v1043_v16 = vadd.f32 %v1035_v9, %v1025_v25  ;;  %v4906_v34 = vmul.f32 0.0044444446, %v1145_v11  ;;  %v4908_v21 = vmul.f32 0.0044444446, %v1146_v51  ;;  %v1702_v47 = vpop.permute.xlu0 %1701  ;;  %v1700_v60 = vpop.permute.xlu1 %1699 }
 0x40c   : > { %v4904_v30 = vadd.f32 %v1688_v29, %v4801_v15  ;;  %v1044_v55 = vadd.f32 %v1026_v0, %v1006_v27  ;;  %v4910_v32 = vmul.f32 0.0044444446, %v1147_v61  ;;  %v4912_v26 = vmul.f32 0.0044444446, %v1148_v43  ;;  %v5969_v0 = vld [vmem:[#allocation17_spill] sm:$0xff]  ;;  %v5974_v29 = vld [vmem:[#allocation18_spill] sm:$0xff] }
 0x40d   : > { %v4914_v39 = vmul.f32 0.0044444446, %v1149_v62  ;;  %v4916_v10 = vmul.f32 0.0044444446, %v1150_v37  ;;  %v1061_v53 = vadd.f32 %v1043_v16, %v971_v18  ;;  %v1054_v15 = vsel %vm1046_vm3, %v4836_v54, 0.0  ;;  %v5977_v37 = vld [vmem:[#allocation99_spill] sm:$0xff] }
 0x40e   : > { %v4923_v12 = vmul.f32 %v4906_v34, %v4906_v34  ;;  %v4927_v27 = vmul.f32 %v4908_v21, %v4908_v21  ;;  %v1062_v5 = vadd.f32 %v1054_v15, %v1044_v55  ;;  %v4931_v2 = vmul.f32 %v4910_v32, %v4910_v32 }
 0x40f   : > { %v1706_v22 = vpop.permute.xlu0 %1705  ;;  %v1704_v25 = vpop.permute.xlu1 %1703  ;;  %v4935_v18 = vmul.f32 %v4912_v26, %v4912_v26  ;;  %v1071_v54 = vsel %vm5717_vm8, %v4816_v1, 0.0  ;;  %vm5966_vm13 = vcmp.ge.s32.totalorder %v3522_v40, 5  ;;  %v4945_v36 = vmul.f32 %v4914_v39, %v4914_v39 }
 0x410   : > { %v1601_v59 = vsel %vm5966_vm13, %v5965_v8, 0.0  ;;  %v4949_v24 = vmul.f32 %v4916_v10, %v4916_v10  ;;  %v1079_v11 = vadd.f32 %v1071_v54, %v1061_v53  ;;  %vm5968_vm15 = vmmov %vm5966_vm13  ;;  %v1090_v1 = vsel %vm5715_vm9, %v4775_v33, 0.0 }
 0x411   : > { %v1603_v51 = vsel %vm5968_vm15, %v5967_v35, 0.0  ;;  %v1107_v61 = vsel %vm5714_vm14, %v4759_v19, 0.0  ;;  %vm5970_vm0 = vmmov %vm5966_vm13  ;;  %vm5972_vm13 = vcmp.lt.s32.totalorder %v3522_v40, 10  ;;  %v1080_v20 = vadd.f32 %v1062_v5, %v4830_v44  ;;  %v5981_v5 = vld [vmem:[#allocation10_spill] sm:$0xff] }
 0x412   : > { %v1602_v49 = vsel %vm5970_vm0, %v5969_v0, 0.0  ;;  %v1641_v43 = vsel %vm5972_vm13, %v5971_v50, 0.0  ;;  %v1609_v9 = vadd.f32 %v1601_v59, %v5973_v63  ;;  %vm5975_vm15 = vmmov %vm5970_vm0  ;;  %v1611_v16 = vadd.f32 %v1603_v51, %v5977_v37  ;;  %v5983_v59 = vld [vmem:[#allocation12_spill] sm:$0xff]  ;;  %v5986_v0 = vld [vmem:[#allocation19_spill] sm:$0xff] }
 0x413   : > { %v1604_v33 = vsel %vm5975_vm15, %v5974_v29, 0.0  ;;  %vm5976_vm2 = vmmov %vm5972_vm13  ;;  %v1710_v62 = vpop.permute.xlu0 %1709  ;;  %v1708_v28 = vpop.permute.xlu1 %1707  ;;  %vm5980_vm14 = vcmp.ge.s32.totalorder %v3522_v40, 6  ;;  %v1097_v15 = vadd.f32 %v1079_v11, %v4807_v48 }
 0x414   : > { %v1643_v19 = vsel %vm5976_vm2, %v4706_v14, 0.0  ;;  %vm5978_vm0 = vmmov %vm5976_vm2  ;;  %v1681_v53 = vsel %vm5980_vm14, %v4790_v6, 0.0  ;;  %v1610_v14 = vadd.f32 %v1602_v49, %v5981_v5  ;;  %v1649_v54 = vadd.f32 %v1641_v43, %v1609_v9  ;;  %v5990_v9 = vld [vmem:[#allocation20_spill] sm:$0xff] }
 0x415   : > { %v1642_v55 = vsel %vm5978_vm0, %v4708_v46, 0.0  ;;  %vm5979_vm13 = vmmov %vm5978_vm0  ;;  %v1612_v35 = vadd.f32 %v1604_v33, %v5983_v59  ;;  %v1651_v46 = vadd.f32 %v1643_v19, %v1611_v16  ;;  %v1682_v49 = vsel %vm5980_vm14, %v4820_v41, 0.0 }
 0x416   : > { %v1645_v44 = vsel %vm5979_vm13, %v4732_v45, 0.0  ;;  %vm5982_vm2 = vmmov %vm5978_vm0  ;;  %v1650_v6 = vadd.f32 %v1642_v55, %v1610_v14  ;;  %v1689_v11 = vadd.f32 %v1681_v53, %v1649_v54  ;;  %v5024_v14 = vadd.f32 %v1090_v1, %v1080_v20 }
 0x417   : > { %v1644_v8 = vsel %vm5982_vm2, %v4734_v57, 0.0  ;;  %vm5984_vm15 = vmmov %vm5978_vm0  ;;  %vm5985_vm0 = vcmp.lt.s32.totalorder %v3522_v40, 9  ;;  %v1653_v48 = vadd.f32 %v1645_v44, %v5986_v0  ;;  %v1738_v50 = vpop.permute.xlu0 %1737  ;;  %v4999_v57 = vpop.permute.xlu1 %1711 }
 0x418   : > { %v1646_v45 = vsel %vm5984_vm15, %v4761_v58, 0.0  ;;  %v1721_v51 = vsel %vm5985_vm0, %v1698_v7, 0.0  ;;  %v1652_v43 = vadd.f32 %v1644_v8, %v1612_v35  ;;  %vm5987_vm13 = vmmov %vm5980_vm14  ;;  %vm5989_vm15 = vcmp.ge.s32.totalorder %v3522_v40, 7 }
 0x419   : > { %v1683_v63 = vsel %vm5987_vm13, %v4818_v52, 0.0  ;;  %vm5988_vm2 = vmmov %vm5987_vm13  ;;  %v1761_v7 = vsel %vm5989_vm15, %v1738_v50, 0.0  ;;  %v1654_v29 = vadd.f32 %v1646_v45, %v5990_v9  ;;  %v1729_v33 = vadd.f32 %v1721_v51, %v1689_v11 }
 0x41a   : > { %v1685_v58 = vsel %vm5988_vm2, %v4847_v23, 0.0  ;;  %vm5991_vm0 = vmmov %vm5988_vm2  ;;  %vm5992_vm14 = vcmp.lt.s32.totalorder %v3522_v40, 9  ;;  %v1690_v37 = vadd.f32 %v1682_v49, %v1650_v6  ;;  %v1691_v55 = vadd.f32 %v1683_v63, %v1651_v46 }
 0x41b   : > { %v1684_v41 = vsel %vm5991_vm0, %v4849_v56, 0.0  ;;  %v1722_v19 = vsel %vm5992_vm14, %v1700_v60, 0.0  ;;  %vm5993_vm13 = vmmov %vm5991_vm0  ;;  %v1693_v44 = vadd.f32 %v1685_v58, %v1653_v48  ;;  %v1769_v53 = vadd.f32 %v1761_v7, %v1729_v33  ;;  %v1740_v5 = vpop.permute.xlu1 %1739  ;;  %v1742_v35 = vpop.permute.xlu0 %1741 }
 0x41c   : > { %v1686_v52 = vsel %vm5993_vm13, %v4872_v31, 0.0  ;;  %vm5994_vm2 = vmmov %vm5992_vm14  ;;  %v5026_v60 = vadd.f32 %v1107_v61, %v1097_v15  ;;  %v1692_v54 = vadd.f32 %v1684_v41, %v1652_v43  ;;  %v1730_v8 = vadd.f32 %v1722_v19, %v1690_v37 }
 0x41d   : > { %v1723_v23 = vsel %vm5994_vm2, %v1702_v47, 0.0  ;;  %vm5995_vm15 = vmmov %vm5994_vm2  ;;  %v5028_v31 = vadd.f32 %v1686_v52, %v1654_v29  ;;  %vm5997_vm0 = vcmp.ge.s32.totalorder %v3522_v40, 7  ;;  %v1777_v20 = vrot.slane %v1769_v53, 1 }
 0x41e   : > { %v1725_v16 = vsel %vm5995_vm15, %v1706_v22, 0.0  ;;  %vm5996_vm9 = vmmov %vm5994_vm2  ;;  %v1731_v59 = vadd.f32 %v1723_v23, %v1691_v55  ;;  %v1762_v22 = vsel %vm5997_vm0, %v1740_v5, 0.0  ;;  %v1809_v15 = vrot.slane %v1769_v53, 7 }
 0x41f   : > { %v1724_v56 = vsel %vm5996_vm9, %v1704_v25, 0.0  ;;  %v5030_v47 = vadd.f32 %v1725_v16, %v1693_v44  ;;  %vm5998_vm9 = vmmov %vm5994_vm2  ;;  %v1770_v61 = vadd.f32 %v1762_v22, %v1730_v8  ;;  %v1841_v45 = vrot.slane %v1769_v53, 2 }
 0x420   : > { %v5034_v46 = vadd.f32 %v1724_v56, %v1692_v54  ;;  %v1727_v25 = vsel %vm5998_vm9, %v1710_v62, 0.0  ;;  %vm5999_vm14 = vmmov %vm5994_vm2  ;;  %v1873_v51 = vrot.slane %v1769_v53, 6  ;;  %v1905_v6 = vrot.slane %v1769_v53, 3 }
 0x421   : > { %v5040_v1 = vsel %vm5999_vm14, %v1708_v28, 0.0  ;;  %v1937_v0 = vrot.slane %v1769_v53, 5  ;;  %vm6000_vm13 = vmmov %vm5997_vm0  ;;  %v1781_v11 = vrot.slane %v1770_v61, 1  ;;  %v1813_v49 = vrot.slane %v1770_v61, 7 }
 0x422   : > { %v1763_v48 = vsel %vm6000_vm13, %v1742_v35, 0.0  ;;  %v1845_v50 = vrot.slane %v1770_v61, 2  ;;  %v1877_v43 = vrot.slane %v1770_v61, 6  ;;  %v1909_v63 = vrot.slane %v1770_v61, 3 }
 0x423   : > { %vm6001_vm2 = vcmp.lt.s32.totalorder %v4040_v17, 7  ;;  %v1941_v58 = vrot.slane %v1770_v61, 5  ;;  %v1973_v7 = vrot.slane %v1770_v61, 4  ;;  %vm6003_vm0 = vcmp.lt.s32.totalorder %v4040_v17, 1 }
 0x424   : > { %v5046_v62 = vsel %vm6001_vm2, %v1777_v20, %v1781_v11  ;;  %vm6002_vm15 = vmmov %vm6001_vm2  ;;  %v5055_v41 = vsel %vm6003_vm0, %v1809_v15, %v1813_v49  ;;  %vm6005_vm14 = vcmp.ge.s32.totalorder %v4040_v17, 1  ;;  %vm6006_vm13 = vcmp.lt.s32.totalorder %v4040_v17, 6 }
 0x425   : > { %v1789_v28 = vsel %vm6002_vm15, %v1781_v11, %v1777_v20  ;;  %v1801_v29 = vadd.f32 %v5046_v62, %v1769_v53  ;;  %vm6004_vm9 = vmmov %vm6003_vm0  ;;  %v5063_v52 = vsel %vm6006_vm13, %v1841_v45, %v1845_v50  ;;  %v5067_v16 = vadd.f32 %v1763_v48, %v1731_v59 }
 0x426   : > { %v1794_v9 = vsel %vm5716_vm1, %v1789_v28, 0.0  ;;  %v1821_v33 = vsel %vm6004_vm9, %v1813_v49, %v1809_v15  ;;  %vm6007_vm2 = vmmov %vm6006_vm13  ;;  %v5071_v44 = vsel %vm897_vm5, %v1873_v51, %v1877_v43  ;;  %v1885_v56 = vsel %vm897_vm5, %v1877_v43, %v1873_v51 }
 0x427   : > { %v1802_v19 = vadd.f32 %v1794_v9, %v1770_v61  ;;  %v1825_v37 = vsel %vm6005_vm14, %v1821_v33, 0.0  ;;  %v1853_v23 = vsel %vm6007_vm2, %v1845_v50, %v1841_v45  ;;  %v1969_v5 = vrot.slane %v1769_v53, 4  ;;  %v1744_v50 = vpop.permute.xlu1 %1743  ;;  %v1746_v9 = vpop.permute.xlu0 %1745 }
 0x428   : > { %v1833_v55 = vadd.f32 %v1825_v37, %v1801_v29  ;;  %v5078_v8 = vsel %vm932_vm12, %v1905_v6, %v1909_v63  ;;  %v1917_v35 = vsel %vm932_vm12, %v1909_v63, %v1905_v6  ;;  %v1858_v59 = vsel %vm853_vm4, %v1853_v23, 0.0 }
 0x429   : > { %v1834_v54 = vadd.f32 %v5055_v41, %v1802_v19  ;;  %v1945_v61 = vsel %vm967_vm11, %v1937_v0, %v1941_v58  ;;  %v1949_v53 = vsel %vm967_vm11, %v1941_v58, %v1937_v0  ;;  %v1889_v15 = vsel %vm887_vm6, %v1885_v56, 0.0 }
 0x42a   : > { %v1865_v22 = vadd.f32 %v5063_v52, %v1833_v55  ;;  %v1977_v45 = vsel %vm1002_vm10, %v1969_v5, %v1973_v7  ;;  %v1981_v51 = vsel %vm1002_vm10, %v1973_v7, %v1969_v5  ;;  %v5096_v6 = vadd.f32 %v1727_v25, %v4883_v42 }
 0x42b   : > { %v1866_v20 = vadd.f32 %v1858_v59, %v1834_v54  ;;  %v1778_v48 = vrot.slane %v5067_v16, 1  ;;  %v1810_v11 = vrot.slane %v5067_v16, 7  ;;  %v1842_v0 = vrot.slane %v5067_v16, 2 }
 0x42c   : > { %v1897_v49 = vadd.f32 %v1889_v15, %v1865_v22  ;;  %v1874_v43 = vrot.slane %v5067_v16, 6  ;;  %v1906_v63 = vrot.slane %v5067_v16, 3  ;;  %v1938_v7 = vrot.slane %v5067_v16, 5 }
 0x42d   : > { %v1898_v58 = vadd.f32 %v5071_v44, %v1866_v20  ;;  %v1922_v25 = vsel %vm923_vm7, %v1917_v35, 0.0  ;;  %vm6008_vm15 = vcmp.ge.s32.totalorder %v4040_v17, 3  ;;  %vm6009_vm0 = vcmp.lt.s32.totalorder %v4078_v13, 12 }
 0x42e   : > { %v1929_v29 = vadd.f32 %v5078_v8, %v1897_v49  ;;  %v1953_v37 = vsel %vm6008_vm15, %v1949_v53, 0.0  ;;  %v1986_v55 = vsel %vm6009_vm0, %v1981_v51, 0.0  ;;  %vm6010_vm9 = vcmp.ge.s32.totalorder %v3522_v40, 7 }
 0x42f   : > { %v1930_v19 = vadd.f32 %v1922_v25, %v1898_v58  ;;  %v1764_v5 = vsel %vm6010_vm9, %v1744_v50, 0.0  ;;  %vm6011_vm14 = vcmp.ge.s32.totalorder %v4040_v17, 4  ;;  %vm6012_vm13 = vmmov %vm6010_vm9  ;;  %v2018_v49 = vsel %vm1046_vm3, %v1949_v53, 0.0 }
 0x430   : > { %v1961_v54 = vadd.f32 %v1953_v37, %v1929_v29  ;;  %v2001_v59 = vsel %vm6011_vm14, %v1981_v51, 0.0  ;;  %v1765_v22 = vsel %vm6012_vm13, %v1746_v9, 0.0  ;;  %v5120_v20 = vadd.f32 %v1764_v5, %v5034_v46 }
 0x431   : > { %v1962_v15 = vadd.f32 %v1945_v61, %v1930_v19  ;;  %v2033_v58 = vsel %vm5717_vm8, %v1917_v35, 0.0  ;;  %vm6013_vm2 = vcmp.lt.s32.totalorder %v4078_v13, 10  ;;  %vm6014_vm15 = vcmp.ge.s32.totalorder %v4040_v17, 6 }
 0x432   : > { %v2050_v50 = vsel %vm6013_vm2, %v1885_v56, 0.0  ;;  %v1993_v25 = vadd.f32 %v1977_v45, %v1961_v54  ;;  %v2065_v51 = vsel %vm6014_vm15, %v1853_v23, 0.0  ;;  %vm6015_vm0 = vcmp.lt.s32.totalorder %v4078_v13, 9 }
 0x433   : > { %v2082_v9 = vsel %vm6015_vm0, %v1821_v33, 0.0  ;;  %vm6016_vm9 = vcmp.ge.s32.totalorder %v4040_v17, 7  ;;  %v1994_v29 = vadd.f32 %v1986_v55, %v1962_v15  ;;  %v5135_v19 = vadd.f32 %v1765_v22, %v5030_v47 }
 0x434   : > { %v2097_v46 = vsel %vm6016_vm9, %v1789_v28, 0.0  ;;  %v1782_v53 = vrot.slane %v5120_v20, 1  ;;  %v1814_v35 = vrot.slane %v5120_v20, 7  ;;  %v2009_v37 = vadd.f32 %v2001_v59, %v1993_v25 }
 0x435   : > { %v1846_v56 = vrot.slane %v5120_v20, 2  ;;  %v1878_v5 = vrot.slane %v5120_v20, 6  ;;  %v1910_v23 = vrot.slane %v5120_v20, 3  ;;  %v2010_v54 = vadd.f32 %v1994_v29, %v1977_v45 }
 0x436   : > { %vm6017_vm14 = vcmp.lt.s32.totalorder %v4040_v17, 7  ;;  %vm6019_vm2 = vcmp.lt.s32.totalorder %v4040_v17, 1  ;;  %v2025_v55 = vadd.f32 %v2009_v37, %v1945_v61  ;;  %vm6021_vm0 = vcmp.ge.s32.totalorder %v4040_v17, 1 }
 0x437   : > { %v5144_v33 = vsel %vm6017_vm14, %v1778_v48, %v1782_v53  ;;  %vm6018_vm13 = vmmov %vm6017_vm14  ;;  %v5152_v28 = vsel %vm6019_vm2, %v1810_v11, %v1814_v35  ;;  %v2026_v15 = vadd.f32 %v2018_v49, %v2010_v54  ;;  %vm6022_vm9 = vcmp.lt.s32.totalorder %v4040_v17, 6 }
 0x438   : > { %v5148_v47 = vsel %vm6018_vm13, %v1782_v53, %v1778_v48  ;;  %v1803_v45 = vadd.f32 %v5144_v33, %v5067_v16  ;;  %vm6020_vm15 = vmmov %vm6019_vm2  ;;  %v5169_v61 = vsel %vm6022_vm9, %v1842_v0, %v1846_v56  ;;  %v2041_v29 = vadd.f32 %v2033_v58, %v2025_v55  ;;  %v1750_v55 = vpop.permute.xlu0 %1749 }
 0x439   : > { %v1796_v59 = vsel %vm5716_vm1, %v5148_v47, 0.0  ;;  %v5161_v22 = vsel %vm6020_vm15, %v1814_v35, %v1810_v11  ;;  %vm6023_vm14 = vmmov %vm6022_vm9  ;;  %v5177_v11 = vsel %vm897_vm5, %v1874_v43, %v1878_v5  ;;  %v2042_v49 = vadd.f32 %v2026_v15, %v5078_v8 }
 0x43a   : > { %v1804_v48 = vadd.f32 %v1796_v59, %v5120_v20  ;;  %v1827_v25 = vsel %vm6021_vm0, %v5161_v22, 0.0  ;;  %v5173_v37 = vsel %vm6023_vm14, %v1846_v56, %v1842_v0  ;;  %v1886_v58 = vsel %vm897_vm5, %v1878_v5, %v1874_v43 }
 0x43b   : > { %v1835_v53 = vadd.f32 %v1827_v25, %v1803_v45  ;;  %v1860_v54 = vsel %vm853_vm4, %v5173_v37, 0.0  ;;  %v2057_v59 = vadd.f32 %v2041_v29, %v5071_v44  ;;  %v1891_v56 = vsel %vm887_vm6, %v1886_v58, 0.0 }
 0x43c   : > { %v1836_v35 = vadd.f32 %v5152_v28, %v1804_v48  ;;  %v5192_v8 = vsel %vm932_vm12, %v1906_v63, %v1910_v23  ;;  %v2058_v45 = vadd.f32 %v2050_v50, %v2042_v49  ;;  %v1918_v48 = vsel %vm932_vm12, %v1910_v23, %v1906_v63 }
 0x43d   : > { %v1867_v0 = vadd.f32 %v5169_v61, %v1835_v53  ;;  %v1942_v25 = vrot.slane %v5120_v20, 5  ;;  %v2073_v43 = vadd.f32 %v2065_v51, %v2057_v59  ;;  %v1974_v44 = vrot.slane %v5120_v20, 4 }
 0x43e   : > { %v1868_v15 = vadd.f32 %v1860_v54, %v1836_v35  ;;  %vm6024_vm13 = vcmp.ge.s32.totalorder %v3522_v40, 7  ;;  %v2074_v53 = vadd.f32 %v2058_v45, %v5063_v52  ;;  %v1924_v20 = vsel %vm923_vm7, %v1918_v48, 0.0  ;;  %v1748_v35 = vpop.permute.xlu1 %1747 }
 0x43f   : > { %v1899_v5 = vadd.f32 %v1891_v56, %v1867_v0  ;;  %v1767_v29 = vsel %vm6024_vm13, %v1750_v55, 0.0  ;;  %v1946_v50 = vsel %vm967_vm11, %v1938_v7, %v1942_v25  ;;  %v1950_v63 = vsel %vm967_vm11, %v1942_v25, %v1938_v7  ;;  %vm6029_vm0 = vmmov %vm6024_vm13 }
 0x440   : > { %v1900_v42 = vadd.f32 %v5177_v11, %v1868_v15  ;;  %v2089_v51 = vadd.f32 %v2073_v43, %v5055_v41  ;;  %v6025_v52 = vrot.slane %v5067_v16, 4  ;;  %v2090_v54 = vadd.f32 %v2082_v9, %v2074_v53 }
 0x441   : > { %v1931_v23 = vadd.f32 %v5192_v8, %v1899_v5  ;;  %vm6026_vm2 = vcmp.ge.s32.totalorder %v4040_v17, 3  ;;  %v1734_v0 = vadd.f32 %v5040_v1, %v5028_v31  ;;  %vm6028_vm15 = vcmp.lt.s32.totalorder %v3522_v40, 9 }
 0x442   : > { %v1978_v49 = vsel %vm1002_vm10, %v6025_v52, %v1974_v44  ;;  %v1932_v55 = vadd.f32 %v1924_v20, %v1900_v42  ;;  %v1955_v59 = vsel %vm6026_vm2, %v1950_v63, 0.0  ;;  %v6027_v7 = vmov %v6025_v52 }
 0x443   : > { %v1982_v41 = vsel %vm1002_vm10, %v1974_v44, %v6027_v7  ;;  %v5229_v56 = vsel %vm6028_vm15, %v4999_v57, 0.0  ;;  %v2105_v45 = vadd.f32 %v2097_v46, %v2089_v51  ;;  %v1963_v15 = vadd.f32 %v1955_v59, %v1931_v23 }
 0x444   : > { %v2106_v42 = vadd.f32 %v2090_v54, %v5046_v62  ;;  %v1964_v9 = vadd.f32 %v1946_v50, %v1932_v55  ;;  %v5233_v25 = vadd.f32 %v1767_v29, %v5096_v6  ;;  %v1766_v16 = vsel %vm6029_vm0, %v1748_v35, 0.0 }
 0x445   : > { %v2121_v43 = vmul.f32 0.0044444446, %v2105_v45  ;;  %v1779_v5 = vrot.slane %v5135_v19, 1  ;;  %vm6030_vm9 = vcmp.lt.s32.totalorder %v4078_v13, 12  ;;  %v1995_v1 = vadd.f32 %v1978_v49, %v1963_v15 }
 0x446   : > { %v1988_v31 = vsel %vm6030_vm9, %v1982_v41, 0.0  ;;  %v2122_v57 = vmul.f32 0.0044444446, %v2106_v42  ;;  %v1811_v46 = vrot.slane %v5135_v19, 7  ;;  %vm6031_vm14 = vcmp.ge.s32.totalorder %v4040_v17, 4 }
 0x447   : > { %v1996_v44 = vadd.f32 %v1988_v31, %v1964_v9  ;;  %v2003_v62 = vsel %vm6031_vm14, %v1982_v41, 0.0  ;;  %v2137_v6 = vsub.f32 %v2121_v43, %v4923_v12  ;;  %v1843_v29 = vrot.slane %v5135_v19, 2 }
 0x448   : > { %v1875_v53 = vrot.slane %v5135_v19, 6  ;;  %v2011_v51 = vadd.f32 %v2003_v62, %v1995_v1  ;;  %v2138_v20 = vsub.f32 %v2122_v57, %v4927_v27  ;;  %v1907_v23 = vrot.slane %v5135_v19, 3 }
 0x449   : > { %v1939_v52 = vrot.slane %v5135_v19, 5  ;;  %v2012_v35 = vadd.f32 %v1996_v44, %v1978_v49  ;;  %v5249_v54 = vmax.f32 %v2137_v6, 1e-06  ;;  %v1971_v55 = vrot.slane %v5135_v19, 4 }
 0x44a   : > { %v2020_v59 = vsel %vm1046_vm3, %v1950_v63, 0.0  ;;  %v2027_v12 = vadd.f32 %v2011_v51, %v1946_v50  ;;  %v5254_v7 = vmax.f32 %v2138_v20, 1e-06  ;;  %v2035_v45 = vsel %vm5717_vm8, %v1918_v48, 0.0 }
 0x44b   : > { %v2028_v41 = vadd.f32 %v2020_v59, %v2012_v35  ;;  %v5258_v27 = vadd.f32 %v1766_v16, %v1734_v0  ;;  %2423 = vrsqrt.f32 %v5249_v54  ;;  %vm6032_vm13 = vcmp.lt.s32.totalorder %v4078_v13, 10 }
 0x44c   : > { %v2052_v49 = vsel %vm6032_vm13, %v1886_v58, 0.0  ;;  %vm6033_vm2 = vcmp.ge.s32.totalorder %v4040_v17, 6  ;;  %vm6034_vm15 = vcmp.lt.s32.totalorder %v4078_v13, 9  ;;  %v2158_v63 = vand.u32 2147483648, %v5249_v54 }
 0x44d   : > { %v2067_v15 = vsel %vm6033_vm2, %v5173_v37, 0.0  ;;  %v2084_v50 = vsel %vm6034_vm15, %v5161_v22, 0.0  ;;  %2425 = vrsqrt.f32 %v5254_v7  ;;  %v2165_v48 = vand.u32 2147483648, %v5254_v7 }
 0x44e   : > { %vm6035_vm0 = vcmp.ge.s32.totalorder %v4040_v17, 7  ;;  %v2043_v42 = vadd.f32 %v2035_v45, %v2027_v12  ;;  %v2044_v58 = vadd.f32 %v2028_v41, %v5192_v8  ;;  %v1783_v9 = vrot.slane %v5258_v27, 1 }
 0x44f   : > { %v2099_v0 = vsel %vm6035_vm0, %v5148_v47, 0.0  ;;  %v1815_v37 = vrot.slane %v5258_v27, 7  ;;  %v1847_v16 = vrot.slane %v5258_v27, 2  ;;  %v1879_v22 = vrot.slane %v5258_v27, 6 }
 0x450   : > { %v1911_v43 = vrot.slane %v5258_v27, 3  ;;  %v1943_v31 = vrot.slane %v5258_v27, 5  ;;  %vm2155_vm9 = vcmp.eq.f32.partialorder %v5249_v54, inf  ;;  %v2059_v1 = vadd.f32 %v2043_v42, %v5177_v11 }
 0x451   : > { %v2060_v47 = vadd.f32 %v2052_v49, %v2044_v58  ;;  %vm6036_vm14 = vcmp.lt.s32.totalorder %v4040_v17, 7  ;;  %vm2157_vm2 = vcmp.eq.f32.partialorder %v5249_v54, 0.0  ;;  %vm2162_vm15 = vcmp.eq.f32.partialorder %v5254_v7, inf }
 0x452   : > { %v5286_v8 = vsel %vm6036_vm14, %v1779_v5, %v1783_v9  ;;  %vm6037_vm13 = vmmov %vm6036_vm14  ;;  %vm6038_vm0 = vcmp.lt.s32.totalorder %v4040_v17, 1  ;;  %vm6041_vm8 = vcmp.lt.s32.totalorder %v4040_v17, 6  ;;  %v5323_v41 = vsel %vm897_vm5, %v1875_v53, %v1879_v22 }
 0x453   : > { %v5290_v57 = vsel %vm6037_vm13, %v1783_v9, %v1779_v5  ;;  %v1805_v11 = vadd.f32 %v5286_v8, %v5135_v19  ;;  %v5301_v62 = vsel %vm6038_vm0, %v1811_v46, %v1815_v37  ;;  %vm6039_vm14 = vmmov %vm6038_vm0  ;;  %vm2164_vm13 = vcmp.eq.f32.partialorder %v5254_v7, 0.0 }
 0x454   : > { %v1798_v44 = vsel %vm5716_vm1, %v5290_v57, 0.0  ;;  %v5305_v6 = vsel %vm6039_vm14, %v1815_v37, %v1811_v46  ;;  %v2075_v5 = vadd.f32 %v2067_v15, %v2059_v1  ;;  %v2076_v51 = vadd.f32 %v2060_v47, %v5169_v61  ;;  %vm6042_vm0 = vmmov %vm6041_vm8 }
 0x455   : > { %v1806_v20 = vadd.f32 %v1798_v44, %v5258_v27  ;;  %vm6040_vm1 = vcmp.ge.s32.totalorder %v4040_v17, 1  ;;  %v5315_v12 = vsel %vm6041_vm8, %v1843_v29, %v1847_v16  ;;  %v5319_v46 = vsel %vm6042_vm0, %v1847_v16, %v1843_v29 }
 0x456   : > { %v1829_v35 = vsel %vm6040_vm1, %v5305_v6, 0.0  ;;  %v2091_v61 = vadd.f32 %v2075_v5, %v5152_v28  ;;  %v2092_v45 = vadd.f32 %v2084_v50, %v2076_v51  ;;  %v1862_v15 = vsel %vm853_vm4, %v5319_v46, 0.0  ;;  %v2424_v28 = vpop.eup %2423 }
 0x457   : > { %v1837_v59 = vadd.f32 %v1829_v35, %v1805_v11  ;;  %v1838_v49 = vadd.f32 %v5301_v62, %v1806_v20  ;;  %v1887_v58 = vsel %vm897_vm5, %v1879_v22, %v1875_v53  ;;  %v5335_v29 = vsel %vm932_vm12, %v1907_v23, %v1911_v43  ;;  %v2426_v47 = vpop.eup %2425 }
 0x458   : > { %v1919_v9 = vsel %vm932_vm12, %v1911_v43, %v1907_v23  ;;  %v2107_v50 = vadd.f32 %v2099_v0, %v2091_v61  ;;  %v2108_v37 = vadd.f32 %v2092_v45, %v5144_v33  ;;  %v1893_v1 = vsel %vm887_vm6, %v1887_v58, 0.0 }
 0x459   : > { %v1869_v42 = vadd.f32 %v5315_v12, %v1837_v59  ;;  %v1870_v16 = vadd.f32 %v1862_v15, %v1838_v49  ;;  %v2154_v44 = vmul.f32 %v2424_v28, %v5249_v54  ;;  %v1926_v53 = vsel %vm923_vm7, %v1919_v9, 0.0 }
 0x45a   : > { %v1947_v23 = vsel %vm967_vm11, %v1939_v52, %v1943_v31  ;;  %v2161_v0 = vmul.f32 %v2426_v47, %v5254_v7  ;;  %v2123_v22 = vmul.f32 0.0044444446, %v2107_v50  ;;  %v2124_v33 = vmul.f32 0.0044444446, %v2108_v37 }
 0x45b   : > { %v1901_v11 = vadd.f32 %v1893_v1, %v1869_v42  ;;  %v1902_v43 = vadd.f32 %v5323_v41, %v1870_v16  ;;  %v2156_v5 = vsel %vm2155_vm9, %v5249_v54, %v2154_v44  ;;  %v1951_v20 = vsel %vm967_vm11, %v1943_v31, %v1939_v52 }
 0x45c   : > { %v1975_v35 = vrot.slane %v5258_v27, 4  ;;  %v2159_v59 = vsel %vm2157_vm2, %v2158_v63, %v2156_v5  ;;  %v2163_v61 = vsel %vm2162_vm15, %v5254_v7, %v2161_v0  ;;  %v2139_v45 = vsub.f32 %v2123_v22, %v4931_v2 }
 0x45d   : > { %v1933_v51 = vadd.f32 %v5335_v29, %v1901_v11  ;;  %v2140_v49 = vsub.f32 %v2124_v33, %v4935_v18  ;;  %v2166_v15 = vsel %vm2164_vm13, %v2165_v48, %v2163_v61  ;;  %v2217_v42 = vadd.f32 1e-06, %v2159_v59  ;;  %v1752_v48 = vpop.permute.xlu1 %1751 }
 0x45e   : > { %v1934_v28 = vadd.f32 %v1926_v53, %v1902_v43  ;;  %vm6043_vm1 = vcmp.ge.s32.totalorder %v4040_v17, 3  ;;  %v1736_v54 = vadd.f32 %v5229_v56, %v4904_v30  ;;  %v5373_v27 = vmax.f32 %v2139_v45, 1e-06 }
 0x45f   : > { %v1957_v52 = vsel %vm6043_vm1, %v1951_v20, 0.0  ;;  %v5375_v63 = vmax.f32 %v2140_v49, 1e-06  ;;  %v2218_v50 = vadd.f32 1e-06, %v2166_v15  ;;  %v1979_v18 = vsel %vm1002_vm10, %v1971_v55, %v1975_v35 }
 0x460   : > { %v1965_v31 = vadd.f32 %v1957_v52, %v1933_v51  ;;  %v1966_v2 = vadd.f32 %v1947_v23, %v1934_v28  ;;  %v1983_v7 = vsel %vm1002_vm10, %v1975_v35, %v1971_v55  ;;  %2427 = vrcp.f32 %v2217_v42 }
 0x461   : > { %v1780_v30 = vrot.slane %v5233_v25, 1  ;;  %v1812_v56 = vrot.slane %v5233_v25, 7  ;;  %v1844_v37 = vrot.slane %v5233_v25, 2  ;;  %2429 = vrsqrt.f32 %v5373_v27 }
 0x462   : > { %v1876_v16 = vrot.slane %v5233_v25, 6  ;;  %v1908_v1 = vrot.slane %v5233_v25, 3  ;;  %v1940_v47 = vrot.slane %v5233_v25, 5  ;;  %2431 = vrsqrt.f32 %v5375_v63 }
 0x463   : > { %vm6044_vm8 = vcmp.lt.s32.totalorder %v4078_v13, 12  ;;  %v1997_v55 = vadd.f32 %v1979_v18, %v1965_v31  ;;  %vm6045_vm9 = vcmp.ge.s32.totalorder %v3522_v40, 7  ;;  %2433 = vrcp.f32 %v2218_v50 }
 0x464   : > { %v1990_v19 = vsel %vm6044_vm8, %v1983_v7, 0.0  ;;  %v1768_v44 = vsel %vm6045_vm9, %v1752_v48, 0.0  ;;  %v1972_v11 = vrot.slane %v5233_v25, 4  ;;  %vm6046_vm2 = vcmp.ge.s32.totalorder %v4040_v17, 4 }
 0x465   : > { %v1998_v53 = vadd.f32 %v1990_v19, %v1966_v2  ;;  %v2005_v0 = vsel %vm6046_vm2, %v1983_v7, 0.0  ;;  %v2172_v22 = vand.u32 2147483648, %v5373_v27  ;;  %v2179_v33 = vand.u32 2147483648, %v5375_v63 }
 0x466   : > { %v2013_v43 = vadd.f32 %v2005_v0, %v1997_v55  ;;  %v2022_v5 = vsel %vm1046_vm3, %v1951_v20, 0.0  ;;  %vm2169_vm15 = vcmp.eq.f32.partialorder %v5373_v27, inf  ;;  %vm6047_vm14 = vcmp.ge.s32.totalorder %v4040_v17, 5 }
 0x467   : > { %v2014_v51 = vadd.f32 %v1998_v53, %v1979_v18  ;;  %v2037_v40 = vsel %vm6047_vm14, %v1919_v9, 0.0  ;;  %vm6048_vm13 = vcmp.lt.s32.totalorder %v4078_v13, 10  ;;  %v5409_v59 = vadd.f32 %v1768_v44, %v1736_v54 }
 0x468   : > { %v2054_v35 = vsel %vm6048_vm13, %v1887_v58, 0.0  ;;  %vm2171_vm0 = vcmp.eq.f32.partialorder %v5373_v27, 0.0  ;;  %vm2176_vm1 = vcmp.eq.f32.partialorder %v5375_v63, inf  ;;  %v2029_v61 = vadd.f32 %v2013_v43, %v1947_v23 }
 0x469   : > { %vm6049_vm8 = vcmp.ge.s32.totalorder %v4040_v17, 6  ;;  %vm6050_vm9 = vcmp.lt.s32.totalorder %v4078_v13, 9  ;;  %vm6051_vm2 = vcmp.ge.s32.totalorder %v4040_v17, 7  ;;  %vm2178_vm14 = vcmp.eq.f32.partialorder %v5375_v63, 0.0 }
 0x46a   : > { %v2069_v20 = vsel %vm6049_vm8, %v5319_v46, 0.0  ;;  %v2086_v45 = vsel %vm6050_vm9, %v5305_v6, 0.0  ;;  %v2101_v9 = vsel %vm6051_vm2, %v5290_v57, 0.0  ;;  %v2030_v58 = vadd.f32 %v2022_v5, %v2014_v51  ;;  %v5442_v50 = vpop.eup %2427 }
 0x46b   : > { %v1784_v49 = vrot.slane %v5409_v59, 1  ;;  %v1816_v15 = vrot.slane %v5409_v59, 7  ;;  %v1848_v23 = vrot.slane %v5409_v59, 2  ;;  %v2045_v42 = vadd.f32 %v2037_v40, %v2029_v61  ;;  %v2430_v48 = vpop.eup %2429 }
 0x46c   : > { %v1880_v46 = vrot.slane %v5409_v59, 6  ;;  %v1912_v28 = vrot.slane %v5409_v59, 3  ;;  %v1944_v6 = vrot.slane %v5409_v59, 5  ;;  %v2046_v52 = vadd.f32 %v2030_v58, %v5335_v29  ;;  %v2432_v44 = vpop.eup %2431 }
 0x46d   : > { %vm6052_vm13 = vcmp.lt.s32.totalorder %v4040_v17, 7  ;;  %vm6054_vm9 = vcmp.lt.s32.totalorder %v4040_v17, 1  ;;  %v2061_v2 = vadd.f32 %v2045_v42, %v5323_v41  ;;  %vm6055_vm2 = vcmp.lt.s32.totalorder %v4078_v13, 15  ;;  %v5467_v5 = vpop.eup %2433 }
 0x46e   : > { %v5432_v57 = vsel %vm6052_vm13, %v1780_v30, %v1784_v49  ;;  %vm6053_vm8 = vmmov %vm6052_vm13  ;;  %v5440_v31 = vsel %vm6054_vm9, %v1812_v56, %v1816_v15  ;;  %v2168_v53 = vmul.f32 %v2430_v48, %v5373_v27  ;;  %v2175_v51 = vmul.f32 %v2432_v44, %v5375_v63 }
 0x46f   : > { %v5436_v54 = vsel %vm6053_vm8, %v1784_v49, %v1780_v30  ;;  %v1807_v18 = vadd.f32 %v5432_v57, %v5233_v25  ;;  %vm6056_vm13 = vmmov %vm6054_vm9  ;;  %v2062_v30 = vadd.f32 %v2054_v35, %v2046_v52  ;;  %vm6057_vm8 = vcmp.ge.s32.totalorder %v4040_v17, 1  ;;  %v2457_v25 = vld [vmem:[%s2702_s30 + $0x10] sm:$0xff] }
 0x470   : > { %v1800_v29 = vsel %vm6055_vm2, %v5436_v54, 0.0  ;;  %v5452_v7 = vsel %vm6056_vm13, %v1816_v15, %v1812_v56  ;;  %vm6058_vm9 = vcmp.lt.s32.totalorder %v4040_v17, 6  ;;  %v2077_v0 = vadd.f32 %v2069_v20, %v2061_v2 }
 0x471   : > { %v1808_v19 = vadd.f32 %v1800_v29, %v5409_v59  ;;  %v1831_v55 = vsel %vm6057_vm8, %v5452_v7, 0.0  ;;  %v5460_v41 = vsel %vm6058_vm9, %v1844_v37, %v1848_v23  ;;  %vm6059_vm2 = vmmov %vm6058_vm9  ;;  %v2078_v40 = vadd.f32 %v2062_v30, %v5315_v12 }
 0x472   : > { %v1839_v43 = vadd.f32 %v1831_v55, %v1807_v18  ;;  %v5465_v56 = vsel %vm6059_vm2, %v1848_v23, %v1844_v37  ;;  %v2170_v20 = vsel %vm2169_vm15, %v5373_v27, %v2168_v53  ;;  %v2093_v58 = vadd.f32 %v2077_v0, %v5301_v62 }
 0x473   : > { %v1840_v35 = vadd.f32 %v5440_v31, %v1808_v19  ;;  %v1864_v61 = vsel %vm853_vm4, %v5465_v56, 0.0  ;;  %v5484_v49 = vsel %vm897_vm5, %v1876_v16, %v1880_v46  ;;  %v2173_v12 = vsel %vm2171_vm0, %v2172_v22, %v2170_v20 }
 0x474   : > { %v1871_v37 = vadd.f32 %v5460_v41, %v1839_v43  ;;  %v2177_v15 = vsel %vm2176_vm1, %v5375_v63, %v2175_v51  ;;  %v2094_v23 = vadd.f32 %v2086_v45, %v2078_v40  ;;  %v2219_v52 = vadd.f32 1e-06, %v2173_v12 }
 0x475   : > { %v1872_v42 = vadd.f32 %v1864_v61, %v1840_v35  ;;  %v2180_v62 = vsel %vm2178_vm14, %v2179_v33, %v2177_v15  ;;  %v2109_v2 = vadd.f32 %v2101_v9, %v2093_v58  ;;  %v5497_v29 = vsel %vm897_vm5, %v1880_v46, %v1876_v16 }
 0x476   : > { %v2220_v18 = vadd.f32 1e-06, %v2180_v62  ;;  %v2110_v27 = vadd.f32 %v2094_v23, %v5286_v8  ;;  %v1895_v22 = vsel %vm887_vm6, %v5497_v29, 0.0  ;;  %2435 = vrcp.f32 %v2219_v52 }
 0x477   : > { %v1904_v45 = vadd.f32 %v5484_v49, %v1872_v42  ;;  %v2125_v63 = vmul.f32 0.0044444446, %v2109_v2  ;;  %v1903_v33 = vadd.f32 %v1895_v22, %v1871_v37  ;;  %v1916_v9 = vsel %vm932_vm12, %v1908_v1, %v1912_v28  ;;  %v2458_v37 = vld [vmem:[%s2702_s30 + $0x18] sm:$0xff] }
 0x478   : > { %2437 = vrcp.f32 %v2220_v18  ;;  %v2126_v16 = vmul.f32 0.0044444446, %v2110_v27  ;;  %v1920_v8 = vsel %vm932_vm12, %v1912_v28, %v1908_v1  ;;  %v1948_v46 = vsel %vm967_vm11, %v1940_v47, %v1944_v6  ;;  %v6066_v18 = vld [vmem:[#allocation23_spill] sm:$0xff] }
 0x479   : > { %v2141_v48 = vsub.f32 %v2125_v63, %v4945_v36  ;;  %v1928_v30 = vsel %vm923_vm7, %v1920_v8, 0.0  ;;  %v1935_v19 = vadd.f32 %v1916_v9, %v1903_v33  ;;  %v1952_v55 = vsel %vm967_vm11, %v1944_v6, %v1940_v47 }
 0x47a   : > { %v2142_v1 = vsub.f32 %v2126_v16, %v4949_v24  ;;  %v1936_v28 = vadd.f32 %v1928_v30, %v1904_v45  ;;  %vm6060_vm12 = vcmp.ge.s32.totalorder %v4040_v17, 3  ;;  %v1976_v53 = vrot.slane %v5409_v59, 4  ;;  %v2455_v59 = vld [vmem:[%s2702_s30] sm:$0xff] }
 0x47b   : > { %v1959_v44 = vsel %vm6060_vm12, %v1952_v55, 0.0  ;;  %v1116_v36 = vadd.f32 %v5024_v14, %v4768_v4  ;;  %v5529_v0 = vmax.f32 %v2141_v48, 1e-06  ;;  %v2209_v4 = vsub.f32 %v2455_v59, %v4906_v34  ;;  %v2456_v14 = vld [vmem:[%s2702_s30 + $0x8] sm:$0xff] }
 0x47c   : > { %v1967_v43 = vadd.f32 %v1959_v44, %v1935_v19  ;;  %v5531_v51 = vmax.f32 %v2142_v1, 1e-06  ;;  %v1968_v40 = vadd.f32 %v1948_v46, %v1936_v28  ;;  %v1980_v24 = vsel %vm1002_vm10, %v1972_v11, %v1976_v53 }
 0x47d   : > { %v1984_v47 = vsel %vm1002_vm10, %v1976_v53, %v1972_v11  ;;  %2439 = vrsqrt.f32 %v5529_v0  ;;  %v2210_v6 = vsub.f32 %v2456_v14, %v4908_v21  ;;  %vm6061_vm11 = vcmp.lt.s32.totalorder %v4078_v13, 9 }
 0x47e   : > { %v1126_v35 = vsel %vm6061_vm11, %v4704_v38, 0.0  ;;  %v1133_v61 = vadd.f32 %v5026_v60, %v4751_v3  ;;  %2441 = vrsqrt.f32 %v5531_v51  ;;  %v2211_v11 = vsub.f32 %v2457_v25, %v4910_v32  ;;  %v6064_v60 = vld [vmem:[#allocation22_spill] sm:$0xff]  ;;  %vm6070_vm8 = vmmov %vm6061_vm11 }
 0x47f   : > { %v1134_v20 = vadd.f32 %v1126_v35, %v1116_v36  ;;  %vm6062_vm10 = vcmp.lt.s32.totalorder %v4078_v13, 12  ;;  %v1999_v58 = vadd.f32 %v1980_v24, %v1967_v43  ;;  %v2212_v21 = vsub.f32 %v2458_v37, %v4912_v26 }
 0x480   : > { %v1992_v34 = vsel %vm6062_vm10, %v1984_v47, 0.0  ;;  %vm6063_vm4 = vcmp.ge.s32.totalorder %v4040_v17, 4  ;;  %vm2241_vm5 = vcmask 130048   ;;  %v2436_v3 = vpop.eup %2435  ;;  %vm6065_vm6 = vcmp.ge.s32.totalorder %v4040_v17, 7 }
 0x481   : > { %v2000_v12 = vadd.f32 %v1992_v34, %v1968_v40  ;;  %v2007_v38 = vsel %vm6063_vm4, %v1984_v47, 0.0  ;;  %v1143_v15 = vsel %vm6065_vm6, %v6064_v60, 0.0  ;;  %v2226_v23 = vmul.f32 %v5442_v50, %v2209_v4  ;;  %vm6071_vm9 = vmmov %vm6065_vm6  ;;  %v2460_v34 = vld [vmem:[%s2702_s30 + $0x28] sm:$0xff] }
 0x482   : > { %v2015_v32 = vadd.f32 %v2007_v38, %v1999_v58  ;;  %v2228_v42 = vmul.f32 %v5467_v5, %v2210_v6  ;;  %v2438_v62 = vpop.eup %2437  ;;  %v1151_v52 = vadd.f32 %v1143_v15, %v1133_v61  ;;  %v2230_v26 = vmul.f32 %v2436_v3, %v2211_v11  ;;  %v2459_v11 = vld [vmem:[%s2702_s30 + $0x20] sm:$0xff] }
 0x483   : > { %v2016_v2 = vadd.f32 %v2000_v12, %v1980_v24  ;;  %v1152_v27 = vadd.f32 %v1134_v20, %v6066_v18  ;;  %v2024_v22 = vsel %vm1046_vm3, %v1952_v55, 0.0  ;;  %v2232_v63 = vmul.f32 %v2438_v62, %v2212_v21  ;;  %2242 = vst.msk [vmem:[%s5570_s22] sm:$0xff] %vm2241_vm5, %v2226_v23 }
 0x484   : > { %v2031_v45 = vadd.f32 %v2015_v32, %v1948_v46  ;;  %2243 = vst.msk [vmem:[%s5570_s22 + $0x8] sm:$0xff] %vm2241_vm5, %v2228_v42  ;;  %vm6067_vm7 = vcmp.ge.s32.totalorder %v4040_v17, 5  ;;  %2244 = vst.msk [vmem:[%s5570_s22 + $0x10] sm:$0xff] %vm2241_vm5, %v2230_v26  ;;  %v5582_v16 = vmul.f32 0.0044444446, %v1151_v52  ;;  %vm2183_vm3 = vcmp.eq.f32.partialorder %v5529_v0, inf }
 0x485   : > { %v2032_v50 = vadd.f32 %v2024_v22, %v2016_v2  ;;  %v2039_v5 = vsel %vm6067_vm7, %v1920_v8, 0.0  ;;  %2245 = vst.msk [vmem:[%s5570_s22 + $0x18] sm:$0xff] %vm2241_vm5, %v2232_v63  ;;  %v5584_v30 = vmul.f32 0.0044444446, %v1152_v27  ;;  %vm6068_vm15 = vcmp.lt.s32.totalorder %v4078_v13, 10  ;;  %v2461_v26 = vld [vmem:[%s2702_s30 + $0x30] sm:$0xff] }
 0x486   : > { %v2047_v33 = vadd.f32 %v2039_v5, %v2031_v45  ;;  %v2056_v19 = vsel %vm6068_vm15, %v5497_v29, 0.0  ;;  %vm2185_vm0 = vcmp.eq.f32.partialorder %v5529_v0, 0.0  ;;  %vm6069_vm1 = vcmp.ge.s32.totalorder %v4040_v17, 6  ;;  %v2462_v22 = vld [vmem:[%s2702_s30 + $0x38] sm:$0xff]  ;;  %s2493_s30 = scalar_lea.vmem %s5635_s26, 1024 }
 0x487   : > { %v2048_v46 = vadd.f32 %v2032_v50, %v1916_v9  ;;  %v2440_v48 = vpop.eup %2439  ;;  %v2071_v9 = vsel %vm6069_vm1, %v5465_v56, 0.0  ;;  %v2186_v44 = vand.u32 2147483648, %v5529_v0  ;;  %vm2190_vm14 = vcmp.eq.f32.partialorder %v5531_v51, inf  ;;  %p2494_p6 = scmp.ne.s32.totalorder %s5635_s26, %s2493_s30  ;;  %p2501_p10 = scmp.lt.s32.totalorder %s2499_s2, %s2493_s30 }
 0x488   : > { %v2063_v55 = vadd.f32 %v2047_v33, %v5484_v49  ;;  %v2442_v8 = vpop.eup %2441  ;;  %v2182_v1 = vmul.f32 %v2440_v48, %v5529_v0  ;;  %vm2192_vm13 = vcmp.eq.f32.partialorder %v5531_v51, 0.0  ;;  %v2193_v49 = vand.u32 2147483648, %v5531_v51 }
 0x489   : > { %v2064_v28 = vadd.f32 %v2056_v19, %v2048_v46  ;;  %v2189_v53 = vmul.f32 %v2442_v8, %v5531_v51  ;;  %v2088_v56 = vsel %vm6070_vm8, %v5452_v7, 0.0  ;;  %v2135_v13 = vmul.f32 %v5582_v16, %v5582_v16  ;;  %p2495_p12 = pnand %p2494_p6, %p6072_p11  ;;  %p2502_p0 = por %p2501_p10, %p2500_p8 }
 0x48a   : > { %v2079_v36 = vadd.f32 %v2071_v9, %v2063_v55  ;;  %v2184_v29 = vsel %vm2183_vm3, %v5529_v0, %v2182_v1  ;;  %v2103_v0 = vsel %vm6071_vm9, %v5436_v54, 0.0  ;;  %v2214_v58 = vsub.f32 %v2460_v34, %v4916_v10 }
 0x48b   : > { %v2080_v43 = vadd.f32 %v2064_v28, %v5460_v41  ;;  %v2187_v40 = vsel %vm2185_vm0, %v2186_v44, %v2184_v29  ;;  %v2191_v24 = vsel %vm2190_vm14, %v5531_v51, %v2189_v53  ;;  %v2215_v18 = vsub.f32 %v2461_v26, %v5582_v16  ;;  %p2496_p13 = pneg %p2495_p12 }
 0x48c   : > { %v2095_v47 = vadd.f32 %v2079_v36, %v5440_v31  ;;  %v2194_v59 = vsel %vm2192_vm13, %v2193_v49, %v2191_v24  ;;  %v2221_v4 = vadd.f32 1e-06, %v2187_v40  ;;  %v2136_v31 = vmul.f32 %v5584_v30, %v5584_v30 }
 0x48d   : > { %v2096_v14 = vadd.f32 %v2088_v56, %v2080_v43  ;;  %v2222_v6 = vadd.f32 1e-06, %v2194_v59  ;;  %v2216_v45 = vsub.f32 %v2462_v22, %v5584_v30  ;;  %p2503_p2 = pnand %p2502_p0, %p2496_p13 }
 0x48e   : > { %v2111_v35 = vadd.f32 %v2103_v0, %v2095_v47  ;;  %2443 = vrcp.f32 %v2221_v4 }
 0x48f   : > { %v2112_v41 = vadd.f32 %v2096_v14, %v5432_v57  ;;  %2445 = vrcp.f32 %v2222_v6  ;;  %v2213_v57 = vsub.f32 %v2459_v11, %v4914_v39 }
 0x490   : > { %v2127_v7 = vmul.f32 0.0044444446, %v2111_v35 }
 0x491   : > { %v2128_v51 = vmul.f32 0.0044444446, %v2112_v41 }
 0x492   : > { %v2143_v17 = vsub.f32 %v2127_v7, %v2135_v13 }
 0x493   : > { %v2144_v54 = vsub.f32 %v2128_v51, %v2136_v31 }
 0x494   : > { %v2151_v61 = vmax.f32 %v2143_v17, 1e-06 }
 0x495   : > { %v2152_v25 = vmax.f32 %v2144_v54, 1e-06 }
 0x496   : > { %2447 = vrsqrt.f32 %v2151_v61  ;;  %vm2197_vm2 = vcmp.eq.f32.partialorder %v2151_v61, inf  ;;  %v2200_v15 = vand.u32 2147483648, %v2151_v61  ;;  %vm2199_vm12 = vcmp.eq.f32.partialorder %v2151_v61, 0.0 }
 0x497   : > { %2449 = vrsqrt.f32 %v2152_v25  ;;  %vm2204_vm11 = vcmp.eq.f32.partialorder %v2152_v25, inf  ;;  %v2207_v10 = vand.u32 2147483648, %v2152_v25  ;;  %vm2206_vm10 = vcmp.eq.f32.partialorder %v2152_v25, 0.0 }
 0x498   : > { %v2444_v20 = vpop.eup %2443 }
 0x499   : > { %v2446_v37 = vpop.eup %2445  ;;  %v2234_v21 = vmul.f32 %v2444_v20, %v2213_v57 }
 0x49a   : > { %v2236_v12 = vmul.f32 %v2446_v37, %v2214_v58 }
 0x49b   : > { %2246 = vst.msk [vmem:[%s5570_s22 + $0x20] sm:$0xff] %vm2241_vm5, %v2234_v21 }
 0x49c   : > { %2247 = vst.msk [vmem:[%s5570_s22 + $0x28] sm:$0xff] %vm2241_vm5, %v2236_v12 }
 0x4a0   : > { %v2448_v38 = vpop.eup %2447 }
 0x4a1   : > { %v2450_v3 = vpop.eup %2449  ;;  %v2196_v60 = vmul.f32 %v2448_v38, %v2151_v61 }
 0x4a2   : > { %v2203_v39 = vmul.f32 %v2450_v3, %v2152_v25 }
 0x4a3   : > { %v2198_v32 = vsel %vm2197_vm2, %v2151_v61, %v2196_v60 }
 0x4a4   : > { %v2201_v23 = vsel %vm2199_vm12, %v2200_v15, %v2198_v32  ;;  %v2205_v42 = vsel %vm2204_vm11, %v2152_v25, %v2203_v39 }
 0x4a5   : > { %v2208_v62 = vsel %vm2206_vm10, %v2207_v10, %v2205_v42  ;;  %v2223_v52 = vadd.f32 1e-06, %v2201_v23 }
 0x4a6   : > { %v2224_v2 = vadd.f32 1e-06, %v2208_v62 }
 0x4a7   : > { %2451 = vrcp.f32 %v2223_v52 }
 0x4a8   : > { %2453 = vrcp.f32 %v2224_v2 }
 0x4b1   : > { %v2452_v27 = vpop.eup %2451 }
 0x4b2   : > { %v2454_v63 = vpop.eup %2453  ;;  %v2238_v50 = vmul.f32 %v2452_v27, %v2215_v18 }
 0x4b3   : > { %v2240_v5 = vmul.f32 %v2454_v63, %v2216_v45 }
 0x4b4   : > { %2248 = vst.msk [vmem:[%s5570_s22 + $0x30] sm:$0xff] %vm2241_vm5, %v2238_v50 }
 0x4b5   : > { %2249 = vst.msk [vmem:[%s5570_s22 + $0x38] sm:$0xff] %vm2241_vm5, %v2240_v5 }
 0x4b6   : > { %2506 = shalt.err (!%p2503_p2)
}
 0x4b7   : > { %s2507_s3 = scalar_lea.hbm %s5633_s27, 1024  ;;  %s2511_s11 = scalar_lea.hbm %s5684_s1, 2048 }
 0x4b8   : > { %p2508_p4 = scmp.ne.s32.totalorder %s5633_s27, %s2507_s3  ;;  %p2512_p9 = scmp.lt.u32.totalorder %s5633_s27, %s5684_s1 }
 0x4b9   : > { %p2513_p1 = scmp.lt.u32.totalorder %s2511_s11, %s2507_s3  ;;  %p2515_p6 = scmp.lt.u32.totalorder %s2507_s3, %s5633_s27 }
 0x4ba   : > { %p2509_p5 = pnand %p2508_p4, %p6072_p11 }
 0x4bb   : > { %p2514_p3 = por %p2513_p1, %p2512_p9 }
 0x4bc   : > { %p2510_p7 = pneg %p2509_p5 }
 0x4bd   : > { %p2516_p12 = por %p2515_p6, %p2514_p3 }
 0x4bf   : > { %p2517_p13 = pnand %p2516_p12, %p2510_p7 }
 0x4c1   : > { %2520 = shalt.err (!%p2517_p13)
}
 0x4c2   : > { %s2580_s16 = smov 128   ;;  %s2581_s20 = smov 8  }
 0x4c3   : > { %2360 = dma.vmem_to_hbm [thread:$0]  (%p6072_p11), %s5635_s26, 1024, %s5633_s27, %s2251_s10, %s2580_s16, %s2580_s16, %s2581_s20  }
 0x4c4 PF: > { %s2280_s21 = sand.u32 1, %s2547_s6   ;;  %p6073_p8 = scmp.ne.s32.totalorder %s5721_s19, 0 }
 0x4c5   : > { %p6074_p10 = scmp.ge.s32.totalorder %s2559_s9, 2  ;;  %s2281_s22 = scalar_lea.sflag [#allocation4], %s2280_s21 }
 0x4c7   : > { %p2367_p0 = pnand %p6074_p10, %p6073_p8 }
 0x4c9   : > { %2542 = dma.done.wait (!%p2367_p0), %s2281_s22, 1024  }
 0x4ca   : > { %2544 = vsyncadd (!%p2367_p0), %s2281_s22, 4294966272  ;;  %p14_p2 = scmp.ge.s32.totalorder %s2617_s12, 4   ;;  %s6075_s6 = smov %s2551_s7 }
 0x4cb   : > { %s6076_s7 = smov %s2555_s8  ;;  %s6077_s8 = smov %s2629_s15 }
 0x4cc   : > { %s6078_s9 = smov %s2617_s12  ;;  %16 = sbr.rel (!%p14_p2) target bundleno = 5 (0x5), region = 69 }
 0x4d3   :  { %2286 = vsyncpa [#allocation3], 1 }
 0x4d4   :  { %2288 = vsyncpa [#allocation3 + $0x1], 1 }
 0x4d5   :  { %2289 = vsyncpa [#allocation4], 1 }
 0x4d6   :  { %2291 = vsyncpa [#allocation4 + $0x1], 1 }

</bundles_post_ra>
